<compile_context>
chip_gen: v6e
topology: v6e:2x2x1
jax: 0.10.0
libtpu: 0.0.40
codegen_flags: <defaults>
</compile_context>

<pallas_src>
import functools

import jax
import jax.numpy as jnp
from jax.experimental import pallas as pl
from jax.experimental.pallas import tpu as pltpu

# ----------------------------- config (small, synthetic) --------------------
CONV_KERNELS = (10, 3, 3, 3, 3, 2, 2)   # HuBERT feature-extractor kernels
CONV_STRIDES = (5, 2, 2, 2, 2, 2, 2)    # HuBERT feature-extractor strides
CONV_DIM = 16                            # stand-in (real hubert-base: 512)
HIDDEN = 32                              # stand-in hubert hidden_size (real: 768)
JOINER_DIM = 32
LABEL_TARGET_SIZE = 10
VOCAB = LABEL_TARGET_SIZE + 1            # + blank
VOCAB_PAD = 128                          # lane-dense joiner / predictor outputs
EMB_DIM = 32                             # predictor symbol_embedding_dim
LSTM_HIDDEN = 32                         # predictor lstm_hidden_dim
NUM_LSTM_LAYERS = 2
LN_EPS = 1e-5                            # torch.nn.LayerNorm default
SUB = 8                                  # TPU sublane granule


# ----------------------------- small helpers --------------------------------


def _pad_to(n, m):
    return -(-n // m) * m


def _conv_frames(t_in):
    frames = []
    t = t_in
    for k, s in zip(CONV_KERNELS, CONV_STRIDES):
        t = (t - k) // s + 1
        frames.append(t)
    return tuple(frames)


def feat_extract_output_lengths(lengths):
    # mirrors HubertModel._get_feat_extract_output_lengths
    lengths = lengths.astype(jnp.int32)
    for k, s in zip(CONV_KERNELS, CONV_STRIDES):
        lengths = (lengths - k) // s + 1
    return lengths


def _ln(x, g, b):
    """LayerNorm over the last dim of a 2-D value (PyTorch eps)."""
    mean = jnp.mean(x, axis=-1, keepdims=True)
    cen = x - mean
    var = jnp.mean(cen * cen, axis=-1, keepdims=True)
    return cen * jax.lax.rsqrt(var + LN_EPS) * g + b


# ----------------------------- Pallas kernels -------------------------------


def _encoder_joiner_kernel(x0_ref, w0_ref, w1_ref, w2_ref, w3_ref, w4_ref,
                           w5_ref, w6_ref, fpg_ref, fpb_ref, wf_ref, bf_ref,
                           pred_ref, wj_ref, bj_ref,
                           o_ref,
                           s0, s1, s2, s3, s4, s5,
                           *, frames, u_pad):
    """Fused: 7-layer conv feature extractor + fp LayerNorm + folded linear +
    RNNT joiner, one batch element per grid step; all activations in VMEM."""
    scr = [s0, s1, s2, s3, s4, s5]
    w_refs = [w1_ref, w2_ref, w3_ref, w4_ref, w5_ref, w6_ref]

    # ---- conv layer 0: taps pre-concatenated in the wrapper -> single dot ----
    h = jnp.dot(x0_ref[0].astype(jnp.bfloat16), w0_ref[...],
                preferred_element_type=jnp.float32)
    s0[...] = jax.nn.gelu(h, approximate=True)
    # TODO(synk): HuBERT uses exact (erf) GELU and a GroupNorm after conv 0;
    # tanh-GELU is used and GroupNorm is omitted in this stand-in.

    # ---- conv layers 1..6: strided taps read from VMEM scratch --------------
    for li in range(1, 7):
        k, s = CONV_KERNELS[li], CONV_STRIDES[li]
        f = frames[li]
        src_ref = scr[li - 1]
        w_ref = w_refs[li - 1]
        acc = jnp.zeros((f, CONV_DIM), jnp.float32)
        for j in range(k):                              # k <= 3, static unroll
            x_j = src_ref[pl.ds(j, f, stride=s), :]     # (f, CONV_DIM)
            w_j = w_ref[pl.ds(j * CONV_DIM, CONV_DIM), :]
            acc = acc + jnp.dot(x_j.astype(jnp.bfloat16), w_j,
                                preferred_element_type=jnp.float32)
        h = jax.nn.gelu(acc, approximate=True)
        if li < 6:
            scr[li][...] = h

    # ---- feature-projection LayerNorm + folded (fp_w @ enc_w) linear --------
    # NOTE: fold is only valid for this stand-in (transformer layers omitted,
    # dropout == identity between the two linears).
    h = _ln(h, fpg_ref[...], fpb_ref[...])                          # (T', CONV_DIM)
    src = jnp.dot(h.astype(jnp.bfloat16), wf_ref[...],
                  preferred_element_type=jnp.float32) + bf_ref[...]  # (T', J)

    # ---- Joiner: broadcast add + ReLU + ONE (T'*Up, J) @ (J, 128) matmul ----
    tgt = pred_ref[0][:, :JOINER_DIM]                                # (Up, J) f32
    joint = jnp.maximum(src[:, None, :] + tgt[None, :, :], 0.0)     # (T', Up, J)
    joint = joint.reshape(frames[6] * u_pad, JOINER_DIM)            # aligned (Up=8)
    logits = jnp.dot(joint.astype(jnp.bfloat16), wj_ref[...],
                     preferred_element_type=jnp.float32) + bj_ref[...]
    o_ref[0] = logits.astype(o_ref.dtype)                           # lane-dense store


def _predictor_kernel(x_ref, ing_ref, inb_ref,
                      wih0_ref, whh0_ref, b0_ref,
                      wih1_ref, whh1_ref, b1_ref,
                      pw_ref, pb_ref, og_ref, ob_ref, pad_ref,
                      o_ref, *, u_len, b_pad, hidden):
    """Fused predictor: input LN + 2 LSTM layers (fused gates) + linear + LN."""
    H = hidden
    x = x_ref[...].astype(jnp.float32)                   # (U*Bp, E) time-major
    ln_x = _ln(x, ing_ref[...], inb_ref[...])

    # gates stored in (i, f, o, g) column order: lanes < 3H -> sigmoid, last H
    # lanes -> tanh; two full-vreg EUP pushes + one select per step.
    sig_mask = jax.lax.broadcasted_iota(jnp.int32, (b_pad, 4 * H), 1) < 3 * H

    def run_layer(inp_rows, wih_ref, whh_ref, b_ref):
        # hoisted input projection: one (U*Bp, Din) @ (Din, 4H) matmul
        xw = jnp.dot(inp_rows.astype(jnp.bfloat16), wih_ref[...],
                     preferred_element_type=jnp.float32) + b_ref[...]
        whh = whh_ref[...]
        h = jnp.zeros((b_pad, H), jnp.float32)
        c = jnp.zeros((b_pad, H), jnp.float32)
        hs = []
        for t in range(u_len):                           # short, static unroll
            gates = xw[t * b_pad:(t + 1) * b_pad, :] + jnp.dot(
                h.astype(jnp.bfloat16), whh, preferred_element_type=jnp.float32)
            act = jnp.where(sig_mask, jax.nn.sigmoid(gates), jnp.tanh(gates))
            i_g = act[:, 0:H]
            f_g = act[:, H:2 * H]
            o_g = act[:, 2 * H:3 * H]
            g_g = act[:, 3 * H:4 * H]
            c = f_g * c + i_g * g_g
            h = o_g * jnp.tanh(c)
            hs.append(h)                                 # kept in vregs, no scratch
        return jnp.concatenate(hs, axis=0)               # (U*Bp, H), 8-row aligned

    y = run_layer(ln_x, wih0_ref, whh0_ref, b0_ref)
    y = run_layer(y, wih1_ref, whh1_ref, b1_ref)
    z = jnp.dot(y.astype(jnp.bfloat16), pw_ref[...],
                preferred_element_type=jnp.float32) + pb_ref[...]
    z = _ln(z, og_ref[...], ob_ref[...])                 # (U*Bp, J)
    # identity-pad matmul -> lane-dense 128-wide unmasked output store
    o_ref[...] = jnp.dot(z, pad_ref[...], preferred_element_type=jnp.float32)


# ----------------------------- cost estimates --------------------------------


def _encoder_joiner_cost(batch, frames, u_pad):
    flops = 2 * frames[0] * CONV_KERNELS[0] * CONV_DIM
    for li in range(1, 7):
        flops += 2 * frames[li] * CONV_KERNELS[li] * CONV_DIM * CONV_DIM
    flops += 2 * frames[6] * CONV_DIM * JOINER_DIM
    flops += 2 * frames[6] * u_pad * JOINER_DIM * VOCAB_PAD
    trans = sum(frames) * CONV_DIM
    w_bytes = 2 * (2 * CONV_KERNELS[0] * CONV_DIM
                   + sum(CONV_KERNELS[li] * CONV_DIM * CONV_DIM for li in range(1, 7))
                   + CONV_DIM * JOINER_DIM + JOINER_DIM * VOCAB_PAD)
    io_bytes = (2 * frames[0] * 2 * CONV_STRIDES[0]
                + 4 * u_pad * VOCAB_PAD
                + 4 * frames[6] * u_pad * VOCAB_PAD)
    return pl.CostEstimate(flops=batch * flops, transcendentals=batch * trans,
                           bytes_accessed=batch * io_bytes + w_bytes)


def _predictor_cost(u_len, b_pad):
    rows = u_len * b_pad
    flops = 2 * rows * EMB_DIM * 4 * LSTM_HIDDEN
    flops += 2 * rows * LSTM_HIDDEN * 4 * LSTM_HIDDEN
    flops += 2 * NUM_LSTM_LAYERS * rows * LSTM_HIDDEN * 4 * LSTM_HIDDEN
    flops += 2 * rows * LSTM_HIDDEN * JOINER_DIM
    flops += 2 * rows * JOINER_DIM * VOCAB_PAD
    trans = 3 * NUM_LSTM_LAYERS * rows * 4 * LSTM_HIDDEN
    bytes_acc = 4 * rows * (EMB_DIM + VOCAB_PAD) + 4 * 8192
    return pl.CostEstimate(flops=flops, transcendentals=trans,
                           bytes_accessed=bytes_acc)


# ----------------------------- wrappers --------------------------------------


def fused_encoder_joiner(x0_cat, pred_pad, p, frames, u_pad):
    """ONE pallas_call: conv stack + fp LayerNorm + folded linear + joiner."""
    batch = x0_cat.shape[0]
    t_enc = frames[6]
    conv_w = p["conv_w"]

    in_specs = [pl.BlockSpec((1,) + x0_cat.shape[1:], lambda b: (b, 0, 0))]
    for w in conv_w:
        in_specs.append(pl.BlockSpec(w.shape, lambda b: (0, 0)))
    for a in (p["fp_ln_g"], p["fp_ln_b"], p["w_fold"], p["b_fold"]):
        in_specs.append(pl.BlockSpec(a.shape, lambda b: (0, 0)))
    in_specs.append(pl.BlockSpec((1, u_pad, VOCAB_PAD), lambda b: (b, 0, 0)))
    for a in (p["join_w"], p["join_b"]):
        in_specs.append(pl.BlockSpec(a.shape, lambda b: (0, 0)))

    kern = functools.partial(_encoder_joiner_kernel, frames=frames, u_pad=u_pad)
    # TODO(synk): at real HuBERT sizes (conv_dim=512, seconds of audio) the conv
    # stack needs a frames-tiled grid axis with a (k-1) halo so blocks fit
    # v7x's 64 MiB VMEM; at these stand-in sizes whole-time blocks are < 100 KB.
    return pl.pallas_call(
        kern,
        out_shape=jax.ShapeDtypeStruct((batch, t_enc * u_pad, VOCAB_PAD),
                                       jnp.float32),
        grid=(batch,),
        in_specs=in_specs,
        out_specs=pl.BlockSpec((1, t_enc * u_pad, VOCAB_PAD), lambda b: (b, 0, 0)),
        scratch_shapes=[pltpu.VMEM((frames[l], CONV_DIM), jnp.float32)
                        for l in range(6)],
        compiler_params=pltpu.CompilerParams(
            dimension_semantics=("parallel",),       # v7x: batches on both TCs
            vmem_limit_bytes=32 * 1024 * 1024),
        cost_estimate=_encoder_joiner_cost(batch, frames, u_pad),
    )(x0_cat, *conv_w, p["fp_ln_g"], p["fp_ln_b"], p["w_fold"], p["b_fold"],
      pred_pad, p["join_w"], p["join_b"])


def pallas_predictor(emb_flat, p, u_len, b_pad):
    rows = u_len * b_pad
    args = [
        emb_flat,
        p["in_ln_g"], p["in_ln_b"],
        p["lstm_w_ih"][0], p["lstm_w_hh"][0], p["lstm_b"][0],
        p["lstm_w_ih"][1], p["lstm_w_hh"][1], p["lstm_b"][1],
        p["pred_w"], p["pred_b"], p["out_ln_g"], p["out_ln_b"], p["eye_pad"],
    ]
    kern = functools.partial(_predictor_kernel, u_len=u_len, b_pad=b_pad,
                             hidden=LSTM_HIDDEN)
    return pl.pallas_call(
        kern,
        out_shape=jax.ShapeDtypeStruct((rows, VOCAB_PAD), jnp.float32),
        grid=(1,),
        in_specs=[pl.BlockSpec(a.shape, lambda i: (0, 0)) for a in args],
        out_specs=pl.BlockSpec((rows, VOCAB_PAD), lambda i: (0, 0)),
        compiler_params=pltpu.CompilerParams(
            dimension_semantics=("arbitrary",),
            vmem_limit_bytes=32 * 1024 * 1024),
        cost_estimate=_predictor_cost(u_len, b_pad),
    )(*args)


# ----------------------------- params ----------------------------------------


def init_params(key):
    """Raw parameters in PyTorch layouts (Conv1d / LSTM / Linear conventions)."""
    def nrm(k, shape, scale=0.02):
        return scale * jax.random.normal(k, shape, jnp.float32)

    keys = iter(jax.random.split(key, 64))
    p = {}
    conv = []
    in_ch = 1
    for kern in CONV_KERNELS:
        conv.append(nrm(next(keys), (CONV_DIM, in_ch, kern)))   # bias-free like HuBERT
        in_ch = CONV_DIM
    p["conv"] = conv
    p["fp_ln_g"] = jnp.ones((CONV_DIM,), jnp.float32)
    p["fp_ln_b"] = jnp.zeros((CONV_DIM,), jnp.float32)
    p["fp_w"] = nrm(next(keys), (HIDDEN, CONV_DIM))             # torch Linear (out, in)
    p["fp_b"] = jnp.zeros((HIDDEN,), jnp.float32)
    # TODO(synk): the 12 pretrained HuBERT transformer encoder layers (and the
    # positional conv) are not reproduced; the stand-in stops at feature proj.
    p["enc_w"] = nrm(next(keys), (JOINER_DIM, HIDDEN))
    p["enc_b"] = jnp.zeros((JOINER_DIM,), jnp.float32)

    p["embedding"] = nrm(next(keys), (VOCAB, EMB_DIM), scale=1.0)
    p["in_ln_g"] = jnp.ones((EMB_DIM,), jnp.float32)
    p["in_ln_b"] = jnp.zeros((EMB_DIM,), jnp.float32)
    lstm = []
    din = EMB_DIM
    for _ in range(NUM_LSTM_LAYERS):
        w_ih = nrm(next(keys), (4 * LSTM_HIDDEN, din))          # PyTorch (4H, Din), i,f,g,o
        w_hh = nrm(next(keys), (4 * LSTM_HIDDEN, LSTM_HIDDEN))
        b_ih = nrm(next(keys), (4 * LSTM_HIDDEN,))
        b_hh = nrm(next(keys), (4 * LSTM_HIDDEN,))
        lstm.append((w_ih, w_hh, b_ih, b_hh))
        din = LSTM_HIDDEN
    p["lstm"] = lstm
    p["pred_w"] = nrm(next(keys), (JOINER_DIM, LSTM_HIDDEN))
    p["pred_b"] = jnp.zeros((JOINER_DIM,), jnp.float32)
    p["out_ln_g"] = jnp.ones((JOINER_DIM,), jnp.float32)
    p["out_ln_b"] = jnp.zeros((JOINER_DIM,), jnp.float32)

    p["join_w"] = nrm(next(keys), (VOCAB, JOINER_DIM))
    p["join_b"] = jnp.zeros((VOCAB,), jnp.float32)
    return p


def _reorder_gates(w):
    """PyTorch LSTM gate order (i, f, g, o) -> fused-kernel order (i, f, o, g)."""
    H = LSTM_HIDDEN
    return jnp.concatenate([w[:H], w[H:2 * H], w[3 * H:4 * H], w[2 * H:3 * H]],
                           axis=0)


def prepare_params(p):
    """One-time weight prep (fold / pack / pad / bf16) hoisted out of forward."""
    q = {}
    conv_w = []
    for w in p["conv"]:
        cout, cin, k = w.shape
        packed = jnp.transpose(w, (2, 1, 0)).reshape(k * cin, cout)  # tap-major rows
        conv_w.append(packed.astype(jnp.bfloat16))
    # layer 0 is consumed as taps0 polyphase slices of stride samples each;
    # pad its packed rows to taps0*stride (no-op when k0 == taps0*stride).
    k0, s0 = CONV_KERNELS[0], CONV_STRIDES[0]
    taps0 = -(-k0 // s0)
    if taps0 * s0 > k0:
        conv_w[0] = jnp.pad(conv_w[0], ((0, taps0 * s0 - k0), (0, 0)))
    q["conv_w"] = conv_w

    q["fp_ln_g"] = p["fp_ln_g"].reshape(1, CONV_DIM)
    q["fp_ln_b"] = p["fp_ln_b"].reshape(1, CONV_DIM)
    fp_w = p["fp_w"].T                                   # (CONV_DIM, HIDDEN)
    enc_w = p["enc_w"].T                                 # (HIDDEN, JOINER_DIM)
    q["w_fold"] = (fp_w @ enc_w).astype(jnp.bfloat16)
    q["b_fold"] = (p["fp_b"] @ enc_w + p["enc_b"]).reshape(1, JOINER_DIM)

    join_w = jnp.zeros((JOINER_DIM, VOCAB_PAD), jnp.float32)
    join_w = join_w.at[:, :VOCAB].set(p["join_w"].T)
    join_b = jnp.zeros((1, VOCAB_PAD), jnp.float32).at[:, :VOCAB].set(p["join_b"])
    q["join_w"] = join_w.astype(jnp.bfloat16)
    q["join_b"] = join_b

    q["embedding"] = p["embedding"]
    q["in_ln_g"] = p["in_ln_g"].reshape(1, EMB_DIM)
    q["in_ln_b"] = p["in_ln_b"].reshape(1, EMB_DIM)
    w_ih_l, w_hh_l, b_l = [], [], []
    for (w_ih, w_hh, b_ih, b_hh) in p["lstm"]:
        w_ih_l.append(_reorder_gates(w_ih).T.astype(jnp.bfloat16))   # (Din, 4H)
        w_hh_l.append(_reorder_gates(w_hh).T.astype(jnp.bfloat16))   # (H, 4H)
        b_l.append(_reorder_gates(b_ih + b_hh).reshape(1, 4 * LSTM_HIDDEN))
    q["lstm_w_ih"], q["lstm_w_hh"], q["lstm_b"] = w_ih_l, w_hh_l, b_l
    q["pred_w"] = p["pred_w"].T.astype(jnp.bfloat16)                 # (H, J)
    q["pred_b"] = p["pred_b"].reshape(1, JOINER_DIM)
    q["out_ln_g"] = p["out_ln_g"].reshape(1, JOINER_DIM)
    q["out_ln_b"] = p["out_ln_b"].reshape(1, JOINER_DIM)
    q["eye_pad"] = jnp.eye(JOINER_DIM, VOCAB_PAD, dtype=jnp.float32)  # lane-pad matmul
    return q


# ----------------------------- forward ----------------------------------------


def model_forward(params, raw_audio, raw_audio_len, labels, labels_len):
    """raw_audio: (B, T, 1); labels: (B, U)  ->  (logits (B, T', U, V), src_len (B,))"""
    # TODO(synk): no length masking — like the reference, padded audio / label
    # positions beyond raw_audio_len / labels_len produce (unused) logits.
    B, T = raw_audio.shape[0], raw_audio.shape[1]
    U = labels.shape[1]
    frames = _conv_frames(T)
    t_enc = frames[6]
    u_pad = _pad_to(max(U, 1), SUB)
    b_pad = _pad_to(B, SUB)

    # ---- layer-0 polyphase packing: pure zero-pad + reshape (no XLA gather) ----
    k0, s0 = CONV_KERNELS[0], CONV_STRIDES[0]
    taps0 = -(-k0 // s0)
    g0 = frames[0] + taps0 - 1
    audio = raw_audio[..., 0].astype(jnp.float32)        # (B, T)
    need = g0 * s0
    if need > T:
        audio = jnp.pad(audio, ((0, 0), (0, need - T)))
    else:
        audio = audio[:, :need]
    xr = audio.reshape(B, g0, s0)
    x0_cat = jnp.concatenate([xr[:, q:q + frames[0], :] for q in range(taps0)],
                             axis=-1).astype(jnp.bfloat16)   # (B, F0, taps0*s0)

    encoder_out_lengths = feat_extract_output_lengths(raw_audio_len)

    # ---- Predictor: embedding gather in XLA, everything else in ONE kernel ----
    labels_tb = jnp.transpose(labels, (1, 0))            # (U, B) time-major
    labels_tb = jnp.pad(labels_tb, ((0, 0), (0, b_pad - B)))   # pad batch to 8 rows
    emb_flat = params["embedding"][labels_tb].reshape(U * b_pad, EMB_DIM)
    pred_flat = pallas_predictor(emb_flat, params, U, b_pad)   # (U*Bp, 128)

    # rearrange to (B, Up, 128) for the fused joiner (tiny XLA ops)
    pred = jnp.transpose(pred_flat.reshape(U, b_pad, VOCAB_PAD), (1, 0, 2))[:B]
    pred = jnp.pad(pred, ((0, 0), (0, u_pad - U), (0, 0)))     # (B, Up, 128)

    # ---- fused conv stack + fp LayerNorm + folded linear + Joiner (1 call) ----
    logits_pad = fused_encoder_joiner(x0_cat, pred, params, frames, u_pad)
    logits = logits_pad.reshape(B, t_enc, u_pad, VOCAB_PAD)[:, :, :U, :VOCAB]
    return logits, encoder_out_lengths


# --------------------------------- main --------------------------------------

if __name__ == "__main__":
    key = jax.random.PRNGKey(0)
    k_param, k_audio, k_labels = jax.random.split(key, 3)

    raw_params = init_params(k_param)
    params = prepare_params(raw_params)    # one-time fold / pack / pad / bf16

    B, T_AUDIO, U = 2, 2000, 5
    raw_audio = jax.random.normal(k_audio, (B, T_AUDIO, 1), jnp.float32)
    raw_audio_len = jnp.array([2000, 1600], dtype=jnp.int32)
    labels = jax.random.randint(k_labels, (B, U), 0, VOCAB, dtype=jnp.int32)
    labels_len = jnp.array([5, 3], dtype=jnp.int32)

    fwd = jax.jit(model_forward)
    logits, src_len = fwd(params, raw_audio, raw_audio_len, labels, labels_len)
    jax.block_until_ready((logits, src_len))

    t_enc = _conv_frames(T_AUDIO)[6]
    assert logits.shape == (B, t_enc, U, VOCAB), logits.shape
    assert src_len.shape == (B,), src_len.shape
    print("KERNEL_OK")
</pallas_src>

<mosaic_0001>
module attributes {stable_mosaic.version = 11 : i64} {
  func.func @_predictor_kernel(%arg0: i32, %arg1: memref<40x32xf32, #tpu.memory_space<vmem>>, %arg2: memref<1x32xf32, #tpu.memory_space<vmem>>, %arg3: memref<1x32xf32, #tpu.memory_space<vmem>>, %arg4: memref<32x128xbf16, #tpu.memory_space<vmem>>, %arg5: memref<32x128xbf16, #tpu.memory_space<vmem>>, %arg6: memref<1x128xf32, #tpu.memory_space<vmem>>, %arg7: memref<32x128xbf16, #tpu.memory_space<vmem>>, %arg8: memref<32x128xbf16, #tpu.memory_space<vmem>>, %arg9: memref<1x128xf32, #tpu.memory_space<vmem>>, %arg10: memref<32x32xbf16, #tpu.memory_space<vmem>>, %arg11: memref<1x32xf32, #tpu.memory_space<vmem>>, %arg12: memref<1x32xf32, #tpu.memory_space<vmem>>, %arg13: memref<1x32xf32, #tpu.memory_space<vmem>>, %arg14: memref<32x128xf32, #tpu.memory_space<vmem>>, %arg15: memref<40x128xf32, #tpu.memory_space<vmem>>) attributes {dimension_semantics = [#tpu.dimension_semantics<arbitrary>], iteration_bounds = array<i64: 1>, scalar_prefetch = 0 : i64, scratch_operands = 0 : i64, tpu.core_type = #tpu.core_type<tc>, window_params = [{pipeline_mode = #tpu.pipeline_mode<synchronous>, transform_indices = @transform_0, window_bounds = array<i64: 40, 32>}, {pipeline_mode = #tpu.pipeline_mode<synchronous>, transform_indices = @transform_1, window_bounds = array<i64: 1, 32>}, {pipeline_mode = #tpu.pipeline_mode<synchronous>, transform_indices = @transform_2, window_bounds = array<i64: 1, 32>}, {pipeline_mode = #tpu.pipeline_mode<synchronous>, transform_indices = @transform_3, window_bounds = array<i64: 32, 128>}, {pipeline_mode = #tpu.pipeline_mode<synchronous>, transform_indices = @transform_4, window_bounds = array<i64: 32, 128>}, {pipeline_mode = #tpu.pipeline_mode<synchronous>, transform_indices = @transform_5, window_bounds = array<i64: 1, 128>}, {pipeline_mode = #tpu.pipeline_mode<synchronous>, transform_indices = @transform_6, window_bounds = array<i64: 32, 128>}, {pipeline_mode = #tpu.pipeline_mode<synchronous>, transform_indices = @transform_7, window_bounds = array<i64: 32, 128>}, {pipeline_mode = #tpu.pipeline_mode<synchronous>, transform_indices = @transform_8, window_bounds = array<i64: 1, 128>}, {pipeline_mode = #tpu.pipeline_mode<synchronous>, transform_indices = @transform_9, window_bounds = array<i64: 32, 32>}, {pipeline_mode = #tpu.pipeline_mode<synchronous>, transform_indices = @transform_10, window_bounds = array<i64: 1, 32>}, {pipeline_mode = #tpu.pipeline_mode<synchronous>, transform_indices = @transform_11, window_bounds = array<i64: 1, 32>}, {pipeline_mode = #tpu.pipeline_mode<synchronous>, transform_indices = @transform_12, window_bounds = array<i64: 1, 32>}, {pipeline_mode = #tpu.pipeline_mode<synchronous>, transform_indices = @transform_13, window_bounds = array<i64: 32, 128>}, {pipeline_mode = #tpu.pipeline_mode<synchronous>, transform_indices = @transform_14, window_bounds = array<i64: 40, 128>}]} {
    %c0 = arith.constant 0 : index
    %c0_0 = arith.constant 0 : index
    %0 = vector.load %arg1[%c0, %c0_0] : memref<40x32xf32, #tpu.memory_space<vmem>>, vector<40x32xf32>
    %c0_1 = arith.constant 0 : index
    %c0_2 = arith.constant 0 : index
    %1 = vector.load %arg2[%c0_1, %c0_2] : memref<1x32xf32, #tpu.memory_space<vmem>>, vector<1x32xf32>
    %c0_3 = arith.constant 0 : index
    %c0_4 = arith.constant 0 : index
    %2 = vector.load %arg3[%c0_3, %c0_4] : memref<1x32xf32, #tpu.memory_space<vmem>>, vector<1x32xf32>
    %cst = arith.constant dense<0.000000e+00> : vector<40xf32>
    %3 = vector.multi_reduction <add>, %0, %cst [1] : vector<40x32xf32> to vector<40xf32>
    %4 = vector.shape_cast %3 : vector<40xf32> to vector<40x1xf32>
    %cst_5 = arith.constant 3.200000e+01 : f32
    %5 = vector.broadcast %cst_5 : f32 to vector<40x1xf32>
    %6 = arith.divf %4, %5 : vector<40x1xf32>
    %7 = vector.broadcast %6 : vector<40x1xf32> to vector<40x32xf32>
    %8 = arith.subf %0, %7 : vector<40x32xf32>
    %9 = arith.mulf %8, %8 : vector<40x32xf32>
    %cst_6 = arith.constant dense<0.000000e+00> : vector<40xf32>
    %10 = vector.multi_reduction <add>, %9, %cst_6 [1] : vector<40x32xf32> to vector<40xf32>
    %11 = vector.shape_cast %10 : vector<40xf32> to vector<40x1xf32>
    %cst_7 = arith.constant 3.200000e+01 : f32
    %12 = vector.broadcast %cst_7 : f32 to vector<40x1xf32>
    %13 = arith.divf %11, %12 : vector<40x1xf32>
    %cst_8 = arith.constant 9.99999974E-6 : f32
    %14 = vector.broadcast %cst_8 : f32 to vector<40x1xf32>
    %15 = arith.addf %13, %14 : vector<40x1xf32>
    %16 = math.rsqrt %15 : vector<40x1xf32>
    %17 = vector.broadcast %16 : vector<40x1xf32> to vector<40x32xf32>
    %18 = arith.mulf %8, %17 : vector<40x32xf32>
    %19 = vector.broadcast %1 : vector<1x32xf32> to vector<40x32xf32>
    %20 = arith.mulf %18, %19 : vector<40x32xf32>
    %21 = vector.broadcast %2 : vector<1x32xf32> to vector<40x32xf32>
    %22 = arith.addf %20, %21 : vector<40x32xf32>
    %23 = tpu.iota {dimensions = array<i32: 1>} : vector<8x128xi32>
    %c96_i32 = arith.constant 96 : i32
    %24 = vector.broadcast %c96_i32 : i32 to vector<8x128xi32>
    %25 = arith.cmpi slt, %23, %24 : vector<8x128xi32>
    %26 = arith.truncf %22 : vector<40x32xf32> to vector<40x32xbf16>
    %c0_9 = arith.constant 0 : index
    %c0_10 = arith.constant 0 : index
    %27 = vector.load %arg4[%c0_9, %c0_10] : memref<32x128xbf16, #tpu.memory_space<vmem>>, vector<32x128xbf16>
    %cst_11 = arith.constant dense<0.000000e+00> : vector<40x128xf32>
    %28 = tpu.matmul %26, %27, %cst_11 {dimension_numbers = #tpu.dot_dimension_numbers<[1], [0], [0], [1], [0, 0, 1, 1], [], []>} : vector<40x32xbf16>, vector<32x128xbf16>, vector<40x128xf32> -> vector<40x128xf32>
    %c0_12 = arith.constant 0 : index
    %c0_13 = arith.constant 0 : index
    %29 = vector.load %arg6[%c0_12, %c0_13] : memref<1x128xf32, #tpu.memory_space<vmem>>, vector<1x128xf32>
    %30 = vector.broadcast %29 : vector<1x128xf32> to vector<40x128xf32>
    %31 = arith.addf %28, %30 : vector<40x128xf32>
    %c0_14 = arith.constant 0 : index
    %c0_15 = arith.constant 0 : index
    %32 = vector.load %arg5[%c0_14, %c0_15] : memref<32x128xbf16, #tpu.memory_space<vmem>>, vector<32x128xbf16>
    %cst_16 = arith.constant 0.000000e+00 : f32
    %33 = vector.broadcast %cst_16 : f32 to vector<8x32xf32>
    %cst_17 = arith.constant 0.000000e+00 : f32
    %34 = vector.broadcast %cst_17 : f32 to vector<8x32xf32>
    %35 = vector.extract_strided_slice %31 {offsets = [0, 0], sizes = [8, 128], strides = [1, 1]} : vector<40x128xf32> to vector<8x128xf32>
    %36 = arith.truncf %33 : vector<8x32xf32> to vector<8x32xbf16>
    %cst_18 = arith.constant dense<0.000000e+00> : vector<8x128xf32>
    %37 = tpu.matmul %36, %32, %cst_18 {dimension_numbers = #tpu.dot_dimension_numbers<[1], [0], [0], [1], [0, 0, 1, 1], [], []>} : vector<8x32xbf16>, vector<32x128xbf16>, vector<8x128xf32> -> vector<8x128xf32>
    %38 = arith.addf %35, %37 : vector<8x128xf32>
    %39 = arith.negf %38 : vector<8x128xf32>
    %40 = math.exp %39 : vector<8x128xf32>
    %cst_19 = arith.constant 1.000000e+00 : f32
    %41 = vector.broadcast %cst_19 : f32 to vector<8x128xf32>
    %42 = arith.addf %41, %40 : vector<8x128xf32>
    %43 = arith.divf %41, %42 : vector<8x128xf32>
    %44 = math.tanh %38 : vector<8x128xf32>
    %45 = arith.select %25, %43, %44 : vector<8x128xi1>, vector<8x128xf32>
    %46 = vector.extract_strided_slice %45 {offsets = [0, 0], sizes = [8, 32], strides = [1, 1]} : vector<8x128xf32> to vector<8x32xf32>
    %47 = vector.extract_strided_slice %45 {offsets = [0, 32], sizes = [8, 32], strides = [1, 1]} : vector<8x128xf32> to vector<8x32xf32>
    %48 = vector.extract_strided_slice %45 {offsets = [0, 64], sizes = [8, 32], strides = [1, 1]} : vector<8x128xf32> to vector<8x32xf32>
    %49 = vector.extract_strided_slice %45 {offsets = [0, 96], sizes = [8, 32], strides = [1, 1]} : vector<8x128xf32> to vector<8x32xf32>
    %50 = arith.mulf %47, %34 : vector<8x32xf32>
    %51 = arith.mulf %46, %49 : vector<8x32xf32>
    %52 = arith.addf %50, %51 : vector<8x32xf32>
    %53 = math.tanh %52 : vector<8x32xf32>
    %54 = arith.mulf %48, %53 : vector<8x32xf32>
    %55 = vector.extract_strided_slice %31 {offsets = [8, 0], sizes = [8, 128], strides = [1, 1]} : vector<40x128xf32> to vector<8x128xf32>
    %56 = arith.truncf %54 : vector<8x32xf32> to vector<8x32xbf16>
    %cst_20 = arith.constant dense<0.000000e+00> : vector<8x128xf32>
    %57 = tpu.matmul %56, %32, %cst_20 {dimension_numbers = #tpu.dot_dimension_numbers<[1], [0], [0], [1], [0, 0, 1, 1], [], []>} : vector<8x32xbf16>, vector<32x128xbf16>, vector<8x128xf32> -> vector<8x128xf32>
    %58 = arith.addf %55, %57 : vector<8x128xf32>
    %59 = arith.negf %58 : vector<8x128xf32>
    %60 = math.exp %59 : vector<8x128xf32>
    %cst_21 = arith.constant 1.000000e+00 : f32
    %61 = vector.broadcast %cst_21 : f32 to vector<8x128xf32>
    %62 = arith.addf %61, %60 : vector<8x128xf32>
    %63 = arith.divf %61, %62 : vector<8x128xf32>
    %64 = math.tanh %58 : vector<8x128xf32>
    %65 = arith.select %25, %63, %64 : vector<8x128xi1>, vector<8x128xf32>
    %66 = vector.extract_strided_slice %65 {offsets = [0, 0], sizes = [8, 32], strides = [1, 1]} : vector<8x128xf32> to vector<8x32xf32>
    %67 = vector.extract_strided_slice %65 {offsets = [0, 32], sizes = [8, 32], strides = [1, 1]} : vector<8x128xf32> to vector<8x32xf32>
    %68 = vector.extract_strided_slice %65 {offsets = [0, 64], sizes = [8, 32], strides = [1, 1]} : vector<8x128xf32> to vector<8x32xf32>
    %69 = vector.extract_strided_slice %65 {offsets = [0, 96], sizes = [8, 32], strides = [1, 1]} : vector<8x128xf32> to vector<8x32xf32>
    %70 = arith.mulf %67, %52 : vector<8x32xf32>
    %71 = arith.mulf %66, %69 : vector<8x32xf32>
    %72 = arith.addf %70, %71 : vector<8x32xf32>
    %73 = math.tanh %72 : vector<8x32xf32>
    %74 = arith.mulf %68, %73 : vector<8x32xf32>
    %75 = vector.extract_strided_slice %31 {offsets = [16, 0], sizes = [8, 128], strides = [1, 1]} : vector<40x128xf32> to vector<8x128xf32>
    %76 = arith.truncf %74 : vector<8x32xf32> to vector<8x32xbf16>
    %cst_22 = arith.constant dense<0.000000e+00> : vector<8x128xf32>
    %77 = tpu.matmul %76, %32, %cst_22 {dimension_numbers = #tpu.dot_dimension_numbers<[1], [0], [0], [1], [0, 0, 1, 1], [], []>} : vector<8x32xbf16>, vector<32x128xbf16>, vector<8x128xf32> -> vector<8x128xf32>
    %78 = arith.addf %75, %77 : vector<8x128xf32>
    %79 = arith.negf %78 : vector<8x128xf32>
    %80 = math.exp %79 : vector<8x128xf32>
    %cst_23 = arith.constant 1.000000e+00 : f32
    %81 = vector.broadcast %cst_23 : f32 to vector<8x128xf32>
    %82 = arith.addf %81, %80 : vector<8x128xf32>
    %83 = arith.divf %81, %82 : vector<8x128xf32>
    %84 = math.tanh %78 : vector<8x128xf32>
    %85 = arith.select %25, %83, %84 : vector<8x128xi1>, vector<8x128xf32>
    %86 = vector.extract_strided_slice %85 {offsets = [0, 0], sizes = [8, 32], strides = [1, 1]} : vector<8x128xf32> to vector<8x32xf32>
    %87 = vector.extract_strided_slice %85 {offsets = [0, 32], sizes = [8, 32], strides = [1, 1]} : vector<8x128xf32> to vector<8x32xf32>
    %88 = vector.extract_strided_slice %85 {offsets = [0, 64], sizes = [8, 32], strides = [1, 1]} : vector<8x128xf32> to vector<8x32xf32>
    %89 = vector.extract_strided_slice %85 {offsets = [0, 96], sizes = [8, 32], strides = [1, 1]} : vector<8x128xf32> to vector<8x32xf32>
    %90 = arith.mulf %87, %72 : vector<8x32xf32>
    %91 = arith.mulf %86, %89 : vector<8x32xf32>
    %92 = arith.addf %90, %91 : vector<8x32xf32>
    %93 = math.tanh %92 : vector<8x32xf32>
    %94 = arith.mulf %88, %93 : vector<8x32xf32>
    %95 = vector.extract_strided_slice %31 {offsets = [24, 0], sizes = [8, 128], strides = [1, 1]} : vector<40x128xf32> to vector<8x128xf32>
    %96 = arith.truncf %94 : vector<8x32xf32> to vector<8x32xbf16>
    %cst_24 = arith.constant dense<0.000000e+00> : vector<8x128xf32>
    %97 = tpu.matmul %96, %32, %cst_24 {dimension_numbers = #tpu.dot_dimension_numbers<[1], [0], [0], [1], [0, 0, 1, 1], [], []>} : vector<8x32xbf16>, vector<32x128xbf16>, vector<8x128xf32> -> vector<8x128xf32>
    %98 = arith.addf %95, %97 : vector<8x128xf32>
    %99 = arith.negf %98 : vector<8x128xf32>
    %100 = math.exp %99 : vector<8x128xf32>
    %cst_25 = arith.constant 1.000000e+00 : f32
    %101 = vector.broadcast %cst_25 : f32 to vector<8x128xf32>
    %102 = arith.addf %101, %100 : vector<8x128xf32>
    %103 = arith.divf %101, %102 : vector<8x128xf32>
    %104 = math.tanh %98 : vector<8x128xf32>
    %105 = arith.select %25, %103, %104 : vector<8x128xi1>, vector<8x128xf32>
    %106 = vector.extract_strided_slice %105 {offsets = [0, 0], sizes = [8, 32], strides = [1, 1]} : vector<8x128xf32> to vector<8x32xf32>
    %107 = vector.extract_strided_slice %105 {offsets = [0, 32], sizes = [8, 32], strides = [1, 1]} : vector<8x128xf32> to vector<8x32xf32>
    %108 = vector.extract_strided_slice %105 {offsets = [0, 64], sizes = [8, 32], strides = [1, 1]} : vector<8x128xf32> to vector<8x32xf32>
    %109 = vector.extract_strided_slice %105 {offsets = [0, 96], sizes = [8, 32], strides = [1, 1]} : vector<8x128xf32> to vector<8x32xf32>
    %110 = arith.mulf %107, %92 : vector<8x32xf32>
    %111 = arith.mulf %106, %109 : vector<8x32xf32>
    %112 = arith.addf %110, %111 : vector<8x32xf32>
    %113 = math.tanh %112 : vector<8x32xf32>
    %114 = arith.mulf %108, %113 : vector<8x32xf32>
    %115 = vector.extract_strided_slice %31 {offsets = [32, 0], sizes = [8, 128], strides = [1, 1]} : vector<40x128xf32> to vector<8x128xf32>
    %116 = arith.truncf %114 : vector<8x32xf32> to vector<8x32xbf16>
    %cst_26 = arith.constant dense<0.000000e+00> : vector<8x128xf32>
    %117 = tpu.matmul %116, %32, %cst_26 {dimension_numbers = #tpu.dot_dimension_numbers<[1], [0], [0], [1], [0, 0, 1, 1], [], []>} : vector<8x32xbf16>, vector<32x128xbf16>, vector<8x128xf32> -> vector<8x128xf32>
    %118 = arith.addf %115, %117 : vector<8x128xf32>
    %119 = arith.negf %118 : vector<8x128xf32>
    %120 = math.exp %119 : vector<8x128xf32>
    %cst_27 = arith.constant 1.000000e+00 : f32
    %121 = vector.broadcast %cst_27 : f32 to vector<8x128xf32>
    %122 = arith.addf %121, %120 : vector<8x128xf32>
    %123 = arith.divf %121, %122 : vector<8x128xf32>
    %124 = math.tanh %118 : vector<8x128xf32>
    %125 = arith.select %25, %123, %124 : vector<8x128xi1>, vector<8x128xf32>
    %126 = vector.extract_strided_slice %125 {offsets = [0, 0], sizes = [8, 32], strides = [1, 1]} : vector<8x128xf32> to vector<8x32xf32>
    %127 = vector.extract_strided_slice %125 {offsets = [0, 32], sizes = [8, 32], strides = [1, 1]} : vector<8x128xf32> to vector<8x32xf32>
    %128 = vector.extract_strided_slice %125 {offsets = [0, 64], sizes = [8, 32], strides = [1, 1]} : vector<8x128xf32> to vector<8x32xf32>
    %129 = vector.extract_strided_slice %125 {offsets = [0, 96], sizes = [8, 32], strides = [1, 1]} : vector<8x128xf32> to vector<8x32xf32>
    %130 = arith.mulf %127, %112 : vector<8x32xf32>
    %131 = arith.mulf %126, %129 : vector<8x32xf32>
    %132 = arith.addf %130, %131 : vector<8x32xf32>
    %133 = math.tanh %132 : vector<8x32xf32>
    %134 = arith.mulf %128, %133 : vector<8x32xf32>
    %135 = tpu.concatenate %54, %74, %94, %114, %134 in 0 : vector<8x32xf32>, vector<8x32xf32>, vector<8x32xf32>, vector<8x32xf32>, vector<8x32xf32> -> vector<40x32xf32>
    %136 = arith.truncf %135 : vector<40x32xf32> to vector<40x32xbf16>
    %c0_28 = arith.constant 0 : index
    %c0_29 = arith.constant 0 : index
    %137 = vector.load %arg7[%c0_28, %c0_29] : memref<32x128xbf16, #tpu.memory_space<vmem>>, vector<32x128xbf16>
    %cst_30 = arith.constant dense<0.000000e+00> : vector<40x128xf32>
    %138 = tpu.matmul %136, %137, %cst_30 {dimension_numbers = #tpu.dot_dimension_numbers<[1], [0], [0], [1], [0, 0, 1, 1], [], []>} : vector<40x32xbf16>, vector<32x128xbf16>, vector<40x128xf32> -> vector<40x128xf32>
    %c0_31 = arith.constant 0 : index
    %c0_32 = arith.constant 0 : index
    %139 = vector.load %arg9[%c0_31, %c0_32] : memref<1x128xf32, #tpu.memory_space<vmem>>, vector<1x128xf32>
    %140 = vector.broadcast %139 : vector<1x128xf32> to vector<40x128xf32>
    %141 = arith.addf %138, %140 : vector<40x128xf32>
    %c0_33 = arith.constant 0 : index
    %c0_34 = arith.constant 0 : index
    %142 = vector.load %arg8[%c0_33, %c0_34] : memref<32x128xbf16, #tpu.memory_space<vmem>>, vector<32x128xbf16>
    %cst_35 = arith.constant 0.000000e+00 : f32
    %143 = vector.broadcast %cst_35 : f32 to vector<8x32xf32>
    %cst_36 = arith.constant 0.000000e+00 : f32
    %144 = vector.broadcast %cst_36 : f32 to vector<8x32xf32>
    %145 = vector.extract_strided_slice %141 {offsets = [0, 0], sizes = [8, 128], strides = [1, 1]} : vector<40x128xf32> to vector<8x128xf32>
    %146 = arith.truncf %143 : vector<8x32xf32> to vector<8x32xbf16>
    %cst_37 = arith.constant dense<0.000000e+00> : vector<8x128xf32>
    %147 = tpu.matmul %146, %142, %cst_37 {dimension_numbers = #tpu.dot_dimension_numbers<[1], [0], [0], [1], [0, 0, 1, 1], [], []>} : vector<8x32xbf16>, vector<32x128xbf16>, vector<8x128xf32> -> vector<8x128xf32>
    %148 = arith.addf %145, %147 : vector<8x128xf32>
    %149 = arith.negf %148 : vector<8x128xf32>
    %150 = math.exp %149 : vector<8x128xf32>
    %cst_38 = arith.constant 1.000000e+00 : f32
    %151 = vector.broadcast %cst_38 : f32 to vector<8x128xf32>
    %152 = arith.addf %151, %150 : vector<8x128xf32>
    %153 = arith.divf %151, %152 : vector<8x128xf32>
    %154 = math.tanh %148 : vector<8x128xf32>
    %155 = arith.select %25, %153, %154 : vector<8x128xi1>, vector<8x128xf32>
    %156 = vector.extract_strided_slice %155 {offsets = [0, 0], sizes = [8, 32], strides = [1, 1]} : vector<8x128xf32> to vector<8x32xf32>
    %157 = vector.extract_strided_slice %155 {offsets = [0, 32], sizes = [8, 32], strides = [1, 1]} : vector<8x128xf32> to vector<8x32xf32>
    %158 = vector.extract_strided_slice %155 {offsets = [0, 64], sizes = [8, 32], strides = [1, 1]} : vector<8x128xf32> to vector<8x32xf32>
    %159 = vector.extract_strided_slice %155 {offsets = [0, 96], sizes = [8, 32], strides = [1, 1]} : vector<8x128xf32> to vector<8x32xf32>
    %160 = arith.mulf %157, %144 : vector<8x32xf32>
    %161 = arith.mulf %156, %159 : vector<8x32xf32>
    %162 = arith.addf %160, %161 : vector<8x32xf32>
    %163 = math.tanh %162 : vector<8x32xf32>
    %164 = arith.mulf %158, %163 : vector<8x32xf32>
    %165 = vector.extract_strided_slice %141 {offsets = [8, 0], sizes = [8, 128], strides = [1, 1]} : vector<40x128xf32> to vector<8x128xf32>
    %166 = arith.truncf %164 : vector<8x32xf32> to vector<8x32xbf16>
    %cst_39 = arith.constant dense<0.000000e+00> : vector<8x128xf32>
    %167 = tpu.matmul %166, %142, %cst_39 {dimension_numbers = #tpu.dot_dimension_numbers<[1], [0], [0], [1], [0, 0, 1, 1], [], []>} : vector<8x32xbf16>, vector<32x128xbf16>, vector<8x128xf32> -> vector<8x128xf32>
    %168 = arith.addf %165, %167 : vector<8x128xf32>
    %169 = arith.negf %168 : vector<8x128xf32>
    %170 = math.exp %169 : vector<8x128xf32>
    %cst_40 = arith.constant 1.000000e+00 : f32
    %171 = vector.broadcast %cst_40 : f32 to vector<8x128xf32>
    %172 = arith.addf %171, %170 : vector<8x128xf32>
    %173 = arith.divf %171, %172 : vector<8x128xf32>
    %174 = math.tanh %168 : vector<8x128xf32>
    %175 = arith.select %25, %173, %174 : vector<8x128xi1>, vector<8x128xf32>
    %176 = vector.extract_strided_slice %175 {offsets = [0, 0], sizes = [8, 32], strides = [1, 1]} : vector<8x128xf32> to vector<8x32xf32>
    %177 = vector.extract_strided_slice %175 {offsets = [0, 32], sizes = [8, 32], strides = [1, 1]} : vector<8x128xf32> to vector<8x32xf32>
    %178 = vector.extract_strided_slice %175 {offsets = [0, 64], sizes = [8, 32], strides = [1, 1]} : vector<8x128xf32> to vector<8x32xf32>
    %179 = vector.extract_strided_slice %175 {offsets = [0, 96], sizes = [8, 32], strides = [1, 1]} : vector<8x128xf32> to vector<8x32xf32>
    %180 = arith.mulf %177, %162 : vector<8x32xf32>
    %181 = arith.mulf %176, %179 : vector<8x32xf32>
    %182 = arith.addf %180, %181 : vector<8x32xf32>
    %183 = math.tanh %182 : vector<8x32xf32>
    %184 = arith.mulf %178, %183 : vector<8x32xf32>
    %185 = vector.extract_strided_slice %141 {offsets = [16, 0], sizes = [8, 128], strides = [1, 1]} : vector<40x128xf32> to vector<8x128xf32>
    %186 = arith.truncf %184 : vector<8x32xf32> to vector<8x32xbf16>
    %cst_41 = arith.constant dense<0.000000e+00> : vector<8x128xf32>
    %187 = tpu.matmul %186, %142, %cst_41 {dimension_numbers = #tpu.dot_dimension_numbers<[1], [0], [0], [1], [0, 0, 1, 1], [], []>} : vector<8x32xbf16>, vector<32x128xbf16>, vector<8x128xf32> -> vector<8x128xf32>
    %188 = arith.addf %185, %187 : vector<8x128xf32>
    %189 = arith.negf %188 : vector<8x128xf32>
    %190 = math.exp %189 : vector<8x128xf32>
    %cst_42 = arith.constant 1.000000e+00 : f32
    %191 = vector.broadcast %cst_42 : f32 to vector<8x128xf32>
    %192 = arith.addf %191, %190 : vector<8x128xf32>
    %193 = arith.divf %191, %192 : vector<8x128xf32>
    %194 = math.tanh %188 : vector<8x128xf32>
    %195 = arith.select %25, %193, %194 : vector<8x128xi1>, vector<8x128xf32>
    %196 = vector.extract_strided_slice %195 {offsets = [0, 0], sizes = [8, 32], strides = [1, 1]} : vector<8x128xf32> to vector<8x32xf32>
    %197 = vector.extract_strided_slice %195 {offsets = [0, 32], sizes = [8, 32], strides = [1, 1]} : vector<8x128xf32> to vector<8x32xf32>
    %198 = vector.extract_strided_slice %195 {offsets = [0, 64], sizes = [8, 32], strides = [1, 1]} : vector<8x128xf32> to vector<8x32xf32>
    %199 = vector.extract_strided_slice %195 {offsets = [0, 96], sizes = [8, 32], strides = [1, 1]} : vector<8x128xf32> to vector<8x32xf32>
    %200 = arith.mulf %197, %182 : vector<8x32xf32>
    %201 = arith.mulf %196, %199 : vector<8x32xf32>
    %202 = arith.addf %200, %201 : vector<8x32xf32>
    %203 = math.tanh %202 : vector<8x32xf32>
    %204 = arith.mulf %198, %203 : vector<8x32xf32>
    %205 = vector.extract_strided_slice %141 {offsets = [24, 0], sizes = [8, 128], strides = [1, 1]} : vector<40x128xf32> to vector<8x128xf32>
    %206 = arith.truncf %204 : vector<8x32xf32> to vector<8x32xbf16>
    %cst_43 = arith.constant dense<0.000000e+00> : vector<8x128xf32>
    %207 = tpu.matmul %206, %142, %cst_43 {dimension_numbers = #tpu.dot_dimension_numbers<[1], [0], [0], [1], [0, 0, 1, 1], [], []>} : vector<8x32xbf16>, vector<32x128xbf16>, vector<8x128xf32> -> vector<8x128xf32>
    %208 = arith.addf %205, %207 : vector<8x128xf32>
    %209 = arith.negf %208 : vector<8x128xf32>
    %210 = math.exp %209 : vector<8x128xf32>
    %cst_44 = arith.constant 1.000000e+00 : f32
    %211 = vector.broadcast %cst_44 : f32 to vector<8x128xf32>
    %212 = arith.addf %211, %210 : vector<8x128xf32>
    %213 = arith.divf %211, %212 : vector<8x128xf32>
    %214 = math.tanh %208 : vector<8x128xf32>
    %215 = arith.select %25, %213, %214 : vector<8x128xi1>, vector<8x128xf32>
    %216 = vector.extract_strided_slice %215 {offsets = [0, 0], sizes = [8, 32], strides = [1, 1]} : vector<8x128xf32> to vector<8x32xf32>
    %217 = vector.extract_strided_slice %215 {offsets = [0, 32], sizes = [8, 32], strides = [1, 1]} : vector<8x128xf32> to vector<8x32xf32>
    %218 = vector.extract_strided_slice %215 {offsets = [0, 64], sizes = [8, 32], strides = [1, 1]} : vector<8x128xf32> to vector<8x32xf32>
    %219 = vector.extract_strided_slice %215 {offsets = [0, 96], sizes = [8, 32], strides = [1, 1]} : vector<8x128xf32> to vector<8x32xf32>
    %220 = arith.mulf %217, %202 : vector<8x32xf32>
    %221 = arith.mulf %216, %219 : vector<8x32xf32>
    %222 = arith.addf %220, %221 : vector<8x32xf32>
    %223 = math.tanh %222 : vector<8x32xf32>
    %224 = arith.mulf %218, %223 : vector<8x32xf32>
    %225 = vector.extract_strided_slice %141 {offsets = [32, 0], sizes = [8, 128], strides = [1, 1]} : vector<40x128xf32> to vector<8x128xf32>
    %226 = arith.truncf %224 : vector<8x32xf32> to vector<8x32xbf16>
    %cst_45 = arith.constant dense<0.000000e+00> : vector<8x128xf32>
    %227 = tpu.matmul %226, %142, %cst_45 {dimension_numbers = #tpu.dot_dimension_numbers<[1], [0], [0], [1], [0, 0, 1, 1], [], []>} : vector<8x32xbf16>, vector<32x128xbf16>, vector<8x128xf32> -> vector<8x128xf32>
    %228 = arith.addf %225, %227 : vector<8x128xf32>
    %229 = arith.negf %228 : vector<8x128xf32>
    %230 = math.exp %229 : vector<8x128xf32>
    %cst_46 = arith.constant 1.000000e+00 : f32
    %231 = vector.broadcast %cst_46 : f32 to vector<8x128xf32>
    %232 = arith.addf %231, %230 : vector<8x128xf32>
    %233 = arith.divf %231, %232 : vector<8x128xf32>
    %234 = math.tanh %228 : vector<8x128xf32>
    %235 = arith.select %25, %233, %234 : vector<8x128xi1>, vector<8x128xf32>
    %236 = vector.extract_strided_slice %235 {offsets = [0, 0], sizes = [8, 32], strides = [1, 1]} : vector<8x128xf32> to vector<8x32xf32>
    %237 = vector.extract_strided_slice %235 {offsets = [0, 32], sizes = [8, 32], strides = [1, 1]} : vector<8x128xf32> to vector<8x32xf32>
    %238 = vector.extract_strided_slice %235 {offsets = [0, 64], sizes = [8, 32], strides = [1, 1]} : vector<8x128xf32> to vector<8x32xf32>
    %239 = vector.extract_strided_slice %235 {offsets = [0, 96], sizes = [8, 32], strides = [1, 1]} : vector<8x128xf32> to vector<8x32xf32>
    %240 = arith.mulf %237, %222 : vector<8x32xf32>
    %241 = arith.mulf %236, %239 : vector<8x32xf32>
    %242 = arith.addf %240, %241 : vector<8x32xf32>
    %243 = math.tanh %242 : vector<8x32xf32>
    %244 = arith.mulf %238, %243 : vector<8x32xf32>
    %245 = tpu.concatenate %164, %184, %204, %224, %244 in 0 : vector<8x32xf32>, vector<8x32xf32>, vector<8x32xf32>, vector<8x32xf32>, vector<8x32xf32> -> vector<40x32xf32>
    %246 = arith.truncf %245 : vector<40x32xf32> to vector<40x32xbf16>
    %c0_47 = arith.constant 0 : index
    %c0_48 = arith.constant 0 : index
    %247 = vector.load %arg10[%c0_47, %c0_48] : memref<32x32xbf16, #tpu.memory_space<vmem>>, vector<32x32xbf16>
    %cst_49 = arith.constant dense<0.000000e+00> : vector<40x32xf32>
    %248 = tpu.matmul %246, %247, %cst_49 {dimension_numbers = #tpu.dot_dimension_numbers<[1], [0], [0], [1], [0, 0, 1, 1], [], []>} : vector<40x32xbf16>, vector<32x32xbf16>, vector<40x32xf32> -> vector<40x32xf32>
    %c0_50 = arith.constant 0 : index
    %c0_51 = arith.constant 0 : index
    %249 = vector.load %arg11[%c0_50, %c0_51] : memref<1x32xf32, #tpu.memory_space<vmem>>, vector<1x32xf32>
    %250 = vector.broadcast %249 : vector<1x32xf32> to vector<40x32xf32>
    %251 = arith.addf %248, %250 : vector<40x32xf32>
    %c0_52 = arith.constant 0 : index
    %c0_53 = arith.constant 0 : index
    %252 = vector.load %arg12[%c0_52, %c0_53] : memref<1x32xf32, #tpu.memory_space<vmem>>, vector<1x32xf32>
    %c0_54 = arith.constant 0 : index
    %c0_55 = arith.constant 0 : index
    %253 = vector.load %arg13[%c0_54, %c0_55] : memref<1x32xf32, #tpu.memory_space<vmem>>, vector<1x32xf32>
    %cst_56 = arith.constant dense<0.000000e+00> : vector<40xf32>
    %254 = vector.multi_reduction <add>, %251, %cst_56 [1] : vector<40x32xf32> to vector<40xf32>
    %255 = vector.shape_cast %254 : vector<40xf32> to vector<40x1xf32>
    %cst_57 = arith.constant 3.200000e+01 : f32
    %256 = vector.broadcast %cst_57 : f32 to vector<40x1xf32>
    %257 = arith.divf %255, %256 : vector<40x1xf32>
    %258 = vector.broadcast %257 : vector<40x1xf32> to vector<40x32xf32>
    %259 = arith.subf %251, %258 : vector<40x32xf32>
    %260 = arith.mulf %259, %259 : vector<40x32xf32>
    %cst_58 = arith.constant dense<0.000000e+00> : vector<40xf32>
    %261 = vector.multi_reduction <add>, %260, %cst_58 [1] : vector<40x32xf32> to vector<40xf32>
    %262 = vector.shape_cast %261 : vector<40xf32> to vector<40x1xf32>
    %cst_59 = arith.constant 3.200000e+01 : f32
    %263 = vector.broadcast %cst_59 : f32 to vector<40x1xf32>
    %264 = arith.divf %262, %263 : vector<40x1xf32>
    %cst_60 = arith.constant 9.99999974E-6 : f32
    %265 = vector.broadcast %cst_60 : f32 to vector<40x1xf32>
    %266 = arith.addf %264, %265 : vector<40x1xf32>
    %267 = math.rsqrt %266 : vector<40x1xf32>
    %268 = vector.broadcast %267 : vector<40x1xf32> to vector<40x32xf32>
    %269 = arith.mulf %259, %268 : vector<40x32xf32>
    %270 = vector.broadcast %252 : vector<1x32xf32> to vector<40x32xf32>
    %271 = arith.mulf %269, %270 : vector<40x32xf32>
    %272 = vector.broadcast %253 : vector<1x32xf32> to vector<40x32xf32>
    %273 = arith.addf %271, %272 : vector<40x32xf32>
    %c0_61 = arith.constant 0 : index
    %c0_62 = arith.constant 0 : index
    %274 = vector.load %arg14[%c0_61, %c0_62] : memref<32x128xf32, #tpu.memory_space<vmem>>, vector<32x128xf32>
    %cst_63 = arith.constant dense<0.000000e+00> : vector<40x128xf32>
    %275 = tpu.matmul %273, %274, %cst_63 {dimension_numbers = #tpu.dot_dimension_numbers<[1], [0], [0], [1], [0, 0, 1, 1], [], []>} : vector<40x32xf32>, vector<32x128xf32>, vector<40x128xf32> -> vector<40x128xf32>
    %c0_64 = arith.constant 0 : index
    %c0_65 = arith.constant 0 : index
    %276 = vector.load %arg15[%c0_64, %c0_65] : memref<40x128xf32, #tpu.memory_space<vmem>>, vector<40x128xf32>
    tpu.vector_store %arg15[%c0_64, %c0_65], %275 {strides = array<i32>} : memref<40x128xf32, #tpu.memory_space<vmem>>, vector<40x128xf32>,
    return
  }
  func.func @transform_0(%arg0: i32) -> (i32, i32) {
    %c0_i32 = arith.constant 0 : i32
    %c0_i32_0 = arith.constant 0 : i32
    %c0_i32_1 = arith.constant 0 : i32
    return %c0_i32, %c0_i32_0 : i32, i32
  }
  func.func @transform_1(%arg0: i32) -> (i32, i32) {
    %c0_i32 = arith.constant 0 : i32
    %c0_i32_0 = arith.constant 0 : i32
    %c0_i32_1 = arith.constant 0 : i32
    return %c0_i32, %c0_i32_0 : i32, i32
  }
  func.func @transform_2(%arg0: i32) -> (i32, i32) {
    %c0_i32 = arith.constant 0 : i32
    %c0_i32_0 = arith.constant 0 : i32
    %c0_i32_1 = arith.constant 0 : i32
    return %c0_i32, %c0_i32_0 : i32, i32
  }
  func.func @transform_3(%arg0: i32) -> (i32, i32) {
    %c0_i32 = arith.constant 0 : i32
    %c0_i32_0 = arith.constant 0 : i32
    %c0_i32_1 = arith.constant 0 : i32
    return %c0_i32, %c0_i32_0 : i32, i32
  }
  func.func @transform_4(%arg0: i32) -> (i32, i32) {
    %c0_i32 = arith.constant 0 : i32
    %c0_i32_0 = arith.constant 0 : i32
    %c0_i32_1 = arith.constant 0 : i32
    return %c0_i32, %c0_i32_0 : i32, i32
  }
  func.func @transform_5(%arg0: i32) -> (i32, i32) {
    %c0_i32 = arith.constant 0 : i32
    %c0_i32_0 = arith.constant 0 : i32
    %c0_i32_1 = arith.constant 0 : i32
    return %c0_i32, %c0_i32_0 : i32, i32
  }
  func.func @transform_6(%arg0: i32) -> (i32, i32) {
    %c0_i32 = arith.constant 0 : i32
    %c0_i32_0 = arith.constant 0 : i32
    %c0_i32_1 = arith.constant 0 : i32
    return %c0_i32, %c0_i32_0 : i32, i32
  }
  func.func @transform_7(%arg0: i32) -> (i32, i32) {
    %c0_i32 = arith.constant 0 : i32
    %c0_i32_0 = arith.constant 0 : i32
    %c0_i32_1 = arith.constant 0 : i32
    return %c0_i32, %c0_i32_0 : i32, i32
  }
  func.func @transform_8(%arg0: i32) -> (i32, i32) {
    %c0_i32 = arith.constant 0 : i32
    %c0_i32_0 = arith.constant 0 : i32
    %c0_i32_1 = arith.constant 0 : i32
    return %c0_i32, %c0_i32_0 : i32, i32
  }
  func.func @transform_9(%arg0: i32) -> (i32, i32) {
    %c0_i32 = arith.constant 0 : i32
    %c0_i32_0 = arith.constant 0 : i32
    %c0_i32_1 = arith.constant 0 : i32
    return %c0_i32, %c0_i32_0 : i32, i32
  }
  func.func @transform_10(%arg0: i32) -> (i32, i32) {
    %c0_i32 = arith.constant 0 : i32
    %c0_i32_0 = arith.constant 0 : i32
    %c0_i32_1 = arith.constant 0 : i32
    return %c0_i32, %c0_i32_0 : i32, i32
  }
  func.func @transform_11(%arg0: i32) -> (i32, i32) {
    %c0_i32 = arith.constant 0 : i32
    %c0_i32_0 = arith.constant 0 : i32
    %c0_i32_1 = arith.constant 0 : i32
    return %c0_i32, %c0_i32_0 : i32, i32
  }
  func.func @transform_12(%arg0: i32) -> (i32, i32) {
    %c0_i32 = arith.constant 0 : i32
    %c0_i32_0 = arith.constant 0 : i32
    %c0_i32_1 = arith.constant 0 : i32
    return %c0_i32, %c0_i32_0 : i32, i32
  }
  func.func @transform_13(%arg0: i32) -> (i32, i32) {
    %c0_i32 = arith.constant 0 : i32
    %c0_i32_0 = arith.constant 0 : i32
    %c0_i32_1 = arith.constant 0 : i32
    return %c0_i32, %c0_i32_0 : i32, i32
  }
  func.func @transform_14(%arg0: i32) -> (i32, i32) {
    %c0_i32 = arith.constant 0 : i32
    %c0_i32_0 = arith.constant 0 : i32
    %c0_i32_1 = arith.constant 0 : i32
    return %c0_i32, %c0_i32_0 : i32, i32
  }
}

module attributes {stable_mosaic.version = 11 : i64} {
  func.func @_encoder_joiner_kernel(%arg0: i32, %arg1: memref<1x399x10xbf16, #tpu.memory_space<vmem>>, %arg2: memref<10x16xbf16, #tpu.memory_space<vmem>>, %arg3: memref<48x16xbf16, #tpu.memory_space<vmem>>, %arg4: memref<48x16xbf16, #tpu.memory_space<vmem>>, %arg5: memref<48x16xbf16, #tpu.memory_space<vmem>>, %arg6: memref<48x16xbf16, #tpu.memory_space<vmem>>, %arg7: memref<32x16xbf16, #tpu.memory_space<vmem>>, %arg8: memref<32x16xbf16, #tpu.memory_space<vmem>>, %arg9: memref<1x16xf32, #tpu.memory_space<vmem>>, %arg10: memref<1x16xf32, #tpu.memory_space<vmem>>, %arg11: memref<16x32xbf16, #tpu.memory_space<vmem>>, %arg12: memref<1x32xf32, #tpu.memory_space<vmem>>, %arg13: memref<1x8x128xf32, #tpu.memory_space<vmem>>, %arg14: memref<32x128xbf16, #tpu.memory_space<vmem>>, %arg15: memref<1x128xf32, #tpu.memory_space<vmem>>, %arg16: memref<1x48x128xf32, #tpu.memory_space<vmem>>, %arg17: memref<399x16xf32, #tpu.memory_space<vmem>>, %arg18: memref<199x16xf32, #tpu.memory_space<vmem>>, %arg19: memref<99x16xf32, #tpu.memory_space<vmem>>, %arg20: memref<49x16xf32, #tpu.memory_space<vmem>>, %arg21: memref<24x16xf32, #tpu.memory_space<vmem>>, %arg22: memref<12x16xf32, #tpu.memory_space<vmem>>) attributes {dimension_semantics = [#tpu.dimension_semantics<parallel>], iteration_bounds = array<i64: 2>, scalar_prefetch = 0 : i64, scratch_operands = 6 : i64, tpu.core_type = #tpu.core_type<tc>, window_params = [{transform_indices = @transform_0, window_bounds = array<i64: 1, 399, 10>}, {pipeline_mode = #tpu.pipeline_mode<synchronous>, transform_indices = @transform_1, window_bounds = array<i64: 10, 16>}, {pipeline_mode = #tpu.pipeline_mode<synchronous>, transform_indices = @transform_2, window_bounds = array<i64: 48, 16>}, {pipeline_mode = #tpu.pipeline_mode<synchronous>, transform_indices = @transform_3, window_bounds = array<i64: 48, 16>}, {pipeline_mode = #tpu.pipeline_mode<synchronous>, transform_indices = @transform_4, window_bounds = array<i64: 48, 16>}, {pipeline_mode = #tpu.pipeline_mode<synchronous>, transform_indices = @transform_5, window_bounds = array<i64: 48, 16>}, {pipeline_mode = #tpu.pipeline_mode<synchronous>, transform_indices = @transform_6, window_bounds = array<i64: 32, 16>}, {pipeline_mode = #tpu.pipeline_mode<synchronous>, transform_indices = @transform_7, window_bounds = array<i64: 32, 16>}, {pipeline_mode = #tpu.pipeline_mode<synchronous>, transform_indices = @transform_8, window_bounds = array<i64: 1, 16>}, {pipeline_mode = #tpu.pipeline_mode<synchronous>, transform_indices = @transform_9, window_bounds = array<i64: 1, 16>}, {pipeline_mode = #tpu.pipeline_mode<synchronous>, transform_indices = @transform_10, window_bounds = array<i64: 16, 32>}, {pipeline_mode = #tpu.pipeline_mode<synchronous>, transform_indices = @transform_11, window_bounds = array<i64: 1, 32>}, {transform_indices = @transform_12, window_bounds = array<i64: 1, 8, 128>}, {pipeline_mode = #tpu.pipeline_mode<synchronous>, transform_indices = @transform_13, window_bounds = array<i64: 32, 128>}, {pipeline_mode = #tpu.pipeline_mode<synchronous>, transform_indices = @transform_14, window_bounds = array<i64: 1, 128>}, {transform_indices = @transform_15, window_bounds = array<i64: 1, 48, 128>}]} {
    %c0 = arith.constant 0 : index
    %c0_0 = arith.constant 0 : index
    %c0_1 = arith.constant 0 : index
    %0 = vector.load %arg1[%c0, %c0_0, %c0_1] : memref<1x399x10xbf16, #tpu.memory_space<vmem>>, vector<1x399x10xbf16>
    %1 = vector.shape_cast %0 : vector<1x399x10xbf16> to vector<399x10xbf16>
    %c0_2 = arith.constant 0 : index
    %c0_3 = arith.constant 0 : index
    %2 = vector.load %arg2[%c0_2, %c0_3] : memref<10x16xbf16, #tpu.memory_space<vmem>>, vector<10x16xbf16>
    %cst = arith.constant dense<0.000000e+00> : vector<399x16xf32>
    %3 = tpu.matmul %1, %2, %cst {dimension_numbers = #tpu.dot_dimension_numbers<[1], [0], [0], [1], [0, 0, 1, 1], [], []>} : vector<399x10xbf16>, vector<10x16xbf16>, vector<399x16xf32> -> vector<399x16xf32>
    %4 = arith.mulf %3, %3 : vector<399x16xf32>
    %5 = arith.mulf %3, %4 : vector<399x16xf32>
    %cst_4 = arith.constant 4.471500e-02 : f32
    %6 = vector.broadcast %cst_4 : f32 to vector<399x16xf32>
    %7 = arith.mulf %6, %5 : vector<399x16xf32>
    %8 = arith.addf %3, %7 : vector<399x16xf32>
    %cst_5 = arith.constant 0.797884583 : f32
    %9 = vector.broadcast %cst_5 : f32 to vector<399x16xf32>
    %10 = arith.mulf %9, %8 : vector<399x16xf32>
    %11 = math.tanh %10 : vector<399x16xf32>
    %cst_6 = arith.constant 1.000000e+00 : f32
    %12 = vector.broadcast %cst_6 : f32 to vector<399x16xf32>
    %13 = arith.addf %12, %11 : vector<399x16xf32>
    %cst_7 = arith.constant 5.000000e-01 : f32
    %14 = vector.broadcast %cst_7 : f32 to vector<399x16xf32>
    %15 = arith.mulf %14, %13 : vector<399x16xf32>
    %16 = arith.mulf %3, %15 : vector<399x16xf32>
    %c0_8 = arith.constant 0 : index
    %c0_9 = arith.constant 0 : index
    %17 = vector.load %arg17[%c0_8, %c0_9] : memref<399x16xf32, #tpu.memory_space<vmem>>, vector<399x16xf32>
    tpu.vector_store %arg17[%c0_8, %c0_9], %16 {strides = array<i32>} : memref<399x16xf32, #tpu.memory_space<vmem>>, vector<399x16xf32>,
    %cst_10 = arith.constant 0.000000e+00 : f32
    %18 = vector.broadcast %cst_10 : f32 to vector<199x16xf32>
    %c0_11 = arith.constant 0 : index
    %c0_12 = arith.constant 0 : index
    %19 = tpu.strided_load %arg17[%c0_11, %c0_12] {strides = array<i32: 2, 1>} : memref<399x16xf32, #tpu.memory_space<vmem>>, vector<199x16xf32>
    %c0_13 = arith.constant 0 : index
    %c0_14 = arith.constant 0 : index
    %20 = vector.load %arg3[%c0_13, %c0_14] : memref<48x16xbf16, #tpu.memory_space<vmem>>, vector<16x16xbf16>
    %21 = arith.truncf %19 : vector<199x16xf32> to vector<199x16xbf16>
    %cst_15 = arith.constant dense<0.000000e+00> : vector<199x16xf32>
    %22 = tpu.matmul %21, %20, %cst_15 {dimension_numbers = #tpu.dot_dimension_numbers<[1], [0], [0], [1], [0, 0, 1, 1], [], []>} : vector<199x16xbf16>, vector<16x16xbf16>, vector<199x16xf32> -> vector<199x16xf32>
    %23 = arith.addf %18, %22 : vector<199x16xf32>
    %c1 = arith.constant 1 : index
    %c0_16 = arith.constant 0 : index
    %24 = tpu.strided_load %arg17[%c1, %c0_16] {strides = array<i32: 2, 1>} : memref<399x16xf32, #tpu.memory_space<vmem>>, vector<199x16xf32>
    %c16 = arith.constant 16 : index
    %c0_17 = arith.constant 0 : index
    %25 = vector.load %arg3[%c16, %c0_17] : memref<48x16xbf16, #tpu.memory_space<vmem>>, vector<16x16xbf16>
    %26 = arith.truncf %24 : vector<199x16xf32> to vector<199x16xbf16>
    %cst_18 = arith.constant dense<0.000000e+00> : vector<199x16xf32>
    %27 = tpu.matmul %26, %25, %cst_18 {dimension_numbers = #tpu.dot_dimension_numbers<[1], [0], [0], [1], [0, 0, 1, 1], [], []>} : vector<199x16xbf16>, vector<16x16xbf16>, vector<199x16xf32> -> vector<199x16xf32>
    %28 = arith.addf %23, %27 : vector<199x16xf32>
    %c2 = arith.constant 2 : index
    %c0_19 = arith.constant 0 : index
    %29 = tpu.strided_load %arg17[%c2, %c0_19] {strides = array<i32: 2, 1>} : memref<399x16xf32, #tpu.memory_space<vmem>>, vector<199x16xf32>
    %c32 = arith.constant 32 : index
    %c0_20 = arith.constant 0 : index
    %30 = vector.load %arg3[%c32, %c0_20] : memref<48x16xbf16, #tpu.memory_space<vmem>>, vector<16x16xbf16>
    %31 = arith.truncf %29 : vector<199x16xf32> to vector<199x16xbf16>
    %cst_21 = arith.constant dense<0.000000e+00> : vector<199x16xf32>
    %32 = tpu.matmul %31, %30, %cst_21 {dimension_numbers = #tpu.dot_dimension_numbers<[1], [0], [0], [1], [0, 0, 1, 1], [], []>} : vector<199x16xbf16>, vector<16x16xbf16>, vector<199x16xf32> -> vector<199x16xf32>
    %33 = arith.addf %28, %32 : vector<199x16xf32>
    %34 = arith.mulf %33, %33 : vector<199x16xf32>
    %35 = arith.mulf %33, %34 : vector<199x16xf32>
    %cst_22 = arith.constant 4.471500e-02 : f32
    %36 = vector.broadcast %cst_22 : f32 to vector<199x16xf32>
    %37 = arith.mulf %36, %35 : vector<199x16xf32>
    %38 = arith.addf %33, %37 : vector<199x16xf32>
    %cst_23 = arith.constant 0.797884583 : f32
    %39 = vector.broadcast %cst_23 : f32 to vector<199x16xf32>
    %40 = arith.mulf %39, %38 : vector<199x16xf32>
    %41 = math.tanh %40 : vector<199x16xf32>
    %cst_24 = arith.constant 1.000000e+00 : f32
    %42 = vector.broadcast %cst_24 : f32 to vector<199x16xf32>
    %43 = arith.addf %42, %41 : vector<199x16xf32>
    %cst_25 = arith.constant 5.000000e-01 : f32
    %44 = vector.broadcast %cst_25 : f32 to vector<199x16xf32>
    %45 = arith.mulf %44, %43 : vector<199x16xf32>
    %46 = arith.mulf %33, %45 : vector<199x16xf32>
    %c0_26 = arith.constant 0 : index
    %c0_27 = arith.constant 0 : index
    %47 = vector.load %arg18[%c0_26, %c0_27] : memref<199x16xf32, #tpu.memory_space<vmem>>, vector<199x16xf32>
    tpu.vector_store %arg18[%c0_26, %c0_27], %46 {strides = array<i32>} : memref<199x16xf32, #tpu.memory_space<vmem>>, vector<199x16xf32>,
    %cst_28 = arith.constant 0.000000e+00 : f32
    %48 = vector.broadcast %cst_28 : f32 to vector<99x16xf32>
    %c0_29 = arith.constant 0 : index
    %c0_30 = arith.constant 0 : index
    %49 = tpu.strided_load %arg18[%c0_29, %c0_30] {strides = array<i32: 2, 1>} : memref<199x16xf32, #tpu.memory_space<vmem>>, vector<99x16xf32>
    %c0_31 = arith.constant 0 : index
    %c0_32 = arith.constant 0 : index
    %50 = vector.load %arg4[%c0_31, %c0_32] : memref<48x16xbf16, #tpu.memory_space<vmem>>, vector<16x16xbf16>
    %51 = arith.truncf %49 : vector<99x16xf32> to vector<99x16xbf16>
    %cst_33 = arith.constant dense<0.000000e+00> : vector<99x16xf32>
    %52 = tpu.matmul %51, %50, %cst_33 {dimension_numbers = #tpu.dot_dimension_numbers<[1], [0], [0], [1], [0, 0, 1, 1], [], []>} : vector<99x16xbf16>, vector<16x16xbf16>, vector<99x16xf32> -> vector<99x16xf32>
    %53 = arith.addf %48, %52 : vector<99x16xf32>
    %c1_34 = arith.constant 1 : index
    %c0_35 = arith.constant 0 : index
    %54 = tpu.strided_load %arg18[%c1_34, %c0_35] {strides = array<i32: 2, 1>} : memref<199x16xf32, #tpu.memory_space<vmem>>, vector<99x16xf32>
    %c16_36 = arith.constant 16 : index
    %c0_37 = arith.constant 0 : index
    %55 = vector.load %arg4[%c16_36, %c0_37] : memref<48x16xbf16, #tpu.memory_space<vmem>>, vector<16x16xbf16>
    %56 = arith.truncf %54 : vector<99x16xf32> to vector<99x16xbf16>
    %cst_38 = arith.constant dense<0.000000e+00> : vector<99x16xf32>
    %57 = tpu.matmul %56, %55, %cst_38 {dimension_numbers = #tpu.dot_dimension_numbers<[1], [0], [0], [1], [0, 0, 1, 1], [], []>} : vector<99x16xbf16>, vector<16x16xbf16>, vector<99x16xf32> -> vector<99x16xf32>
    %58 = arith.addf %53, %57 : vector<99x16xf32>
    %c2_39 = arith.constant 2 : index
    %c0_40 = arith.constant 0 : index
    %59 = tpu.strided_load %arg18[%c2_39, %c0_40] {strides = array<i32: 2, 1>} : memref<199x16xf32, #tpu.memory_space<vmem>>, vector<99x16xf32>
    %c32_41 = arith.constant 32 : index
    %c0_42 = arith.constant 0 : index
    %60 = vector.load %arg4[%c32_41, %c0_42] : memref<48x16xbf16, #tpu.memory_space<vmem>>, vector<16x16xbf16>
    %61 = arith.truncf %59 : vector<99x16xf32> to vector<99x16xbf16>
    %cst_43 = arith.constant dense<0.000000e+00> : vector<99x16xf32>
    %62 = tpu.matmul %61, %60, %cst_43 {dimension_numbers = #tpu.dot_dimension_numbers<[1], [0], [0], [1], [0, 0, 1, 1], [], []>} : vector<99x16xbf16>, vector<16x16xbf16>, vector<99x16xf32> -> vector<99x16xf32>
    %63 = arith.addf %58, %62 : vector<99x16xf32>
    %64 = arith.mulf %63, %63 : vector<99x16xf32>
    %65 = arith.mulf %63, %64 : vector<99x16xf32>
    %cst_44 = arith.constant 4.471500e-02 : f32
    %66 = vector.broadcast %cst_44 : f32 to vector<99x16xf32>
    %67 = arith.mulf %66, %65 : vector<99x16xf32>
    %68 = arith.addf %63, %67 : vector<99x16xf32>
    %cst_45 = arith.constant 0.797884583 : f32
    %69 = vector.broadcast %cst_45 : f32 to vector<99x16xf32>
    %70 = arith.mulf %69, %68 : vector<99x16xf32>
    %71 = math.tanh %70 : vector<99x16xf32>
    %cst_46 = arith.constant 1.000000e+00 : f32
    %72 = vector.broadcast %cst_46 : f32 to vector<99x16xf32>
    %73 = arith.addf %72, %71 : vector<99x16xf32>
    %cst_47 = arith.constant 5.000000e-01 : f32
    %74 = vector.broadcast %cst_47 : f32 to vector<99x16xf32>
    %75 = arith.mulf %74, %73 : vector<99x16xf32>
    %76 = arith.mulf %63, %75 : vector<99x16xf32>
    %c0_48 = arith.constant 0 : index
    %c0_49 = arith.constant 0 : index
    %77 = vector.load %arg19[%c0_48, %c0_49] : memref<99x16xf32, #tpu.memory_space<vmem>>, vector<99x16xf32>
    tpu.vector_store %arg19[%c0_48, %c0_49], %76 {strides = array<i32>} : memref<99x16xf32, #tpu.memory_space<vmem>>, vector<99x16xf32>,
    %cst_50 = arith.constant 0.000000e+00 : f32
    %78 = vector.broadcast %cst_50 : f32 to vector<49x16xf32>
    %c0_51 = arith.constant 0 : index
    %c0_52 = arith.constant 0 : index
    %79 = tpu.strided_load %arg19[%c0_51, %c0_52] {strides = array<i32: 2, 1>} : memref<99x16xf32, #tpu.memory_space<vmem>>, vector<49x16xf32>
    %c0_53 = arith.constant 0 : index
    %c0_54 = arith.constant 0 : index
    %80 = vector.load %arg5[%c0_53, %c0_54] : memref<48x16xbf16, #tpu.memory_space<vmem>>, vector<16x16xbf16>
    %81 = arith.truncf %79 : vector<49x16xf32> to vector<49x16xbf16>
    %cst_55 = arith.constant dense<0.000000e+00> : vector<49x16xf32>
    %82 = tpu.matmul %81, %80, %cst_55 {dimension_numbers = #tpu.dot_dimension_numbers<[1], [0], [0], [1], [0, 0, 1, 1], [], []>} : vector<49x16xbf16>, vector<16x16xbf16>, vector<49x16xf32> -> vector<49x16xf32>
    %83 = arith.addf %78, %82 : vector<49x16xf32>
    %c1_56 = arith.constant 1 : index
    %c0_57 = arith.constant 0 : index
    %84 = tpu.strided_load %arg19[%c1_56, %c0_57] {strides = array<i32: 2, 1>} : memref<99x16xf32, #tpu.memory_space<vmem>>, vector<49x16xf32>
    %c16_58 = arith.constant 16 : index
    %c0_59 = arith.constant 0 : index
    %85 = vector.load %arg5[%c16_58, %c0_59] : memref<48x16xbf16, #tpu.memory_space<vmem>>, vector<16x16xbf16>
    %86 = arith.truncf %84 : vector<49x16xf32> to vector<49x16xbf16>
    %cst_60 = arith.constant dense<0.000000e+00> : vector<49x16xf32>
    %87 = tpu.matmul %86, %85, %cst_60 {dimension_numbers = #tpu.dot_dimension_numbers<[1], [0], [0], [1], [0, 0, 1, 1], [], []>} : vector<49x16xbf16>, vector<16x16xbf16>, vector<49x16xf32> -> vector<49x16xf32>
    %88 = arith.addf %83, %87 : vector<49x16xf32>
    %c2_61 = arith.constant 2 : index
    %c0_62 = arith.constant 0 : index
    %89 = tpu.strided_load %arg19[%c2_61, %c0_62] {strides = array<i32: 2, 1>} : memref<99x16xf32, #tpu.memory_space<vmem>>, vector<49x16xf32>
    %c32_63 = arith.constant 32 : index
    %c0_64 = arith.constant 0 : index
    %90 = vector.load %arg5[%c32_63, %c0_64] : memref<48x16xbf16, #tpu.memory_space<vmem>>, vector<16x16xbf16>
    %91 = arith.truncf %89 : vector<49x16xf32> to vector<49x16xbf16>
    %cst_65 = arith.constant dense<0.000000e+00> : vector<49x16xf32>
    %92 = tpu.matmul %91, %90, %cst_65 {dimension_numbers = #tpu.dot_dimension_numbers<[1], [0], [0], [1], [0, 0, 1, 1], [], []>} : vector<49x16xbf16>, vector<16x16xbf16>, vector<49x16xf32> -> vector<49x16xf32>
    %93 = arith.addf %88, %92 : vector<49x16xf32>
    %94 = arith.mulf %93, %93 : vector<49x16xf32>
    %95 = arith.mulf %93, %94 : vector<49x16xf32>
    %cst_66 = arith.constant 4.471500e-02 : f32
    %96 = vector.broadcast %cst_66 : f32 to vector<49x16xf32>
    %97 = arith.mulf %96, %95 : vector<49x16xf32>
    %98 = arith.addf %93, %97 : vector<49x16xf32>
    %cst_67 = arith.constant 0.797884583 : f32
    %99 = vector.broadcast %cst_67 : f32 to vector<49x16xf32>
    %100 = arith.mulf %99, %98 : vector<49x16xf32>
    %101 = math.tanh %100 : vector<49x16xf32>
    %cst_68 = arith.constant 1.000000e+00 : f32
    %102 = vector.broadcast %cst_68 : f32 to vector<49x16xf32>
    %103 = arith.addf %102, %101 : vector<49x16xf32>
    %cst_69 = arith.constant 5.000000e-01 : f32
    %104 = vector.broadcast %cst_69 : f32 to vector<49x16xf32>
    %105 = arith.mulf %104, %103 : vector<49x16xf32>
    %106 = arith.mulf %93, %105 : vector<49x16xf32>
    %c0_70 = arith.constant 0 : index
    %c0_71 = arith.constant 0 : index
    %107 = vector.load %arg20[%c0_70, %c0_71] : memref<49x16xf32, #tpu.memory_space<vmem>>, vector<49x16xf32>
    tpu.vector_store %arg20[%c0_70, %c0_71], %106 {strides = array<i32>} : memref<49x16xf32, #tpu.memory_space<vmem>>, vector<49x16xf32>,
    %cst_72 = arith.constant 0.000000e+00 : f32
    %108 = vector.broadcast %cst_72 : f32 to vector<24x16xf32>
    %c0_73 = arith.constant 0 : index
    %c0_74 = arith.constant 0 : index
    %109 = tpu.strided_load %arg20[%c0_73, %c0_74] {strides = array<i32: 2, 1>} : memref<49x16xf32, #tpu.memory_space<vmem>>, vector<24x16xf32>
    %c0_75 = arith.constant 0 : index
    %c0_76 = arith.constant 0 : index
    %110 = vector.load %arg6[%c0_75, %c0_76] : memref<48x16xbf16, #tpu.memory_space<vmem>>, vector<16x16xbf16>
    %111 = arith.truncf %109 : vector<24x16xf32> to vector<24x16xbf16>
    %cst_77 = arith.constant dense<0.000000e+00> : vector<24x16xf32>
    %112 = tpu.matmul %111, %110, %cst_77 {dimension_numbers = #tpu.dot_dimension_numbers<[1], [0], [0], [1], [0, 0, 1, 1], [], []>} : vector<24x16xbf16>, vector<16x16xbf16>, vector<24x16xf32> -> vector<24x16xf32>
    %113 = arith.addf %108, %112 : vector<24x16xf32>
    %c1_78 = arith.constant 1 : index
    %c0_79 = arith.constant 0 : index
    %114 = tpu.strided_load %arg20[%c1_78, %c0_79] {strides = array<i32: 2, 1>} : memref<49x16xf32, #tpu.memory_space<vmem>>, vector<24x16xf32>
    %c16_80 = arith.constant 16 : index
    %c0_81 = arith.constant 0 : index
    %115 = vector.load %arg6[%c16_80, %c0_81] : memref<48x16xbf16, #tpu.memory_space<vmem>>, vector<16x16xbf16>
    %116 = arith.truncf %114 : vector<24x16xf32> to vector<24x16xbf16>
    %cst_82 = arith.constant dense<0.000000e+00> : vector<24x16xf32>
    %117 = tpu.matmul %116, %115, %cst_82 {dimension_numbers = #tpu.dot_dimension_numbers<[1], [0], [0], [1], [0, 0, 1, 1], [], []>} : vector<24x16xbf16>, vector<16x16xbf16>, vector<24x16xf32> -> vector<24x16xf32>
    %118 = arith.addf %113, %117 : vector<24x16xf32>
    %c2_83 = arith.constant 2 : index
    %c0_84 = arith.constant 0 : index
    %119 = tpu.strided_load %arg20[%c2_83, %c0_84] {strides = array<i32: 2, 1>} : memref<49x16xf32, #tpu.memory_space<vmem>>, vector<24x16xf32>
    %c32_85 = arith.constant 32 : index
    %c0_86 = arith.constant 0 : index
    %120 = vector.load %arg6[%c32_85, %c0_86] : memref<48x16xbf16, #tpu.memory_space<vmem>>, vector<16x16xbf16>
    %121 = arith.truncf %119 : vector<24x16xf32> to vector<24x16xbf16>
    %cst_87 = arith.constant dense<0.000000e+00> : vector<24x16xf32>
    %122 = tpu.matmul %121, %120, %cst_87 {dimension_numbers = #tpu.dot_dimension_numbers<[1], [0], [0], [1], [0, 0, 1, 1], [], []>} : vector<24x16xbf16>, vector<16x16xbf16>, vector<24x16xf32> -> vector<24x16xf32>
    %123 = arith.addf %118, %122 : vector<24x16xf32>
    %124 = arith.mulf %123, %123 : vector<24x16xf32>
    %125 = arith.mulf %123, %124 : vector<24x16xf32>
    %cst_88 = arith.constant 4.471500e-02 : f32
    %126 = vector.broadcast %cst_88 : f32 to vector<24x16xf32>
    %127 = arith.mulf %126, %125 : vector<24x16xf32>
    %128 = arith.addf %123, %127 : vector<24x16xf32>
    %cst_89 = arith.constant 0.797884583 : f32
    %129 = vector.broadcast %cst_89 : f32 to vector<24x16xf32>
    %130 = arith.mulf %129, %128 : vector<24x16xf32>
    %131 = math.tanh %130 : vector<24x16xf32>
    %cst_90 = arith.constant 1.000000e+00 : f32
    %132 = vector.broadcast %cst_90 : f32 to vector<24x16xf32>
    %133 = arith.addf %132, %131 : vector<24x16xf32>
    %cst_91 = arith.constant 5.000000e-01 : f32
    %134 = vector.broadcast %cst_91 : f32 to vector<24x16xf32>
    %135 = arith.mulf %134, %133 : vector<24x16xf32>
    %136 = arith.mulf %123, %135 : vector<24x16xf32>
    %c0_92 = arith.constant 0 : index
    %c0_93 = arith.constant 0 : index
    %137 = vector.load %arg21[%c0_92, %c0_93] : memref<24x16xf32, #tpu.memory_space<vmem>>, vector<24x16xf32>
    tpu.vector_store %arg21[%c0_92, %c0_93], %136 {strides = array<i32>} : memref<24x16xf32, #tpu.memory_space<vmem>>, vector<24x16xf32>,
    %cst_94 = arith.constant 0.000000e+00 : f32
    %138 = vector.broadcast %cst_94 : f32 to vector<12x16xf32>
    %c0_95 = arith.constant 0 : index
    %c0_96 = arith.constant 0 : index
    %139 = tpu.strided_load %arg21[%c0_95, %c0_96] {strides = array<i32: 2, 1>} : memref<24x16xf32, #tpu.memory_space<vmem>>, vector<12x16xf32>
    %c0_97 = arith.constant 0 : index
    %c0_98 = arith.constant 0 : index
    %140 = vector.load %arg7[%c0_97, %c0_98] : memref<32x16xbf16, #tpu.memory_space<vmem>>, vector<16x16xbf16>
    %141 = arith.truncf %139 : vector<12x16xf32> to vector<12x16xbf16>
    %cst_99 = arith.constant dense<0.000000e+00> : vector<12x16xf32>
    %142 = tpu.matmul %141, %140, %cst_99 {dimension_numbers = #tpu.dot_dimension_numbers<[1], [0], [0], [1], [0, 0, 1, 1], [], []>} : vector<12x16xbf16>, vector<16x16xbf16>, vector<12x16xf32> -> vector<12x16xf32>
    %143 = arith.addf %138, %142 : vector<12x16xf32>
    %c1_100 = arith.constant 1 : index
    %c0_101 = arith.constant 0 : index
    %144 = tpu.strided_load %arg21[%c1_100, %c0_101] {strides = array<i32: 2, 1>} : memref<24x16xf32, #tpu.memory_space<vmem>>, vector<12x16xf32>
    %c16_102 = arith.constant 16 : index
    %c0_103 = arith.constant 0 : index
    %145 = vector.load %arg7[%c16_102, %c0_103] : memref<32x16xbf16, #tpu.memory_space<vmem>>, vector<16x16xbf16>
    %146 = arith.truncf %144 : vector<12x16xf32> to vector<12x16xbf16>
    %cst_104 = arith.constant dense<0.000000e+00> : vector<12x16xf32>
    %147 = tpu.matmul %146, %145, %cst_104 {dimension_numbers = #tpu.dot_dimension_numbers<[1], [0], [0], [1], [0, 0, 1, 1], [], []>} : vector<12x16xbf16>, vector<16x16xbf16>, vector<12x16xf32> -> vector<12x16xf32>
    %148 = arith.addf %143, %147 : vector<12x16xf32>
    %149 = arith.mulf %148, %148 : vector<12x16xf32>
    %150 = arith.mulf %148, %149 : vector<12x16xf32>
    %cst_105 = arith.constant 4.471500e-02 : f32
    %151 = vector.broadcast %cst_105 : f32 to vector<12x16xf32>
    %152 = arith.mulf %151, %150 : vector<12x16xf32>
    %153 = arith.addf %148, %152 : vector<12x16xf32>
    %cst_106 = arith.constant 0.797884583 : f32
    %154 = vector.broadcast %cst_106 : f32 to vector<12x16xf32>
    %155 = arith.mulf %154, %153 : vector<12x16xf32>
    %156 = math.tanh %155 : vector<12x16xf32>
    %cst_107 = arith.constant 1.000000e+00 : f32
    %157 = vector.broadcast %cst_107 : f32 to vector<12x16xf32>
    %158 = arith.addf %157, %156 : vector<12x16xf32>
    %cst_108 = arith.constant 5.000000e-01 : f32
    %159 = vector.broadcast %cst_108 : f32 to vector<12x16xf32>
    %160 = arith.mulf %159, %158 : vector<12x16xf32>
    %161 = arith.mulf %148, %160 : vector<12x16xf32>
    %c0_109 = arith.constant 0 : index
    %c0_110 = arith.constant 0 : index
    %162 = vector.load %arg22[%c0_109, %c0_110] : memref<12x16xf32, #tpu.memory_space<vmem>>, vector<12x16xf32>
    tpu.vector_store %arg22[%c0_109, %c0_110], %161 {strides = array<i32>} : memref<12x16xf32, #tpu.memory_space<vmem>>, vector<12x16xf32>,
    %cst_111 = arith.constant 0.000000e+00 : f32
    %163 = vector.broadcast %cst_111 : f32 to vector<6x16xf32>
    %c0_112 = arith.constant 0 : index
    %c0_113 = arith.constant 0 : index
    %164 = tpu.strided_load %arg22[%c0_112, %c0_113] {strides = array<i32: 2, 1>} : memref<12x16xf32, #tpu.memory_space<vmem>>, vector<6x16xf32>
    %c0_114 = arith.constant 0 : index
    %c0_115 = arith.constant 0 : index
    %165 = vector.load %arg8[%c0_114, %c0_115] : memref<32x16xbf16, #tpu.memory_space<vmem>>, vector<16x16xbf16>
    %166 = arith.truncf %164 : vector<6x16xf32> to vector<6x16xbf16>
    %cst_116 = arith.constant dense<0.000000e+00> : vector<6x16xf32>
    %167 = tpu.matmul %166, %165, %cst_116 {dimension_numbers = #tpu.dot_dimension_numbers<[1], [0], [0], [1], [0, 0, 1, 1], [], []>} : vector<6x16xbf16>, vector<16x16xbf16>, vector<6x16xf32> -> vector<6x16xf32>
    %168 = arith.addf %163, %167 : vector<6x16xf32>
    %c1_117 = arith.constant 1 : index
    %c0_118 = arith.constant 0 : index
    %169 = tpu.strided_load %arg22[%c1_117, %c0_118] {strides = array<i32: 2, 1>} : memref<12x16xf32, #tpu.memory_space<vmem>>, vector<6x16xf32>
    %c16_119 = arith.constant 16 : index
    %c0_120 = arith.constant 0 : index
    %170 = vector.load %arg8[%c16_119, %c0_120] : memref<32x16xbf16, #tpu.memory_space<vmem>>, vector<16x16xbf16>
    %171 = arith.truncf %169 : vector<6x16xf32> to vector<6x16xbf16>
    %cst_121 = arith.constant dense<0.000000e+00> : vector<6x16xf32>
    %172 = tpu.matmul %171, %170, %cst_121 {dimension_numbers = #tpu.dot_dimension_numbers<[1], [0], [0], [1], [0, 0, 1, 1], [], []>} : vector<6x16xbf16>, vector<16x16xbf16>, vector<6x16xf32> -> vector<6x16xf32>
    %173 = arith.addf %168, %172 : vector<6x16xf32>
    %174 = arith.mulf %173, %173 : vector<6x16xf32>
    %175 = arith.mulf %173, %174 : vector<6x16xf32>
    %cst_122 = arith.constant 4.471500e-02 : f32
    %176 = vector.broadcast %cst_122 : f32 to vector<6x16xf32>
    %177 = arith.mulf %176, %175 : vector<6x16xf32>
    %178 = arith.addf %173, %177 : vector<6x16xf32>
    %cst_123 = arith.constant 0.797884583 : f32
    %179 = vector.broadcast %cst_123 : f32 to vector<6x16xf32>
    %180 = arith.mulf %179, %178 : vector<6x16xf32>
    %181 = math.tanh %180 : vector<6x16xf32>
    %cst_124 = arith.constant 1.000000e+00 : f32
    %182 = vector.broadcast %cst_124 : f32 to vector<6x16xf32>
    %183 = arith.addf %182, %181 : vector<6x16xf32>
    %cst_125 = arith.constant 5.000000e-01 : f32
    %184 = vector.broadcast %cst_125 : f32 to vector<6x16xf32>
    %185 = arith.mulf %184, %183 : vector<6x16xf32>
    %186 = arith.mulf %173, %185 : vector<6x16xf32>
    %c0_126 = arith.constant 0 : index
    %c0_127 = arith.constant 0 : index
    %187 = vector.load %arg9[%c0_126, %c0_127] : memref<1x16xf32, #tpu.memory_space<vmem>>, vector<1x16xf32>
    %c0_128 = arith.constant 0 : index
    %c0_129 = arith.constant 0 : index
    %188 = vector.load %arg10[%c0_128, %c0_129] : memref<1x16xf32, #tpu.memory_space<vmem>>, vector<1x16xf32>
    %cst_130 = arith.constant dense<0.000000e+00> : vector<6xf32>
    %189 = vector.multi_reduction <add>, %186, %cst_130 [1] : vector<6x16xf32> to vector<6xf32>
    %190 = vector.shape_cast %189 : vector<6xf32> to vector<6x1xf32>
    %cst_131 = arith.constant 1.600000e+01 : f32
    %191 = vector.broadcast %cst_131 : f32 to vector<6x1xf32>
    %192 = arith.divf %190, %191 : vector<6x1xf32>
    %193 = vector.broadcast %192 : vector<6x1xf32> to vector<6x16xf32>
    %194 = arith.subf %186, %193 : vector<6x16xf32>
    %195 = arith.mulf %194, %194 : vector<6x16xf32>
    %cst_132 = arith.constant dense<0.000000e+00> : vector<6xf32>
    %196 = vector.multi_reduction <add>, %195, %cst_132 [1] : vector<6x16xf32> to vector<6xf32>
    %197 = vector.shape_cast %196 : vector<6xf32> to vector<6x1xf32>
    %cst_133 = arith.constant 1.600000e+01 : f32
    %198 = vector.broadcast %cst_133 : f32 to vector<6x1xf32>
    %199 = arith.divf %197, %198 : vector<6x1xf32>
    %cst_134 = arith.constant 9.99999974E-6 : f32
    %200 = vector.broadcast %cst_134 : f32 to vector<6x1xf32>
    %201 = arith.addf %199, %200 : vector<6x1xf32>
    %202 = math.rsqrt %201 : vector<6x1xf32>
    %203 = vector.broadcast %202 : vector<6x1xf32> to vector<6x16xf32>
    %204 = arith.mulf %194, %203 : vector<6x16xf32>
    %205 = vector.broadcast %187 : vector<1x16xf32> to vector<6x16xf32>
    %206 = arith.mulf %204, %205 : vector<6x16xf32>
    %207 = vector.broadcast %188 : vector<1x16xf32> to vector<6x16xf32>
    %208 = arith.addf %206, %207 : vector<6x16xf32>
    %209 = arith.truncf %208 : vector<6x16xf32> to vector<6x16xbf16>
    %c0_135 = arith.constant 0 : index
    %c0_136 = arith.constant 0 : index
    %210 = vector.load %arg11[%c0_135, %c0_136] : memref<16x32xbf16, #tpu.memory_space<vmem>>, vector<16x32xbf16>
    %cst_137 = arith.constant dense<0.000000e+00> : vector<6x32xf32>
    %211 = tpu.matmul %209, %210, %cst_137 {dimension_numbers = #tpu.dot_dimension_numbers<[1], [0], [0], [1], [0, 0, 1, 1], [], []>} : vector<6x16xbf16>, vector<16x32xbf16>, vector<6x32xf32> -> vector<6x32xf32>
    %c0_138 = arith.constant 0 : index
    %c0_139 = arith.constant 0 : index
    %212 = vector.load %arg12[%c0_138, %c0_139] : memref<1x32xf32, #tpu.memory_space<vmem>>, vector<1x32xf32>
    %213 = vector.broadcast %212 : vector<1x32xf32> to vector<6x32xf32>
    %214 = arith.addf %211, %213 : vector<6x32xf32>
    %c0_140 = arith.constant 0 : index
    %c0_141 = arith.constant 0 : index
    %c0_142 = arith.constant 0 : index
    %215 = vector.load %arg13[%c0_140, %c0_141, %c0_142] : memref<1x8x128xf32, #tpu.memory_space<vmem>>, vector<1x8x128xf32>
    %216 = vector.shape_cast %215 : vector<1x8x128xf32> to vector<8x128xf32>
    %217 = vector.extract_strided_slice %216 {offsets = [0, 0], sizes = [8, 32], strides = [1, 1]} : vector<8x128xf32> to vector<8x32xf32>
    %218 = vector.shape_cast %214 : vector<6x32xf32> to vector<6x1x32xf32>
    %219 = vector.shape_cast %217 : vector<8x32xf32> to vector<1x8x32xf32>
    %220 = vector.broadcast %218 : vector<6x1x32xf32> to vector<6x8x32xf32>
    %221 = vector.broadcast %219 : vector<1x8x32xf32> to vector<6x8x32xf32>
    %222 = arith.addf %220, %221 : vector<6x8x32xf32>
    %cst_143 = arith.constant 0.000000e+00 : f32
    %223 = vector.broadcast %cst_143 : f32 to vector<6x8x32xf32>
    %224 = arith.maximumf %222, %223 : vector<6x8x32xf32>
    %225 = vector.shape_cast %224 : vector<6x8x32xf32> to vector<48x32xf32>
    %226 = arith.truncf %225 : vector<48x32xf32> to vector<48x32xbf16>
    %c0_144 = arith.constant 0 : index
    %c0_145 = arith.constant 0 : index
    %227 = vector.load %arg14[%c0_144, %c0_145] : memref<32x128xbf16, #tpu.memory_space<vmem>>, vector<32x128xbf16>
    %cst_146 = arith.constant dense<0.000000e+00> : vector<48x128xf32>
    %228 = tpu.matmul %226, %227, %cst_146 {dimension_numbers = #tpu.dot_dimension_numbers<[1], [0], [0], [1], [0, 0, 1, 1], [], []>} : vector<48x32xbf16>, vector<32x128xbf16>, vector<48x128xf32> -> vector<48x128xf32>
    %c0_147 = arith.constant 0 : index
    %c0_148 = arith.constant 0 : index
    %229 = vector.load %arg15[%c0_147, %c0_148] : memref<1x128xf32, #tpu.memory_space<vmem>>, vector<1x128xf32>
    %230 = vector.broadcast %229 : vector<1x128xf32> to vector<48x128xf32>
    %231 = arith.addf %228, %230 : vector<48x128xf32>
    %c0_149 = arith.constant 0 : index
    %c0_150 = arith.constant 0 : index
    %c0_151 = arith.constant 0 : index
    %232 = vector.load %arg16[%c0_149, %c0_150, %c0_151] : memref<1x48x128xf32, #tpu.memory_space<vmem>>, vector<1x48x128xf32>
    %233 = vector.shape_cast %232 : vector<1x48x128xf32> to vector<48x128xf32>
    %234 = vector.shape_cast %231 : vector<48x128xf32> to vector<1x48x128xf32>
    tpu.vector_store %arg16[%c0_149, %c0_150, %c0_151], %234 {strides = array<i32>} : memref<1x48x128xf32, #tpu.memory_space<vmem>>, vector<1x48x128xf32>,
    return
  }
  func.func @transform_0(%arg0: i32) -> (i32, i32, i32) {
    %c0_i32 = arith.constant 0 : i32
    %c0_i32_0 = arith.constant 0 : i32
    %c0_i32_1 = arith.constant 0 : i32
    return %arg0, %c0_i32, %c0_i32_0 : i32, i32, i32
  }
  func.func @transform_1(%arg0: i32) -> (i32, i32) {
    %c0_i32 = arith.constant 0 : i32
    %c0_i32_0 = arith.constant 0 : i32
    %c0_i32_1 = arith.constant 0 : i32
    return %c0_i32, %c0_i32_0 : i32, i32
  }
  func.func @transform_2(%arg0: i32) -> (i32, i32) {
    %c0_i32 = arith.constant 0 : i32
    %c0_i32_0 = arith.constant 0 : i32
    %c0_i32_1 = arith.constant 0 : i32
    return %c0_i32, %c0_i32_0 : i32, i32
  }
  func.func @transform_3(%arg0: i32) -> (i32, i32) {
    %c0_i32 = arith.constant 0 : i32
    %c0_i32_0 = arith.constant 0 : i32
    %c0_i32_1 = arith.constant 0 : i32
    return %c0_i32, %c0_i32_0 : i32, i32
  }
  func.func @transform_4(%arg0: i32) -> (i32, i32) {
    %c0_i32 = arith.constant 0 : i32
    %c0_i32_0 = arith.constant 0 : i32
    %c0_i32_1 = arith.constant 0 : i32
    return %c0_i32, %c0_i32_0 : i32, i32
  }
  func.func @transform_5(%arg0: i32) -> (i32, i32) {
    %c0_i32 = arith.constant 0 : i32
    %c0_i32_0 = arith.constant 0 : i32
    %c0_i32_1 = arith.constant 0 : i32
    return %c0_i32, %c0_i32_0 : i32, i32
  }
  func.func @transform_6(%arg0: i32) -> (i32, i32) {
    %c0_i32 = arith.constant 0 : i32
    %c0_i32_0 = arith.constant 0 : i32
    %c0_i32_1 = arith.constant 0 : i32
    return %c0_i32, %c0_i32_0 : i32, i32
  }
  func.func @transform_7(%arg0: i32) -> (i32, i32) {
    %c0_i32 = arith.constant 0 : i32
    %c0_i32_0 = arith.constant 0 : i32
    %c0_i32_1 = arith.constant 0 : i32
    return %c0_i32, %c0_i32_0 : i32, i32
  }
  func.func @transform_8(%arg0: i32) -> (i32, i32) {
    %c0_i32 = arith.constant 0 : i32
    %c0_i32_0 = arith.constant 0 : i32
    %c0_i32_1 = arith.constant 0 : i32
    return %c0_i32, %c0_i32_0 : i32, i32
  }
  func.func @transform_9(%arg0: i32) -> (i32, i32) {
    %c0_i32 = arith.constant 0 : i32
    %c0_i32_0 = arith.constant 0 : i32
    %c0_i32_1 = arith.constant 0 : i32
    return %c0_i32, %c0_i32_0 : i32, i32
  }
  func.func @transform_10(%arg0: i32) -> (i32, i32) {
    %c0_i32 = arith.constant 0 : i32
    %c0_i32_0 = arith.constant 0 : i32
    %c0_i32_1 = arith.constant 0 : i32
    return %c0_i32, %c0_i32_0 : i32, i32
  }
  func.func @transform_11(%arg0: i32) -> (i32, i32) {
    %c0_i32 = arith.constant 0 : i32
    %c0_i32_0 = arith.constant 0 : i32
    %c0_i32_1 = arith.constant 0 : i32
    return %c0_i32, %c0_i32_0 : i32, i32
  }
  func.func @transform_12(%arg0: i32) -> (i32, i32, i32) {
    %c0_i32 = arith.constant 0 : i32
    %c0_i32_0 = arith.constant 0 : i32
    %c0_i32_1 = arith.constant 0 : i32
    return %arg0, %c0_i32, %c0_i32_0 : i32, i32, i32
  }
  func.func @transform_13(%arg0: i32) -> (i32, i32) {
    %c0_i32 = arith.constant 0 : i32
    %c0_i32_0 = arith.constant 0 : i32
    %c0_i32_1 = arith.constant 0 : i32
    return %c0_i32, %c0_i32_0 : i32, i32
  }
  func.func @transform_14(%arg0: i32) -> (i32, i32) {
    %c0_i32 = arith.constant 0 : i32
    %c0_i32_0 = arith.constant 0 : i32
    %c0_i32_1 = arith.constant 0 : i32
    return %c0_i32, %c0_i32_0 : i32, i32
  }
  func.func @transform_15(%arg0: i32) -> (i32, i32, i32) {
    %c0_i32 = arith.constant 0 : i32
    %c0_i32_0 = arith.constant 0 : i32
    %c0_i32_1 = arith.constant 0 : i32
    return %arg0, %c0_i32, %c0_i32_0 : i32, i32, i32
  }
}

</mosaic_0001>

<bundles_post_ra>
// kernel: model_forward.2
= control target key start
LH: loop header
LB: loop body
LE: loop exit
PB: predicated region body
PF: predicated region fallthrough
CT: control target
= control target key end

     0   :  { %vm55_vm0 = vcmask 261120   ;;  %v1765_v14 = vmov 0.0   ;;  %vm1766_vm1 = vmmov 0   ;;  %v1767_v19 = vmov 0   ;;  %s1769_s27 = smov 64   ;;  %s2229_s0 = inlined_call_operand.vmem [shape: f32[40,32], index: 0, kind: input, shape index: {}]   ;;  %s2230_s4 = inlined_call_operand.vmem [shape: bf16[32,128], index: 4, kind: input, shape index: {}]   ;;  %s2231_s3 = inlined_call_operand.vmem [shape: bf16[32,128], index: 3, kind: input, shape index: {}]   ;;  %s2232_s1 = inlined_call_operand.vmem [shape: f32[1,32], index: 1, kind: input, shape index: {}]   ;;  %s2233_s2 = inlined_call_operand.vmem [shape: f32[1,32], index: 2, kind: input, shape index: {}]   ;;  %s2234_s5 = inlined_call_operand.vmem [shape: f32[1,128], index: 5, kind: input, shape index: {}]   ;;  %s2235_s6 = inlined_call_operand.vmem [shape: bf16[32,128], index: 6, kind: input, shape index: {}]   ;;  %s2236_s7 = inlined_call_operand.vmem [shape: bf16[32,128], index: 7, kind: input, shape index: {}]   ;;  %s2237_s8 = inlined_call_operand.vmem [shape: f32[1,128], index: 8, kind: input, shape index: {}]   ;;  %s2238_s9 = inlined_call_operand.vmem [shape: bf16[32,32], index: 9, kind: input, shape index: {}]   ;;  %s2239_s10 = inlined_call_operand.vmem [shape: f32[1,32], index: 10, kind: input, shape index: {}]   ;;  %s2240_s13 = inlined_call_operand.vmem [shape: f32[32,128], index: 13, kind: input, shape index: {}]   ;;  %s2241_s11 = inlined_call_operand.vmem [shape: f32[1,32], index: 11, kind: input, shape index: {}]   ;;  %s2242_s12 = inlined_call_operand.vmem [shape: f32[1,32], index: 12, kind: input, shape index: {}]   ;;  %s2243_s14 = inlined_call_operand.vmem [shape: f32[40,128], index: 14, kind: output, shape index: {}]  }
   0x1   :  { %v48_v0 = vld [vmem:[%s2229_s0] sm:$0xff]  ;;  %v49_v1 = vld [vmem:[%s2229_s0 + $0x8] sm:$0xff]  ;;  %1515 = vmatprep.subr.bf16.mxu1 %v1765_v14  ;;  %1499 = vmatprep.subr.bf16.mxu0 %v1765_v14  ;;  %v144_v51 = vlaneseq }
   0x2   :  { %v56_v2 = vsel %vm55_vm0, %v48_v0, 0.0  ;;  %v59_v3 = vsel %vm55_vm0, %v49_v1, 0.0  ;;  %v1859_v15 = vld [vmem:[%s2230_s4 + $0x8] sm:$0xff]   ;;  %1519 = vmatprep.mubr.msk.bf16.mxu1 %vm1766_vm1, %v1765_v14  ;;  %1503 = vmatprep.mubr.msk.bf16.mxu0 %vm1766_vm1, %v1765_v14  ;;  %v1873_v17 = vld [vmem:[%s2230_s4] sm:$0xff]  }
   0x3   :  { %57 = vadd.xlane.f32.xlu0 %v56_v2  ;;  %v1656_v16 = vld [vmem:[%s2231_s3 + $0x8] sm:$0xff]   ;;  %1516 = vmatpush3.bf16.msra.mxu1 %v1859_v15  ;;  %v1658_v18 = vld [vmem:[%s2231_s3] sm:$0xff]   ;;  %v1917_v52 = vand.u32 127, %v144_v51 }
   0x4   :  { %1517 = vmatprep.subr.bf16.mxu1 %v1765_v14  ;;  %1500 = vmatpush3.bf16.msra.mxu0 %v1656_v16  ;;  %v1893_v28 = vld [vmem:[%s2232_s1] ss:$0 sm:$0xff]  ;;  %v50_v16 = vld [vmem:[%s2229_s0 + $0x10] sm:$0xff] }
   0x5   :  { %1501 = vmatprep.subr.bf16.mxu0 %v1765_v14  ;;  %v1899_v32 = vld [vmem:[%s2233_s2] ss:$0 sm:$0xff]  ;;  %vm146_vm2 = vcmp.lt.s32.totalorder %v1917_v52, 96 }
   0x6   :  { %v1914_v41 = vld [vmem:[%s2234_s5] ss:$0 sm:$0xff]  ;;  %s1768_s5 = smov 32  }
   0x7   :  { %60 = vadd.xlane.f32.xlu0 %v59_v3  ;;  %1518 = vmatpush3.bf16.msra.mxu1 %v1873_v17 }
   0x8   :  { %1502 = vmatpush3.bf16.msra.mxu0 %v1658_v18  ;;  %1523 = vmatprep.subr.bf16.mxu1 %v1765_v14  ;;  %v62_v18 = vsel %vm55_vm0, %v50_v16, 0.0 }
   0x9   :  { %1539 = vmatprep.subr.bf16.mxu0 %v1765_v14 }
   0xa   :  { %1520 = vmatmul.mubr.bf16.vlgmr.msra.gmra.mxu1 %v1767_v19 }
   0xb   :  { %1524 = vmatpush3.bf16.msra.mxu1 %v1859_v15  ;;  %1527 = vmatprep.mubr.msk.bf16.mxu1 %vm1766_vm1, %v1765_v14 }
   0xc   :  { %1525 = vmatprep.subr.bf16.mxu1 %v1765_v14 }
   0xf   :  { %1526 = vmatpush3.bf16.msra.mxu1 %v1873_v17 }
  0x10   :  { %1531 = vmatprep.subr.bf16.mxu1 %v1765_v14 }
  0x8c   :  { %v58_v4 = vpop.xlane.xlu0 %57 }
  0x8d   :  { %v72_v5 = vmul.f32 0.03125, %v58_v4 }
  0x8f   :  { %v77_v6 = vsub.f32 %v48_v0, %v72_v5 }
  0x90   :  { %v61_v7 = vpop.xlane.xlu0 %60 }
  0x91   :  { %v73_v8 = vmul.f32 0.03125, %v61_v7  ;;  %v82_v9 = vmul.f32 %v77_v6, %v77_v6 }
  0x93   :  { %v78_v10 = vsub.f32 %v49_v1, %v73_v8  ;;  %v87_v11 = vsel %vm55_vm0, %v82_v9, 0.0 }
  0x94   :  { %88 = vadd.xlane.f32.xlu1 %v87_v11 }
  0x95   :  { %v83_v12 = vmul.f32 %v78_v10, %v78_v10 }
  0x97   :  { %v90_v13 = vsel %vm55_vm0, %v83_v12, 0.0 }
  0x98   :  { %91 = vadd.xlane.f32.xlu1 %v90_v13 }
  0xca   :  { %v291_v37 = vpop.f32.mrf.mxu1 }
  0xcc   :  { %v1521_v38 = vpop.f32.mrf.mxu1 }
  0xce   :  { %v294_v39 = vpop.f32.mrf.mxu1 }
  0xd0   :  { %v1522_v40 = vpop.f32.mrf.mxu1 }
 0x11d   :  { %v89_v20 = vpop.xlane.xlu1 %88 }
 0x11e   :  { %v102_v21 = vmul.f32 0.03125, %v89_v20 }
 0x120   :  { %v107_v22 = vadd.f32 1e-05, %v102_v21 }
 0x121   :  { %v92_v23 = vpop.xlane.xlu1 %91 }
 0x122   :  { %1665 = vrsqrt.f32 %v107_v22  ;;  %v103_v24 = vmul.f32 0.03125, %v92_v23  ;;  %v51_v22 = vld [vmem:[%s2229_s0 + $0x18] sm:$0xff] }
 0x123   :  { %v65_v23 = vsel %vm55_vm0, %v51_v22, 0.0 }
 0x124   :  { %v108_v25 = vadd.f32 1e-05, %v103_v24 }
 0x126   :  { %1667 = vrsqrt.f32 %v108_v25 }
 0x12f   :  { %v1666_v26 = vpop.eup %1665 }
 0x130   :  { %v117_v27 = vmul.f32 %v1666_v26, %v77_v6 }
 0x132   :  { %v128_v31 = vmul.f32 %v1893_v28, %v117_v27 }
 0x133   :  { %v1668_v29 = vpop.eup %1667 }
 0x134   :  { %v118_v30 = vmul.f32 %v1668_v29, %v78_v10  ;;  %v139_v34 = vadd.f32 %v1899_v32, %v128_v31 }
 0x136   :  { %v129_v33 = vmul.f32 %v1893_v28, %v118_v30 }
 0x138   :  { %v140_v35 = vadd.f32 %v1899_v32, %v129_v33 }
 0x13a   :  { %v147_v36 = vpack.c.bf16 %v140_v35, %v139_v34 }
 0x13c   :  { %1504 = vmatmul.mubr.msk.bf16.vlgmr.msra.gmra.mxu0 %vm55_vm0, %v147_v36 }
 0x13d   :  { %1507 = vmatprep.mubr.msk.bf16.mxu0 %vm1766_vm1, %v1765_v14  ;;  %1540 = vmatpush3.bf16.msra.mxu0 %v1859_v15 }
 0x13e   :  { %1541 = vmatprep.subr.bf16.mxu0 %v1765_v14 }
 0x141   :  { %1542 = vmatpush3.bf16.msra.mxu0 %v1873_v17 }
 0x142   :  { %1555 = vmatprep.subr.bf16.mxu0 %v1765_v14 }
 0x1fc   :  { %v216_v42 = vpop.f32.mrf.mxu0 }
 0x1fd   :  { %v217_v43 = vadd.f32 %v1914_v41, %v216_v42 }
 0x1fe   :  { %v1505_v44 = vpop.f32.mrf.mxu0 }
 0x1ff   :  { %v297_v45 = vadd.f32 %v291_v37, %v217_v43 }
 0x200   :  { %v219_v46 = vpop.f32.mrf.mxu0 }
 0x201   :  { %v1406_v47 = vmul.f32 -1.442695, %v297_v45  ;;  %v220_v2 = vadd.f32 %v1914_v41, %v219_v46 }
 0x202   :  { %v1506_v48 = vpop.f32.mrf.mxu0 }
 0x203   :  { %1669 = vpow2.f32 %v1406_v47 }
 0x204   :  { %1671 = vtanh.f32 %v297_v45 }
 0x210   :  { %v1670_v49 = vpop.eup %1669 }
 0x211   :  { %v301_v50 = vadd.f32 1.0, %v1670_v49  ;;  %v1672_v53 = vpop.eup %1671 }
 0x213   :  { %1673 = vrcp.f32 %v301_v50 }
 0x220   :  { %v1674_v54 = vpop.eup %1673 }
 0x221   :  { %v305_v55 = vsel %vm146_vm2, %v1674_v54, %v1672_v53 }
 0x222   :  { %308 = vrot.lane.b32.xlu0 %v305_v55, %s1768_s5  ;;  %v306_v58 = vmul.f32 0.0, %v305_v55 }
 0x294   :  { %v309_v56 = vpop.permute.xlu0 %308 }
 0x295   :  { %v311_v57 = vmul.f32 %v309_v56, %v305_v55 }
 0x297   :  { %313 = vrot.lane.b32.xlu1 %v311_v57, %s1768_s5 }
 0x309   :  { %v314_v59 = vpop.permute.xlu1 %313 }
 0x30a   :  { %v316_v60 = vadd.f32 %v314_v59, %v306_v58 }
 0x30c   :  { %1675 = vtanh.f32 %v316_v60 }
 0x319   :  { %v1676_v61 = vpop.eup %1675 }
 0x31a   :  { %319 = vrot.lane.b32.xlu1 %v1676_v61, %s1768_s5 }
 0x38c   :  { %v320_v62 = vpop.permute.xlu1 %319 }
 0x38d   :  { %v1925_v63 = vmul.f32 %v320_v62, %v305_v55 }
 0x38f   :  { %v323_v0 = vpack.c.bf16 %v1925_v63, %v1925_v63 }
 0x391   :  { %325 = vrot.lane.b32.xlu1 %v323_v0, %s1769_s27 }
 0x403   :  { %v326_v1 = vpop.permute.xlu1 %325 }
 0x404   :  { %1528 = vmatmul.mubr.msk.bf16.vlgmr.msra.gmra.mxu1 %vm55_vm0, %v326_v1 }
 0x405   :  { %1532 = vmatpush3.bf16.msra.mxu1 %v1859_v15  ;;  %1535 = vmatprep.mubr.msk.bf16.mxu1 %vm1766_vm1, %v1765_v14 }
 0x406   :  { %1533 = vmatprep.subr.bf16.mxu1 %v1765_v14 }
 0x409   :  { %1534 = vmatpush3.bf16.msra.mxu1 %v1873_v17 }
 0x40a   :  { %1547 = vmatprep.subr.bf16.mxu1 %v1765_v14 }
 0x4c4   :  { %v364_v3 = vpop.f32.mrf.mxu1 }
 0x4c5   :  { %v370_v4 = vadd.f32 %v364_v3, %v220_v2 }
 0x4c6   :  { %v1529_v5 = vpop.f32.mrf.mxu1 }
 0x4c7   :  { %v1408_v6 = vmul.f32 -1.442695, %v370_v4 }
 0x4c8   :  { %v367_v7 = vpop.f32.mrf.mxu1 }
 0x4c9   :  { %1677 = vpow2.f32 %v1408_v6 }
 0x4ca   :  { %v1530_v8 = vpop.f32.mrf.mxu1  ;;  %1679 = vtanh.f32 %v370_v4 }
 0x4d6   :  { %v1678_v9 = vpop.eup %1677 }
 0x4d7   :  { %v374_v10 = vadd.f32 1.0, %v1678_v9  ;;  %v1680_v11 = vpop.eup %1679 }
 0x4d9   :  { %1681 = vrcp.f32 %v374_v10 }
 0x4e6   :  { %v1682_v12 = vpop.eup %1681 }
 0x4e7   :  { %v378_v13 = vsel %vm146_vm2, %v1682_v12, %v1680_v11 }
 0x4e8   :  { %381 = vrot.lane.b32.xlu0 %v378_v13, %s1768_s5  ;;  %v379_v30 = vmul.f32 %v378_v13, %v316_v60 }
 0x507   :  { %63 = vadd.xlane.f32.xlu0 %v62_v18 }
 0x55a   :  { %v382_v20 = vpop.permute.xlu0 %381 }
 0x55b   :  { %v384_v21 = vmul.f32 %v382_v20, %v378_v13 }
 0x55d   :  { %386 = vrot.lane.b32.xlu1 %v384_v21, %s1768_s5 }
 0x581   :  { %66 = vadd.xlane.f32.xlu1 %v65_v23 }
 0x590   :  { %v64_v24 = vpop.xlane.xlu0 %63 }
 0x591   :  { %v74_v25 = vmul.f32 0.03125, %v64_v24 }
 0x593   :  { %v79_v26 = vsub.f32 %v50_v16, %v74_v25  ;;  %v52_v16 = vld [vmem:[%s2229_s0 + $0x20] sm:$0xff] }
 0x594   :  { %v68_v18 = vsel %vm55_vm0, %v52_v16, 0.0 }
 0x595   :  { %v84_v27 = vmul.f32 %v79_v26, %v79_v26 }
 0x597   :  { %v93_v29 = vsel %vm55_vm0, %v84_v27, 0.0 }
 0x598   :  { %94 = vadd.xlane.f32.xlu1 %v93_v29 }
 0x5cf   :  { %v387_v31 = vpop.permute.xlu1 %386 }
 0x5d0   :  { %v1951_v33 = vadd.f32 %v387_v31, %v379_v30 }
 0x5d2   :  { %1683 = vtanh.f32 %v1951_v33 }
 0x5df   :  { %v1684_v34 = vpop.eup %1683 }
 0x5e0   :  { %392 = vrot.lane.b32.xlu0 %v1684_v34, %s1768_s5 }
 0x60a   :  { %v67_v35 = vpop.xlane.xlu1 %66 }
 0x60b   :  { %v75_v36 = vmul.f32 0.03125, %v67_v35 }
 0x60d   :  { %v80_v37 = vsub.f32 %v51_v22, %v75_v36 }
 0x60f   :  { %v85_v38 = vmul.f32 %v80_v37, %v80_v37 }
 0x611   :  { %v96_v39 = vsel %vm55_vm0, %v85_v38, 0.0 }
 0x612   :  { %97 = vadd.xlane.f32.xlu1 %v96_v39 }
 0x621   :  { %v95_v44 = vpop.xlane.xlu1 %94 }
 0x622   :  { %v104_v45 = vmul.f32 0.03125, %v95_v44 }
 0x624   :  { %v109_v46 = vadd.f32 1e-05, %v104_v45 }
 0x626   :  { %1685 = vrsqrt.f32 %v109_v46 }
 0x633   :  { %v1686_v50 = vpop.eup %1685 }
 0x634   :  { %v119_v51 = vmul.f32 %v1686_v50, %v79_v26 }
 0x636   :  { %v130_v55 = vmul.f32 %v1893_v28, %v119_v51 }
 0x638   :  { %v141_v57 = vadd.f32 %v1899_v32, %v130_v55 }
 0x652   :  { %v393_v40 = vpop.permute.xlu0 %392 }
 0x653   :  { %v1956_v42 = vmul.f32 %v393_v40, %v378_v13 }
 0x655   :  { %v396_v43 = vpack.c.bf16 %v1956_v42, %v1956_v42 }
 0x657   :  { %398 = vrot.lane.b32.xlu1 %v396_v43, %s1769_s27 }
 0x69b   :  { %v98_v47 = vpop.xlane.xlu1 %97 }
 0x69c   :  { %v105_v48 = vmul.f32 0.03125, %v98_v47 }
 0x69e   :  { %v110_v49 = vadd.f32 1e-05, %v105_v48 }
 0x6a0   :  { %1687 = vrsqrt.f32 %v110_v49 }
 0x6ad   :  { %v1688_v53 = vpop.eup %1687 }
 0x6ae   :  { %v120_v54 = vmul.f32 %v1688_v53, %v80_v37 }
 0x6b0   :  { %v131_v56 = vmul.f32 %v1893_v28, %v120_v54 }
 0x6b2   :  { %v142_v58 = vadd.f32 %v1899_v32, %v131_v56 }
 0x6b4   :  { %v148_v59 = vpack.c.bf16 %v142_v58, %v141_v57 }
 0x6b6   :  { %1508 = vmatmul.mubr.msk.bf16.gmra.mxu0 %vm55_vm0, %v148_v59 }
 0x6b7   :  { %1511 = vmatprep.mubr.msk.bf16.mxu0 %vm1766_vm1, %v1765_v14 }
 0x6c9   :  { %v399_v60 = vpop.permute.xlu1 %398 }
 0x6ca   :  { %1536 = vmatmul.mubr.msk.bf16.vlgmr.msra.gmra.mxu1 %vm55_vm0, %v399_v60 }
 0x6cb   :  { %1548 = vmatpush3.bf16.msra.mxu1 %v1859_v15  ;;  %1551 = vmatprep.mubr.msk.bf16.mxu1 %vm1766_vm1, %v1765_v14 }
 0x6cc   :  { %1549 = vmatprep.subr.bf16.mxu1 %v1765_v14 }
 0x6cf   :  { %1550 = vmatpush3.bf16.msra.mxu1 %v1873_v17 }
 0x6d0   :  { %1571 = vmatprep.subr.bf16.mxu1 %v1765_v14 }
 0x776   :  { %v224_v61 = vpop.f32.mrf.mxu0 }
 0x777   :  { %v225_v2 = vadd.f32 %v1914_v41, %v224_v61 }
 0x778   :  { %v1509_v62 = vpop.f32.mrf.mxu0 }
 0x779   :  { %v1659_v62 = vld [vmem:[%s2235_s6 + $0x8] sm:$0xff]  }
 0x77a   :  { %v227_v0 = vpop.f32.mrf.mxu0 }
 0x77c   :  { %v1510_v1 = vpop.f32.mrf.mxu0 }
 0x78a   :  { %v437_v3 = vpop.f32.mrf.mxu1 }
 0x78b   :  { %v443_v4 = vadd.f32 %v437_v3, %v225_v2  ;;  %v1660_v3 = vld [vmem:[%s2235_s6] sm:$0xff]  }
 0x78c   :  { %v1537_v5 = vpop.f32.mrf.mxu1 }
 0x78d   :  { %v1410_v6 = vmul.f32 -1.442695, %v443_v4  ;;  %v615_v5 = vpack.c.bf16 %v1956_v42, %v1925_v63  ;;  %v2040_v63 = vld [vmem:[%s2236_s7] sm:$0xff]  }
 0x78e   :  { %v440_v15 = vpop.f32.mrf.mxu1 }
 0x78f   :  { %1689 = vpow2.f32 %v1410_v6 }
 0x790   :  { %v1538_v7 = vpop.f32.mrf.mxu1  ;;  %1691 = vtanh.f32 %v443_v4 }
 0x79c   :  { %v1690_v8 = vpop.eup %1689 }
 0x79d   :  { %v447_v9 = vadd.f32 1.0, %v1690_v8  ;;  %v1692_v17 = vpop.eup %1691 }
 0x79f   :  { %1693 = vrcp.f32 %v447_v9  ;;  %v2029_v9 = vld [vmem:[%s2236_s7 + $0x8] sm:$0xff]  }
 0x7ac   :  { %v1694_v10 = vpop.eup %1693 }
 0x7ad   :  { %v451_v11 = vsel %vm146_vm2, %v1694_v10, %v1692_v17 }
 0x7ae   :  { %454 = vrot.lane.b32.xlu0 %v451_v11, %s1768_s5  ;;  %v452_v20 = vmul.f32 %v451_v11, %v1951_v33 }
 0x820   :  { %v455_v12 = vpop.permute.xlu0 %454 }
 0x821   :  { %v457_v13 = vmul.f32 %v455_v12, %v451_v11 }
 0x823   :  { %459 = vrot.lane.b32.xlu0 %v457_v13, %s1768_s5 }
 0x842   :  { %69 = vadd.xlane.f32.xlu0 %v68_v18 }
 0x895   :  { %v460_v21 = vpop.permute.xlu0 %459 }
 0x896   :  { %v462_v22 = vadd.f32 %v460_v21, %v452_v20  ;;  %v2063_v20 = vld [vmem:[%s2237_s8] ss:$0 sm:$0xff] }
 0x898   :  { %1695 = vtanh.f32 %v462_v22 }
 0x8a5   :  { %v1696_v23 = vpop.eup %1695 }
 0x8a6   :  { %465 = vrot.lane.b32.xlu1 %v1696_v23, %s1768_s5 }
 0x8cb   :  { %v70_v24 = vpop.xlane.xlu0 %69 }
 0x8cc   :  { %v76_v25 = vmul.f32 0.03125, %v70_v24 }
 0x8ce   :  { %v81_v26 = vsub.f32 %v52_v16, %v76_v25 }
 0x8d0   :  { %v86_v27 = vmul.f32 %v81_v26, %v81_v26 }
 0x8d2   :  { %v99_v29 = vsel %vm55_vm0, %v86_v27, 0.0 }
 0x8d3   :  { %100 = vadd.xlane.f32.xlu1 %v99_v29 }
 0x918   :  { %v466_v30 = vpop.permute.xlu1 %465 }
 0x919   :  { %v1987_v31 = vmul.f32 %v466_v30, %v451_v11 }
 0x91b   :  { %v469_v34 = vpack.c.bf16 %v1987_v31, %v1987_v31 }
 0x91d   :  { %471 = vrot.lane.b32.xlu0 %v469_v34, %s1769_s27 }
 0x95c   :  { %v101_v33 = vpop.xlane.xlu1 %100 }
 0x95d   :  { %v106_v35 = vmul.f32 0.03125, %v101_v33 }
 0x95f   :  { %v111_v36 = vadd.f32 1e-05, %v106_v35 }
 0x961   :  { %1697 = vrsqrt.f32 %v111_v36 }
 0x96e   :  { %v1698_v37 = vpop.eup %1697 }
 0x96f   :  { %v121_v38 = vmul.f32 %v1698_v37, %v81_v26 }
 0x971   :  { %v132_v39 = vmul.f32 %v1893_v28, %v121_v38  ;;  %v228_v28 = vadd.f32 %v1914_v41, %v227_v0 }
 0x973   :  { %v143_v40 = vadd.f32 %v1899_v32, %v132_v39 }
 0x975   :  { %v149_v43 = vpack.c.bf16 %v143_v40, %v143_v40 }
 0x977   :  { %1512 = vmatmul.mubr.msk.bf16.gmra.mxu0 %vm55_vm0, %v149_v43 }
 0x978   :  { %1543 = vmatprep.mubr.msk.bf16.mxu0 %vm1766_vm1, %v1765_v14 }
 0x98f   :  { %v472_v44 = vpop.permute.xlu0 %471 }
 0x990   :  { %1544 = vmatmul.mubr.msk.bf16.vlgmr.msra.gmra.mxu0 %vm55_vm0, %v472_v44 }
 0x991   :  { %1559 = vmatprep.mubr.msk.bf16.mxu0 %vm1766_vm1, %v1765_v14  ;;  %1556 = vmatpush3.bf16.msra.mxu0 %v1659_v62 }
 0x992   :  { %1557 = vmatprep.subr.bf16.mxu0 %v1765_v14 }
 0x995   :  { %1558 = vmatpush3.bf16.msra.mxu0 %v1660_v3 }
 0x996   :  { %1595 = vmatprep.subr.bf16.mxu0 %v1765_v14 }
 0xa37   :  { %v2000_v45 = vpop.f32.mrf.mxu0 }
 0xa38   :  { %v233_v13 = vadd.f32 %v1914_v41, %v2000_v45 }
 0xa39   :  { %v1513_v46 = vpop.f32.mrf.mxu0 }
 0xa3b   :  { %v235_v47 = vpop.f32.mrf.mxu0 }
 0xa3d   :  { %v1514_v48 = vpop.f32.mrf.mxu0 }
 0xa50   :  { %v510_v32 = vpop.f32.mrf.mxu0 }
 0xa51   :  { %v516_v49 = vadd.f32 %v510_v32, %v228_v28 }
 0xa52   :  { %v1545_v50 = vpop.f32.mrf.mxu0 }
 0xa53   :  { %v1412_v51 = vmul.f32 -1.442695, %v516_v49 }
 0xa54   :  { %v513_v53 = vpop.f32.mrf.mxu0 }
 0xa55   :  { %1699 = vpow2.f32 %v1412_v51 }
 0xa56   :  { %v1546_v54 = vpop.f32.mrf.mxu0  ;;  %1701 = vtanh.f32 %v516_v49 }
 0xa62   :  { %v1700_v55 = vpop.eup %1699 }
 0xa63   :  { %v520_v56 = vadd.f32 1.0, %v1700_v55  ;;  %v1702_v57 = vpop.eup %1701 }
 0xa65   :  { %1703 = vrcp.f32 %v520_v56 }
 0xa72   :  { %v1704_v58 = vpop.eup %1703 }
 0xa73   :  { %v524_v59 = vsel %vm146_vm2, %v1704_v58, %v1702_v57 }
 0xa74   :  { %527 = vrot.lane.b32.xlu1 %v524_v59, %s1768_s5  ;;  %v525_v0 = vmul.f32 %v524_v59, %v462_v22 }
 0xae6   :  { %v528_v60 = vpop.permute.xlu1 %527 }
 0xae7   :  { %v530_v61 = vmul.f32 %v528_v60, %v524_v59 }
 0xae9   :  { %532 = vrot.lane.b32.xlu0 %v530_v61, %s1768_s5 }
 0xb5b   :  { %v533_v1 = vpop.permute.xlu0 %532 }
 0xb5c   :  { %v2011_v2 = vadd.f32 %v533_v1, %v525_v0 }
 0xb5e   :  { %1705 = vtanh.f32 %v2011_v2 }
 0xb6b   :  { %v1706_v4 = vpop.eup %1705 }
 0xb6c   :  { %538 = vrot.lane.b32.xlu0 %v1706_v4, %s1768_s5 }
 0xb70   :  { %632 = vrot.lane.b32.xlu0 %v615_v5, %s1769_s27 }
 0xbde   :  { %v539_v6 = vpop.permute.xlu0 %538 }
 0xbdf   :  { %v2022_v15 = vmul.f32 %v539_v6, %v524_v59 }
 0xbe1   :  { %v542_v7 = vpack.c.bf16 %v2022_v15, %v2022_v15  ;;  %v616_v3 = vpack.c.bf16 %v2022_v15, %v1987_v31 }
 0xbe2   :  { %v633_v8 = vpop.permute.xlu0 %632 }
 0xbe3   :  { %544 = vrot.lane.b32.xlu1 %v542_v7, %s1769_s27  ;;  %1560 = vmatmul.mubr.msk.bf16.vlgmr.msra.gmra.mxu0 %vm55_vm0, %v633_v8 }
 0xbe4   :  { %1563 = vmatprep.mubr.msk.bf16.mxu0 %vm1766_vm1, %v1765_v14  ;;  %1596 = vmatpush3.bf16.msra.mxu0 %v2029_v9 }
 0xbe5   :  { %1597 = vmatprep.subr.bf16.mxu0 %v1765_v14 }
 0xbe8   :  { %1598 = vmatpush3.bf16.msra.mxu0 %v2040_v63 }
 0xbe9   :  { %1611 = vmatprep.subr.bf16.mxu0 %v1765_v14 }
 0xc55   :  { %v545_v42 = vpop.permute.xlu1 %544 }
 0xc56   :  { %1552 = vmatmul.mubr.msk.bf16.vlgmr.msra.gmra.mxu1 %vm55_vm0, %v545_v42 }
 0xc57   :  { %1572 = vmatpush3.bf16.msra.mxu1 %v2029_v9  ;;  %1575 = vmatprep.mubr.msk.bf16.mxu1 %vm1766_vm1, %v1765_v14 }
 0xc58   :  { %1573 = vmatprep.subr.bf16.mxu1 %v1765_v14 }
 0xc5b   :  { %1574 = vmatpush3.bf16.msra.mxu1 %v2040_v63 }
 0xc5c   :  { %1579 = vmatprep.subr.bf16.mxu1 %v1765_v14 }
 0xc5e   :  { %1576 = vmatmul.mubr.bf16.vlgmr.msra.gmra.mxu1 %v1767_v19 }
 0xc5f   :  { %1580 = vmatpush3.bf16.msra.mxu1 %v2029_v9  ;;  %1583 = vmatprep.mubr.msk.bf16.mxu1 %vm1766_vm1, %v1765_v14 }
 0xc60   :  { %1581 = vmatprep.subr.bf16.mxu1 %v1765_v14 }
 0xc63   :  { %1582 = vmatpush3.bf16.msra.mxu1 %v2040_v63 }
 0xc64   :  { %1587 = vmatprep.subr.bf16.mxu1 %v1765_v14 }
 0xca3   :  { %v693_v17 = vpop.f32.mrf.mxu0 }
 0xca4   :  { %v694_v23 = vadd.f32 %v2063_v20, %v693_v17 }
 0xca5   :  { %v1561_v10 = vpop.f32.mrf.mxu0 }
 0xca7   :  { %v696_v11 = vpop.f32.mrf.mxu0 }
 0xca8   :  { %v697_v28 = vadd.f32 %v2063_v20, %v696_v11 }
 0xca9   :  { %v1562_v12 = vpop.f32.mrf.mxu0 }
 0xd16   :  { %v583_v16 = vpop.f32.mrf.mxu1 }
 0xd17   :  { %v589_v19 = vadd.f32 %v583_v16, %v233_v13 }
 0xd18   :  { %v1553_v18 = vpop.f32.mrf.mxu1 }
 0xd19   :  { %v1414_v60 = vmul.f32 -1.442695, %v589_v19 }
 0xd1a   :  { %v586_v21 = vpop.f32.mrf.mxu1 }
 0xd1c   :  { %v1554_v22 = vpop.f32.mrf.mxu1 }
 0xd1e   :  { %v765_v24 = vpop.f32.mrf.mxu1 }
 0xd1f   :  { %v771_v25 = vadd.f32 %v765_v24, %v694_v23 }
 0xd20   :  { %v1577_v26 = vpop.f32.mrf.mxu1 }
 0xd21   :  { %v1423_v27 = vmul.f32 -1.442695, %v771_v25 }
 0xd22   :  { %v768_v29 = vpop.f32.mrf.mxu1 }
 0xd23   :  { %1707 = vpow2.f32 %v1423_v27 }
 0xd24   :  { %v1578_v30 = vpop.f32.mrf.mxu1  ;;  %1709 = vtanh.f32 %v771_v25 }
 0xd30   :  { %v1708_v41 = vpop.eup %1707 }
 0xd31   :  { %v775_v34 = vadd.f32 1.0, %v1708_v41  ;;  %v1710_v33 = vpop.eup %1709 }
 0xd33   :  { %1711 = vrcp.f32 %v775_v34 }
 0xd40   :  { %v1712_v35 = vpop.eup %1711 }
 0xd41   :  { %v779_v36 = vsel %vm146_vm2, %v1712_v35, %v1710_v33 }
 0xd42   :  { %782 = vrot.lane.b32.xlu1 %v779_v36, %s1768_s5  ;;  %v780_v39 = vmul.f32 0.0, %v779_v36 }
 0xdb4   :  { %v783_v37 = vpop.permute.xlu1 %782 }
 0xdb5   :  { %v785_v38 = vmul.f32 %v783_v37, %v779_v36 }
 0xdb7   :  { %787 = vrot.lane.b32.xlu0 %v785_v38, %s1768_s5 }
 0xe29   :  { %v788_v40 = vpop.permute.xlu0 %787 }
 0xe2a   :  { %v790_v43 = vadd.f32 %v788_v40, %v780_v39 }
 0xe2c   :  { %1713 = vtanh.f32 %v790_v43 }
 0xe39   :  { %v1714_v44 = vpop.eup %1713 }
 0xe3a   :  { %793 = vrot.lane.b32.xlu1 %v1714_v44, %s1768_s5 }
 0xeac   :  { %v794_v45 = vpop.permute.xlu1 %793 }
 0xead   :  { %v2071_v46 = vmul.f32 %v794_v45, %v779_v36 }
 0xeaf   :  { %v797_v47 = vpack.c.bf16 %v2071_v46, %v2071_v46 }
 0xeb1   :  { %799 = vrot.lane.b32.xlu0 %v797_v47, %s1769_s27 }
 0xf23   :  { %v800_v48 = vpop.permute.xlu0 %799 }
 0xf24   :  { %1584 = vmatmul.mubr.msk.bf16.vlgmr.msra.gmra.mxu1 %vm55_vm0, %v800_v48 }
 0xf25   :  { %1588 = vmatpush3.bf16.msra.mxu1 %v2029_v9  ;;  %1591 = vmatprep.mubr.msk.bf16.mxu1 %vm1766_vm1, %v1765_v14 }
 0xf26   :  { %1589 = vmatprep.subr.bf16.mxu1 %v1765_v14 }
 0xf29   :  { %1590 = vmatpush3.bf16.msra.mxu1 %v2040_v63 }
 0xf2a   :  { %1603 = vmatprep.subr.bf16.mxu1 %v1765_v14 }
 0xfe4   :  { %v838_v32 = vpop.f32.mrf.mxu1 }
 0xfe5   :  { %v844_v49 = vadd.f32 %v838_v32, %v697_v28 }
 0xfe6   :  { %v1585_v50 = vpop.f32.mrf.mxu1 }
 0xfe7   :  { %v1425_v51 = vmul.f32 -1.442695, %v844_v49 }
 0xfe8   :  { %v841_v53 = vpop.f32.mrf.mxu1 }
 0xfe9   :  { %1715 = vpow2.f32 %v1425_v51 }
 0xfea   :  { %v1586_v54 = vpop.f32.mrf.mxu1  ;;  %1717 = vtanh.f32 %v844_v49 }
 0xff6   :  { %v1716_v55 = vpop.eup %1715 }
 0xff7   :  { %v848_v56 = vadd.f32 1.0, %v1716_v55  ;;  %v1718_v57 = vpop.eup %1717 }
 0xff9   :  { %1719 = vrcp.f32 %v848_v56 }
 0xffa   :  { %1721 = vpow2.f32 %v1414_v60 }
0x1006   :  { %v1720_v58 = vpop.eup %1719 }
0x1007   :  { %v852_v59 = vsel %vm146_vm2, %v1720_v58, %v1718_v57  ;;  %v1722_v61 = vpop.eup %1721 }
0x1008   :  { %855 = vrot.lane.b32.xlu1 %v852_v59, %s1768_s5  ;;  %v593_v62 = vadd.f32 1.0, %v1722_v61  ;;  %v853_v7 = vmul.f32 %v852_v59, %v790_v43 }
0x100a   :  { %1723 = vrcp.f32 %v593_v62 }
0x100b   :  { %1725 = vtanh.f32 %v589_v19 }
0x1017   :  { %v1724_v4 = vpop.eup %1723 }
0x1018   :  { %v1726_v5 = vpop.eup %1725 }
0x1019   :  { %v597_v6 = vsel %vm146_vm2, %v1724_v4, %v1726_v5 }
0x101a   :  { %v598_v11 = vmul.f32 %v597_v6, %v2011_v2 }
0x107a   :  { %v856_v0 = vpop.permute.xlu1 %855 }
0x107b   :  { %v858_v1 = vmul.f32 %v856_v0, %v852_v59 }
0x107d   :  { %860 = vrot.lane.b32.xlu0 %v858_v1, %s1768_s5 }
0x1081   :  { %634 = vrot.lane.b32.xlu0 %v616_v3, %s1769_s27 }
0x1085   :  { %600 = vrot.lane.b32.xlu0 %v597_v6, %s1768_s5 }
0x10ef   :  { %v861_v8 = vpop.permute.xlu0 %860 }
0x10f0   :  { %v863_v42 = vadd.f32 %v861_v8, %v853_v7 }
0x10f2   :  { %1727 = vtanh.f32 %v863_v42 }
0x10f3   :  { %v635_v17 = vpop.permute.xlu0 %634 }
0x10f4   :  { %1564 = vmatmul.mubr.msk.bf16.gmra.mxu0 %vm55_vm0, %v635_v17 }
0x10f5   :  { %1567 = vmatprep.mubr.msk.bf16.mxu0 %vm1766_vm1, %v1765_v14 }
0x10f7   :  { %v601_v31 = vpop.permute.xlu0 %600 }
0x10f8   :  { %v603_v15 = vmul.f32 %v601_v31, %v597_v6 }
0x10fa   :  { %605 = vrot.lane.b32.xlu0 %v603_v15, %s1768_s5 }
0x10ff   :  { %v1728_v10 = vpop.eup %1727 }
0x1100   :  { %866 = vrot.lane.b32.xlu1 %v1728_v10, %s1768_s5 }
0x116c   :  { %v606_v12 = vpop.permute.xlu0 %605 }
0x116d   :  { %v608_v13 = vadd.f32 %v606_v12, %v598_v11 }
0x116f   :  { %1729 = vtanh.f32 %v608_v13 }
0x1172   :  { %v867_v16 = vpop.permute.xlu1 %866 }
0x1173   :  { %v2100_v19 = vmul.f32 %v867_v16, %v852_v59 }
0x1175   :  { %v870_v18 = vpack.c.bf16 %v2100_v19, %v2100_v19 }
0x1177   :  { %872 = vrot.lane.b32.xlu1 %v870_v18, %s1769_s27 }
0x117c   :  { %v1730_v21 = vpop.eup %1729 }
0x117d   :  { %611 = vrot.lane.b32.xlu0 %v1730_v21, %s1768_s5 }
0x11b4   :  { %v701_v22 = vpop.f32.mrf.mxu0 }
0x11b6   :  { %v1565_v23 = vpop.f32.mrf.mxu0 }
0x11b8   :  { %v704_v24 = vpop.f32.mrf.mxu0 }
0x11b9   :  { %v705_v58 = vadd.f32 %v2063_v20, %v704_v24 }
0x11ba   :  { %v1566_v25 = vpop.f32.mrf.mxu0 }
0x11e9   :  { %v873_v26 = vpop.permute.xlu1 %872 }
0x11ea   :  { %1592 = vmatmul.mubr.msk.bf16.vlgmr.msra.gmra.mxu1 %vm55_vm0, %v873_v26 }
0x11eb   :  { %1604 = vmatpush3.bf16.msra.mxu1 %v2029_v9  ;;  %1607 = vmatprep.mubr.msk.bf16.mxu1 %vm1766_vm1, %v1765_v14  ;;  %v702_v9 = vadd.f32 %v2063_v20, %v701_v22 }
0x11ec   :  { %1605 = vmatprep.subr.bf16.mxu1 %v1765_v14 }
0x11ef   :  { %v612_v2 = vpop.permute.xlu0 %611  ;;  %1606 = vmatpush3.bf16.msra.mxu1 %v2040_v63 }
0x11f0   :  { %v614_v27 = vmul.f32 %v612_v2, %v597_v6  ;;  %1627 = vmatprep.subr.mxu1 %v1765_v14 }
0x11f2   :  { %v617_v29 = vpack.c.bf16 %v614_v27, %v614_v27 }
0x11f4   :  { %636 = vrot.lane.b32.xlu0 %v617_v29, %s1769_s27  ;;  %v1663_v29 = vld [vmem:[%s2238_s9 + $0x8] sm:$0xff]  }
0x1266   :  { %v637_v30 = vpop.permute.xlu0 %636 }
0x1267   :  { %1568 = vmatmul.mubr.msk.bf16.gmra.mxu0 %vm55_vm0, %v637_v30 }
0x1268   :  { %1599 = vmatprep.mubr.msk.bf16.mxu0 %vm1766_vm1, %v1765_v14 }
0x12aa   :  { %v911_v41 = vpop.f32.mrf.mxu1 }
0x12ab   :  { %v917_v34 = vadd.f32 %v911_v41, %v702_v9  ;;  %v1664_v41 = vld [vmem:[%s2238_s9] sm:$0xff]  }
0x12ac   :  { %v1593_v33 = vpop.f32.mrf.mxu1 }
0x12ad   :  { %v1427_v35 = vmul.f32 -1.442695, %v917_v34 }
0x12ae   :  { %v914_v36 = vpop.f32.mrf.mxu1 }
0x12af   :  { %1731 = vpow2.f32 %v1427_v35  ;;  %v1089_v35 = vpack.c.bf16 %v2100_v19, %v2071_v46 }
0x12b0   :  { %v1594_v63 = vpop.f32.mrf.mxu1  ;;  %1733 = vtanh.f32 %v917_v34 }
0x12bc   :  { %v1732_v37 = vpop.eup %1731 }
0x12bd   :  { %v921_v38 = vadd.f32 1.0, %v1732_v37  ;;  %v1734_v39 = vpop.eup %1733 }
0x12bf   :  { %1735 = vrcp.f32 %v921_v38 }
0x12cc   :  { %v1736_v40 = vpop.eup %1735 }
0x12cd   :  { %v925_v43 = vsel %vm146_vm2, %v1736_v40, %v1734_v39 }
0x12ce   :  { %928 = vrot.lane.b32.xlu1 %v925_v43, %s1768_s5  ;;  %v926_v49 = vmul.f32 %v925_v43, %v863_v42 }
0x1327   :  { %v709_v44 = vpop.f32.mrf.mxu0 }
0x1328   :  { %v710_v18 = vadd.f32 %v2063_v20, %v709_v44  ;;  %v1432_v44 = vld [vmem:[%s2239_s10] ss:$0 sm:$0xff] }
0x1329   :  { %v1569_v45 = vpop.f32.mrf.mxu0 }
0x132b   :  { %v712_v47 = vpop.f32.mrf.mxu0 }
0x132d   :  { %v1570_v48 = vpop.f32.mrf.mxu0 }
0x1340   :  { %v929_v28 = vpop.permute.xlu1 %928 }
0x1341   :  { %v931_v32 = vmul.f32 %v929_v28, %v925_v43 }
0x1343   :  { %933 = vrot.lane.b32.xlu1 %v931_v32, %s1768_s5 }
0x13b5   :  { %v934_v50 = vpop.permute.xlu1 %933 }
0x13b6   :  { %v936_v51 = vadd.f32 %v934_v50, %v926_v49 }
0x13b8   :  { %1737 = vtanh.f32 %v936_v51 }
0x13c5   :  { %v1738_v53 = vpop.eup %1737 }
0x13c6   :  { %939 = vrot.lane.b32.xlu1 %v1738_v53, %s1768_s5 }
0x1438   :  { %v940_v54 = vpop.permute.xlu1 %939 }
0x1439   :  { %v2123_v55 = vmul.f32 %v940_v54, %v925_v43 }
0x143b   :  { %v943_v56 = vpack.c.bf16 %v2123_v55, %v2123_v55 }
0x143d   :  { %945 = vrot.lane.b32.xlu1 %v943_v56, %s1769_s27 }
0x14af   :  { %v946_v57 = vpop.permute.xlu1 %945 }
0x14b0   :  { %1600 = vmatmul.mubr.msk.bf16.vlgmr.msra.gmra.mxu0 %vm55_vm0, %v946_v57 }
0x14b1   :  { %1615 = vmatprep.mubr.msk.bf16.mxu0 %vm1766_vm1, %v1765_v14  ;;  %1612 = vmatpush3.bf16.msra.mxu0 %v1663_v29 }
0x14b2   :  { %1613 = vmatprep.subr.bf16.mxu0 %v1765_v14 }
0x14b5   :  { %1614 = vmatpush3.bf16.msra.mxu0 %v1664_v41 }
0x1570   :  { %v984_v59 = vpop.f32.mrf.mxu0 }
0x1571   :  { %v990_v60 = vadd.f32 %v984_v59, %v705_v58 }
0x1572   :  { %v1601_v61 = vpop.f32.mrf.mxu0 }
0x1573   :  { %v1429_v62 = vmul.f32 -1.442695, %v990_v60 }
0x1574   :  { %v987_v0 = vpop.f32.mrf.mxu0 }
0x1575   :  { %1739 = vpow2.f32 %v1429_v62 }
0x1576   :  { %v1602_v1 = vpop.f32.mrf.mxu0  ;;  %1741 = vtanh.f32 %v990_v60 }
0x1582   :  { %v1740_v3 = vpop.eup %1739 }
0x1583   :  { %v994_v4 = vadd.f32 1.0, %v1740_v3  ;;  %v1742_v5 = vpop.eup %1741 }
0x1585   :  { %1743 = vrcp.f32 %v994_v4 }
0x1592   :  { %v1744_v6 = vpop.eup %1743 }
0x1593   :  { %v998_v7 = vsel %vm146_vm2, %v1744_v6, %v1742_v5  ;;  %v1281_v5 = vld [vmem:[%s2240_s13 + $0x18] sm:$0xff]  ;;  %v1280_v6 = vld [vmem:[%s2240_s13 + $0x10] sm:$0xff] }
0x1594   :  { %1001 = vrot.lane.b32.xlu0 %v998_v7, %s1768_s5  ;;  %v999_v17 = vmul.f32 %v998_v7, %v936_v51 }
0x1606   :  { %v1002_v8 = vpop.permute.xlu0 %1001 }
0x1607   :  { %v1004_v42 = vmul.f32 %v1002_v8, %v998_v7  ;;  %v1278_v8 = vld [vmem:[%s2240_s13] sm:$0xff] }
0x1609   :  { %1006 = vrot.lane.b32.xlu1 %v1004_v42, %s1768_s5 }
0x167b   :  { %v1007_v31 = vpop.permute.xlu1 %1006 }
0x167c   :  { %v1009_v15 = vadd.f32 %v1007_v31, %v999_v17 }
0x167e   :  { %1745 = vtanh.f32 %v1009_v15 }
0x168b   :  { %v1746_v10 = vpop.eup %1745 }
0x168c   :  { %1012 = vrot.lane.b32.xlu0 %v1746_v10, %s1768_s5 }
0x16fe   :  { %v1013_v11 = vpop.permute.xlu0 %1012 }
0x16ff   :  { %v1015_v12 = vmul.f32 %v1013_v11, %v998_v7  ;;  %v1279_v7 = vld [vmem:[%s2240_s13 + $0x8] sm:$0xff] }
0x1701   :  { %v1016_v13 = vpack.c.bf16 %v1015_v12, %v1015_v12  ;;  %v1090_v39 = vpack.c.bf16 %v1015_v12, %v2123_v55 }
0x1703   :  { %1018 = vrot.lane.b32.xlu1 %v1016_v13, %s1769_s27 }
0x1775   :  { %v1019_v16 = vpop.permute.xlu1 %1018 }
0x1776   :  { %1608 = vmatmul.mubr.msk.bf16.vlgmr.msra.gmra.mxu1 %vm55_vm0, %v1019_v16 }
0x1777   :  { %1635 = vmatprep.mubr.msk.f32.mxu1 %vm1766_vm1, %v1765_v14  ;;  %1628 = vmatpush3.msra.mxu1 %v1281_v5 }
0x1778   :  { %1629 = vmatprep.subr.mxu1 %v1765_v14 }
0x1779   :  { %1630 = vmatpush3.msra.mxu1 %v1280_v6 }
0x177a   :  { %1631 = vmatprep.subr.mxu1 %v1765_v14 }
0x177b   :  { %1632 = vmatpush3.msra.mxu1 %v1279_v7 }
0x177c   :  { %1633 = vmatprep.subr.mxu1 %v1765_v14 }
0x177d   :  { %1634 = vmatpush3.msra.mxu1 %v1278_v8 }
0x1836   :  { %v1057_v21 = vpop.f32.mrf.mxu1 }
0x1837   :  { %v1063_v22 = vadd.f32 %v1057_v21, %v710_v18 }
0x1838   :  { %v1609_v23 = vpop.f32.mrf.mxu1 }
0x1839   :  { %v1431_v24 = vmul.f32 -1.442695, %v1063_v22 }
0x183a   :  { %v1060_v25 = vpop.f32.mrf.mxu1 }
0x183b   :  { %1747 = vpow2.f32 %v1431_v24 }
0x183c   :  { %v1610_v26 = vpop.f32.mrf.mxu1  ;;  %1749 = vtanh.f32 %v1063_v22 }
0x1848   :  { %v1748_v2 = vpop.eup %1747 }
0x1849   :  { %v1067_v27 = vadd.f32 1.0, %v1748_v2  ;;  %v1750_v30 = vpop.eup %1749 }
0x184b   :  { %1751 = vrcp.f32 %v1067_v27 }
0x1858   :  { %v1752_v20 = vpop.eup %1751 }
0x1859   :  { %v1071_v9 = vsel %vm146_vm2, %v1752_v20, %v1750_v30 }
0x185a   :  { %1074 = vrot.lane.b32.xlu0 %v1071_v9, %s1768_s5  ;;  %v1072_v36 = vmul.f32 %v1071_v9, %v1009_v15 }
0x18cc   :  { %v1075_v34 = vpop.permute.xlu0 %1074 }
0x18cd   :  { %v1077_v33 = vmul.f32 %v1075_v34, %v1071_v9 }
0x18cf   :  { %1079 = vrot.lane.b32.xlu1 %v1077_v33, %s1768_s5 }
0x18d3   :  { %1106 = vrot.lane.b32.xlu1 %v1089_v35, %s1769_s27  ;;  %v1438_v35 = vld [vmem:[%s2241_s11] ss:$0 sm:$0xff] }
0x1941   :  { %v1080_v63 = vpop.permute.xlu1 %1079 }
0x1942   :  { %v1082_v52 = vadd.f32 %v1080_v63, %v1072_v36  ;;  %v1439_v63 = vld [vmem:[%s2242_s12] ss:$0 sm:$0xff] }
0x1944   :  { %1753 = vtanh.f32 %v1082_v52 }
0x1945   :  { %v1107_v37 = vpop.permute.xlu1 %1106 }
0x1946   :  { %1616 = vmatmul.mubr.msk.bf16.vlgmr.msra.gmra.mxu0 %vm55_vm0, %v1107_v37 }
0x1947   :  { %1619 = vmatprep.mubr.msk.bf16.mxu0 %vm1766_vm1, %v1765_v14 }
0x1951   :  { %v1754_v38 = vpop.eup %1753 }
0x1952   :  { %1085 = vrot.lane.b32.xlu0 %v1754_v38, %s1768_s5 }
0x1956   :  { %1108 = vrot.lane.b32.xlu0 %v1090_v39, %s1769_s27 }
0x19c4   :  { %v1086_v46 = vpop.permute.xlu0 %1085 }
0x19c5   :  { %v1088_v19 = vmul.f32 %v1086_v46, %v1071_v9 }
0x19c7   :  { %v1091_v40 = vpack.c.bf16 %v1088_v19, %v1088_v19 }
0x19c8   :  { %v1109_v43 = vpop.permute.xlu0 %1108 }
0x19c9   :  { %1110 = vrot.lane.b32.xlu1 %v1091_v40, %s1769_s27  ;;  %1620 = vmatmul.mubr.msk.bf16.gmra.mxu0 %vm55_vm0, %v1109_v43 }
0x19ca   :  { %1623 = vmatprep.mubr.msk.bf16.mxu0 %vm1766_vm1, %v1765_v14 }
0x1a06   :  { %v1167_v45 = vpop.f32.mrf.mxu0 }
0x1a07   :  { %v1168_v47 = vadd.f32 %v1432_v44, %v1167_v45 }
0x1a08   :  { %v1617_v48 = vpop.f32.mrf.mxu0 }
0x1a09   :  { %v1191_v28 = vsel %vm55_vm0, %v1168_v47, 0.0 }
0x1a0a   :  { %1192 = vadd.xlane.f32.xlu0 %v1191_v28  ;;  %v1170_v32 = vpop.f32.mrf.mxu0 }
0x1a0b   :  { %v1171_v49 = vadd.f32 %v1432_v44, %v1170_v32 }
0x1a0c   :  { %v1618_v50 = vpop.f32.mrf.mxu0 }
0x1a0d   :  { %v1194_v51 = vsel %vm55_vm0, %v1171_v49, 0.0 }
0x1a0e   :  { %1195 = vadd.xlane.f32.xlu1 %v1194_v51 }
0x1a3b   :  { %v1111_v53 = vpop.permute.xlu1 %1110 }
0x1a3c   :  { %1624 = vmatmul.mubr.msk.bf16.gmra.mxu0 %vm55_vm0, %v1111_v53 }
0x1a89   :  { %v1175_v54 = vpop.f32.mrf.mxu0 }
0x1a8a   :  { %v1176_v55 = vadd.f32 %v1432_v44, %v1175_v54 }
0x1a8b   :  { %v1621_v56 = vpop.f32.mrf.mxu0 }
0x1a8c   :  { %v1197_v57 = vsel %vm55_vm0, %v1176_v55, 0.0 }
0x1a8d   :  { %1198 = vadd.xlane.f32.xlu0 %v1197_v57  ;;  %v1178_v58 = vpop.f32.mrf.mxu0 }
0x1a8e   :  { %v1179_v59 = vadd.f32 %v1432_v44, %v1178_v58 }
0x1a8f   :  { %v1622_v60 = vpop.f32.mrf.mxu0 }
0x1a90   :  { %v1200_v61 = vsel %vm55_vm0, %v1179_v59, 0.0 }
0x1a91   :  { %1201 = vadd.xlane.f32.xlu0 %v1200_v61 }
0x1a93   :  { %v1193_v62 = vpop.xlane.xlu0 %1192 }
0x1a94   :  { %v1206_v0 = vmul.f32 0.03125, %v1193_v62 }
0x1a96   :  { %v1211_v1 = vsub.f32 %v1168_v47, %v1206_v0 }
0x1a97   :  { %v1196_v42 = vpop.xlane.xlu1 %1195 }
0x1a98   :  { %v1216_v3 = vmul.f32 %v1211_v1, %v1211_v1  ;;  %v1207_v17 = vmul.f32 0.03125, %v1196_v42 }
0x1a9a   :  { %v1221_v4 = vsel %vm55_vm0, %v1216_v3, 0.0  ;;  %v1212_v31 = vsub.f32 %v1171_v49, %v1207_v17 }
0x1a9b   :  { %1222 = vadd.xlane.f32.xlu1 %v1221_v4 }
0x1a9c   :  { %v1217_v13 = vmul.f32 %v1212_v31, %v1212_v31 }
0x1a9e   :  { %v1224_v21 = vsel %vm55_vm0, %v1217_v13, 0.0 }
0x1afc   :  { %v1183_v15 = vpop.f32.mrf.mxu0 }
0x1afd   :  { %v1184_v10 = vadd.f32 %v1432_v44, %v1183_v15 }
0x1afe   :  { %v1625_v11 = vpop.f32.mrf.mxu0 }
0x1aff   :  { %v1203_v12 = vsel %vm55_vm0, %v1184_v10, 0.0 }
0x1b00   :  { %1204 = vadd.xlane.f32.xlu0 %v1203_v12  ;;  %v1186_v16 = vpop.f32.mrf.mxu0 }
0x1b02   :  { %v1626_v18 = vpop.f32.mrf.mxu0 }
0x1b04   :  { %1225 = vadd.xlane.f32.xlu0 %v1224_v21 }
0x1b16   :  { %v1199_v22 = vpop.xlane.xlu0 %1198 }
0x1b17   :  { %v1208_v23 = vmul.f32 0.03125, %v1199_v22 }
0x1b19   :  { %v1213_v24 = vsub.f32 %v1176_v55, %v1208_v23 }
0x1b1a   :  { %v1202_v25 = vpop.xlane.xlu0 %1201 }
0x1b1b   :  { %v1209_v26 = vmul.f32 0.03125, %v1202_v25  ;;  %v1218_v2 = vmul.f32 %v1213_v24, %v1213_v24 }
0x1b1d   :  { %v1214_v27 = vsub.f32 %v1179_v59, %v1209_v26  ;;  %v1227_v29 = vsel %vm55_vm0, %v1218_v2, 0.0 }
0x1b1e   :  { %1228 = vadd.xlane.f32.xlu1 %v1227_v29 }
0x1b1f   :  { %v1219_v30 = vmul.f32 %v1214_v27, %v1214_v27 }
0x1b21   :  { %v1230_v20 = vsel %vm55_vm0, %v1219_v30, 0.0 }
0x1b22   :  { %1231 = vadd.xlane.f32.xlu0 %v1230_v20 }
0x1b24   :  { %v1223_v9 = vpop.xlane.xlu1 %1222 }
0x1b25   :  { %v1236_v41 = vmul.f32 0.03125, %v1223_v9 }
0x1b27   :  { %v1241_v34 = vadd.f32 1e-05, %v1236_v41 }
0x1b29   :  { %1755 = vrsqrt.f32 %v1241_v34 }
0x1b36   :  { %v1756_v33 = vpop.eup %1755 }
0x1b37   :  { %v1251_v36 = vmul.f32 %v1756_v33, %v1211_v1 }
0x1b39   :  { %v1262_v52 = vmul.f32 %v1438_v35, %v1251_v36 }
0x1b3b   :  { %v1273_v37 = vadd.f32 %v1439_v63, %v1262_v52 }
0x1b3d   :  { %1636 = vmatmul.mubr.msk.f32.vlgmr.msra.gmra.mxu1 %vm55_vm0, %v1273_v37 }
0x1b3e   :  { %1638 = vmatprep.mubr.msk.f32.mxu1 %vm1766_vm1, %v1765_v14 }
0x1b89   :  { %v1205_v38 = vpop.xlane.xlu0 %1204 }
0x1b8a   :  { %v1210_v39 = vmul.f32 0.03125, %v1205_v38 }
0x1b8c   :  { %v1215_v46 = vsub.f32 %v1184_v10, %v1210_v39 }
0x1b8d   :  { %v1226_v19 = vpop.xlane.xlu0 %1225 }
0x1b8e   :  { %v1237_v40 = vmul.f32 0.03125, %v1226_v19  ;;  %v1220_v43 = vmul.f32 %v1215_v46, %v1215_v46 }
0x1b90   :  { %v1242_v44 = vadd.f32 1e-05, %v1237_v40  ;;  %v1233_v45 = vsel %vm55_vm0, %v1220_v43, 0.0 }
0x1b91   :  { %1234 = vadd.xlane.f32.xlu1 %v1233_v45 }
0x1b92   :  { %1757 = vrsqrt.f32 %v1242_v44 }
0x1b9f   :  { %v1758_v47 = vpop.eup %1757 }
0x1ba0   :  { %v1252_v48 = vmul.f32 %v1758_v47, %v1212_v31 }
0x1ba2   :  { %v1263_v28 = vmul.f32 %v1438_v35, %v1252_v48 }
0x1ba4   :  { %v1274_v32 = vadd.f32 %v1439_v63, %v1263_v28 }
0x1ba6   :  { %1639 = vmatmul.mubr.msk.f32.gmra.mxu1 %vm55_vm0, %v1274_v32 }
0x1ba7   :  { %v1229_v49 = vpop.xlane.xlu1 %1228  ;;  %1641 = vmatprep.mubr.msk.f32.mxu1 %vm1766_vm1, %v1765_v14 }
0x1ba8   :  { %v1238_v50 = vmul.f32 0.03125, %v1229_v49 }
0x1baa   :  { %v1243_v51 = vadd.f32 1e-05, %v1238_v50 }
0x1bab   :  { %v1232_v53 = vpop.xlane.xlu0 %1231 }
0x1bac   :  { %1759 = vrsqrt.f32 %v1243_v51  ;;  %v1239_v54 = vmul.f32 0.03125, %v1232_v53 }
0x1bae   :  { %v1244_v55 = vadd.f32 1e-05, %v1239_v54 }
0x1bb0   :  { %1761 = vrsqrt.f32 %v1244_v55 }
0x1bb9   :  { %v1760_v56 = vpop.eup %1759 }
0x1bba   :  { %v1253_v57 = vmul.f32 %v1760_v56, %v1213_v24 }
0x1bbc   :  { %v1264_v58 = vmul.f32 %v1438_v35, %v1253_v57 }
0x1bbd   :  { %v1762_v59 = vpop.eup %1761 }
0x1bbe   :  { %v1275_v60 = vadd.f32 %v1439_v63, %v1264_v58  ;;  %v1254_v61 = vmul.f32 %v1762_v59, %v1214_v27 }
0x1bc0   :  { %1642 = vmatmul.mubr.msk.f32.gmra.mxu1 %vm55_vm0, %v1275_v60  ;;  %v1265_v62 = vmul.f32 %v1438_v35, %v1254_v61 }
0x1bc1   :  { %1644 = vmatprep.mubr.msk.f32.mxu1 %vm1766_vm1, %v1765_v14 }
0x1bc2   :  { %v1276_v0 = vadd.f32 %v1439_v63, %v1265_v62 }
0x1bc4   :  { %1645 = vmatmul.mubr.msk.f32.gmra.mxu1 %vm55_vm0, %v1276_v0 }
0x1bc5   :  { %1647 = vmatprep.mubr.msk.f32.mxu1 %vm1766_vm1, %v1765_v14 }
0x1bfd   :  { %v1363_v1 = vpop.f32.mrf.mxu1 }
0x1bfe   :  { %1387 = vst [vmem:[%s2243_s14] sm:$0xff] %v1363_v1 }
0x1bff   :  { %v1637_v3 = vpop.f32.mrf.mxu1 }
0x1c1a   :  { %v1235_v4 = vpop.xlane.xlu1 %1234 }
0x1c1b   :  { %v1240_v5 = vmul.f32 0.03125, %v1235_v4 }
0x1c1d   :  { %v1245_v6 = vadd.f32 1e-05, %v1240_v5 }
0x1c1f   :  { %1763 = vrsqrt.f32 %v1245_v6 }
0x1c2c   :  { %v1764_v7 = vpop.eup %1763 }
0x1c2d   :  { %v1255_v8 = vmul.f32 %v1764_v7, %v1215_v46 }
0x1c2f   :  { %v1266_v42 = vmul.f32 %v1438_v35, %v1255_v8 }
0x1c31   :  { %v1277_v17 = vadd.f32 %v1439_v63, %v1266_v42 }
0x1c33   :  { %1648 = vmatmul.mubr.msk.f32.gmra.mxu1 %vm55_vm0, %v1277_v17 }
0x1c66   :  { %v1368_v31 = vpop.f32.mrf.mxu1 }
0x1c67   :  { %1388 = vst [vmem:[%s2243_s14 + $0x8] sm:$0xff] %v1368_v31 }
0x1c68   :  { %v1640_v14 = vpop.f32.mrf.mxu1 }
0x1c80   :  { %v1373_v15 = vpop.f32.mrf.mxu1 }
0x1c81   :  { %1389 = vst [vmem:[%s2243_s14 + $0x10] sm:$0xff] %v1373_v15 }
0x1c82   :  { %v1643_v10 = vpop.f32.mrf.mxu1 }
0x1c84   :  { %v1378_v11 = vpop.f32.mrf.mxu1 }
0x1c85   :  { %1390 = vst [vmem:[%s2243_s14 + $0x18] sm:$0xff] %v1378_v11 }
0x1c86   :  { %v1646_v12 = vpop.f32.mrf.mxu1 }
0x1cf3   :  { %v1383_v13 = vpop.f32.mrf.mxu1 }
0x1cf4   :  { %1391 = vst [vmem:[%s2243_s14 + $0x20] sm:$0xff] %v1383_v13 }
0x1cf5   :  { %v1649_v16 = vpop.f32.mrf.mxu1 }

// kernel: model_forward.3
= control target key start
LH: loop header
LB: loop body
LE: loop exit
PB: predicated region body
PF: predicated region fallthrough
CT: control target
= control target key end

     0   :  { %s5441_s18 = smov 0   ;;  %s6841_s0 = inlined_call_operand.vmem [shape: bf16[2,399,10], index: 0, kind: input, shape index: {}]   ;;  %s6842_s1 = inlined_call_operand.vmem [shape: bf16[10,16], index: 1, kind: input, shape index: {}]   ;;  %s6843_s2 = inlined_call_operand.vmem [shape: bf16[48,16], index: 2, kind: input, shape index: {}]   ;;  %s6844_s3 = inlined_call_operand.vmem [shape: bf16[48,16], index: 3, kind: input, shape index: {}]   ;;  %s6845_s4 = inlined_call_operand.vmem [shape: bf16[48,16], index: 4, kind: input, shape index: {}]   ;;  %s6846_s5 = inlined_call_operand.vmem [shape: bf16[48,16], index: 5, kind: input, shape index: {}]   ;;  %s6847_s6 = inlined_call_operand.vmem [shape: bf16[32,16], index: 6, kind: input, shape index: {}]   ;;  %s6848_s7 = inlined_call_operand.vmem [shape: bf16[32,16], index: 7, kind: input, shape index: {}]   ;;  %s6849_s8 = inlined_call_operand.vmem [shape: f32[1,16], index: 8, kind: input, shape index: {}]   ;;  %s6850_s9 = inlined_call_operand.vmem [shape: f32[1,16], index: 9, kind: input, shape index: {}]   ;;  %s6851_s10 = inlined_call_operand.vmem [shape: bf16[16,32], index: 10, kind: input, shape index: {}]   ;;  %s6852_s11 = inlined_call_operand.vmem [shape: f32[1,32], index: 11, kind: input, shape index: {}]   ;;  %s6853_s12 = inlined_call_operand.vmem [shape: f32[2,8,128], index: 12, kind: input, shape index: {}]   ;;  %s6854_s13 = inlined_call_operand.vmem [shape: bf16[32,128], index: 13, kind: input, shape index: {}]   ;;  %s6855_s14 = inlined_call_operand.vmem [shape: f32[1,128], index: 14, kind: input, shape index: {}]   ;;  %s6856_s15 = inlined_call_operand.vmem [shape: f32[2,48,128], index: 15, kind: output, shape index: {}]  }
   0x1 LB: > { %s4337_s19 = sadd.s32 4294967295, %s5356_s18   ;;  %p4341_p0 = scmp.ge.s32.totalorder %s5356_s18, 1  ;;  %s5356_s18 = sphi %s5441_s18, %s25_s18  }
   0x2   : > { %p446_p1 = scmp.lt.s32.totalorder %s5356_s18, 3 }
   0x4   : > { %p447_p2 = pnand %p4341_p0, %p446_p1 }
   0x5   : > { %p498_p3 = scmp.lt.s32.totalorder (!%p447_p2), %s4337_s19, 1 }
   0x6   : > { %450 = sbr.rel (%p447_p2) target bundleno = 2809 (0xaf9), region = 80 }
   0xb   : > { %vm771_vm0 = vcmask 1044480   ;;  %v5358_v0 = vmov 0.0   ;;  %v5101_v1 = vld [vmem:[%s6842_s1] sm:$0x1f]   ;;  %vm5359_vm1 = vmmov 0   ;;  %s6858_s19 = smov (!%p498_p3, %s4337_s19), 1 }
   0xc   : > { %4638 = vmatprep.subr.bf16.mxu0 %v5358_v0  ;;  %5086 = vmatprep.subr.bf16.mxu1 %v5358_v0  ;;  %v773_v2 = vsel %vm771_vm0, %v5101_v1, 0  ;;  %s5088_s22 = smul.u32 200, %s6858_s19  ;;  %vm695_vm2 = vcmask 80896   ;;  %v5127_v18 = vld [vmem:[%s6843_s2 + $0x8] sm:$0xff]   ;;  %vm1458_vm3 = vcmask 130048   ;;  %vm1508_vm4 = vcmask 129024  }
   0xd   : > { %4640 = vmatprep.mubr.msk.bf16.mxu0 %vm5359_vm1, %v5358_v0  ;;  %4746 = vmatprep.mubr.msk.bf16.mxu1 %vm5359_vm1, %v5358_v0  ;;  %vm3113_vm5 = vcmask 124928   ;;  %vm3496_vm6 = vcmask 122880   ;;  %vm3872_vm7 = vcmask 125952   ;;  %vm3992_vm8 = vcmask 128000   ;;  %s4343_s16 = sshll.u32 %s6858_s19, 3 }
   0xe   : > { %4639 = vmatpush3.bf16.msra.mxu0 %v773_v2  ;;  %s5465_s25 = scalar_lea.vmem %s6841_s0, %s5088_s22  ;;  %5087 = vmatpush3.bf16.msra.mxu1 %v5127_v18  ;;  %s506_s21 = scalar_lea.vmem %s6853_s12, %s4343_s16  ;;  %vm4197_vm9 = vcmask 261120  }
   0xf   : > { %4740 = vmatprep.subr.bf16.mxu0 %v5358_v0  ;;  %v5102_v3 = vld [vmem:[%s5465_s25] sm:$0xff]   ;;  %v5103_v4 = vld [vmem:[%s5465_s25 + $0x8] sm:$0xff]   ;;  %v5104_v5 = vld [vmem:[%s5465_s25 + $0x10] sm:$0xff]   ;;  %4794 = vmatprep.subr.bf16.mxu1 %v5358_v0  ;;  %s5089_s22 = smul.u32 48, %s6858_s19 }
  0x10   : > { %v5105_v6 = vld [vmem:[%s5465_s25 + $0x18] sm:$0xff]   ;;  %v5106_v7 = vld [vmem:[%s5465_s25 + $0x20] sm:$0xff]   ;;  %v5107_v8 = vld [vmem:[%s5465_s25 + $0x28] sm:$0xff]  }
  0x11   : > { %4641 = vmatmul.mubr.msk.bf16.vlgmr.msra.gmra.mxu0 %vm695_vm2, %v5102_v3  ;;  %v5108_v9 = vld [vmem:[%s5465_s25 + $0x30] sm:$0xff]   ;;  %v5109_v10 = vld [vmem:[%s5465_s25 + $0x38] sm:$0xff]   ;;  %v5110_v11 = vld [vmem:[%s5465_s25 + $0x40] sm:$0xff]   ;;  %s511_s27 = scalar_lea.vmem %s6856_s15, %s5089_s22 }
  0x12   : > { %4644 = vmatprep.mubr.msk.bf16.mxu0 %vm5359_vm1, %v5358_v0  ;;  %v5111_v12 = vld [vmem:[%s5465_s25 + $0x48] sm:$0xff]   ;;  %v5112_v13 = vld [vmem:[%s5465_s25 + $0x50] sm:$0xff]   ;;  %v5113_v14 = vld [vmem:[%s5465_s25 + $0x58] sm:$0xff]   ;;  %4741 = vmatpush3.bf16.msra.mxu0 %v5127_v18 }
  0x13   : > { %v5114_v15 = vld [vmem:[%s5465_s25 + $0x60] sm:$0xff]   ;;  %v5115_v16 = vld [vmem:[%s5465_s25 + $0x68] sm:$0xff]   ;;  %v5116_v17 = vld [vmem:[%s5465_s25 + $0x70] sm:$0xff]   ;;  %4848 = vmatprep.subr.bf16.mxu0 %v5358_v0 }
  0x14   : > { %v5117_v19 = vld [vmem:[%s5465_s25 + $0x78] sm:$0xff]   ;;  %v5118_v20 = vld [vmem:[%s5465_s25 + $0x80] sm:$0xff]   ;;  %v5119_v21 = vld [vmem:[%s5465_s25 + $0x88] sm:$0xff]  }
  0x15   : > { %v5120_v22 = vld [vmem:[%s5465_s25 + $0x90] sm:$0xff]   ;;  %v5121_v23 = vld [vmem:[%s5465_s25 + $0x98] sm:$0xff]   ;;  %v5122_v24 = vld [vmem:[%s5465_s25 + $0xa0] sm:$0xff]  }
  0x16   : > { %v5123_v25 = vld [vmem:[%s5465_s25 + $0xa8] sm:$0xff]   ;;  %v5124_v26 = vld [vmem:[%s5465_s25 + $0xb0] sm:$0xff]   ;;  %v5125_v27 = vld [vmem:[%s5465_s25 + $0xb8] sm:$0xff]  }
  0x17   : > { %v5126_v28 = vld [vmem:[%s5465_s25 + $0xc0] sm:$0xff]  }
  0x19   : > { %4645 = vmatmul.mubr.msk.bf16.gmra.mxu0 %vm695_vm2, %v5103_v4 }
  0x1a   : > { %4648 = vmatprep.mubr.msk.bf16.mxu0 %vm5359_vm1, %v5358_v0 }
  0x21   : > { %4649 = vmatmul.mubr.msk.bf16.gmra.mxu0 %vm695_vm2, %v5104_v5 }
  0x22   : > { %4652 = vmatprep.mubr.msk.bf16.mxu0 %vm5359_vm1, %v5358_v0 }
  0x29   : > { %4653 = vmatmul.mubr.msk.bf16.gmra.mxu0 %vm695_vm2, %v5105_v6 }
  0x2a   : > { %4656 = vmatprep.mubr.msk.bf16.mxu0 %vm5359_vm1, %v5358_v0 }
  0x31   : > { %4657 = vmatmul.mubr.msk.bf16.gmra.mxu0 %vm695_vm2, %v5106_v7 }
  0x32   : > { %4660 = vmatprep.mubr.msk.bf16.mxu0 %vm5359_vm1, %v5358_v0 }
  0x39   : > { %4661 = vmatmul.mubr.msk.bf16.gmra.mxu0 %vm695_vm2, %v5107_v8 }
  0x3a   : > { %4664 = vmatprep.mubr.msk.bf16.mxu0 %vm5359_vm1, %v5358_v0 }
  0x41   : > { %4665 = vmatmul.mubr.msk.bf16.gmra.mxu0 %vm695_vm2, %v5108_v9 }
  0x42   : > { %4668 = vmatprep.mubr.msk.bf16.mxu0 %vm5359_vm1, %v5358_v0 }
  0x49   : > { %4669 = vmatmul.mubr.msk.bf16.gmra.mxu0 %vm695_vm2, %v5109_v10 }
  0x4a   : > { %4672 = vmatprep.mubr.msk.bf16.mxu0 %vm5359_vm1, %v5358_v0 }
  0x51   : > { %4673 = vmatmul.mubr.msk.bf16.gmra.mxu0 %vm695_vm2, %v5110_v11 }
  0x52   : > { %4676 = vmatprep.mubr.msk.bf16.mxu0 %vm5359_vm1, %v5358_v0 }
  0x59   : > { %4677 = vmatmul.mubr.msk.bf16.gmra.mxu0 %vm695_vm2, %v5111_v12 }
  0x5a   : > { %4680 = vmatprep.mubr.msk.bf16.mxu0 %vm5359_vm1, %v5358_v0 }
  0x61   : > { %4681 = vmatmul.mubr.msk.bf16.gmra.mxu0 %vm695_vm2, %v5112_v13 }
  0x62   : > { %4684 = vmatprep.mubr.msk.bf16.mxu0 %vm5359_vm1, %v5358_v0 }
  0x69   : > { %4685 = vmatmul.mubr.msk.bf16.gmra.mxu0 %vm695_vm2, %v5113_v14 }
  0x6a   : > { %4688 = vmatprep.mubr.msk.bf16.mxu0 %vm5359_vm1, %v5358_v0 }
  0x71   : > { %4689 = vmatmul.mubr.msk.bf16.gmra.mxu0 %vm695_vm2, %v5114_v15 }
  0x72   : > { %4692 = vmatprep.mubr.msk.bf16.mxu0 %vm5359_vm1, %v5358_v0 }
  0x79   : > { %4693 = vmatmul.mubr.msk.bf16.gmra.mxu0 %vm695_vm2, %v5115_v16 }
  0x7a   : > { %4696 = vmatprep.mubr.msk.bf16.mxu0 %vm5359_vm1, %v5358_v0 }
  0x81   : > { %4697 = vmatmul.mubr.msk.bf16.gmra.mxu0 %vm695_vm2, %v5116_v17 }
  0x82   : > { %4700 = vmatprep.mubr.msk.bf16.mxu0 %vm5359_vm1, %v5358_v0 }
  0x89   : > { %4701 = vmatmul.mubr.msk.bf16.gmra.mxu0 %vm695_vm2, %v5117_v19 }
  0x8a   : > { %4704 = vmatprep.mubr.msk.bf16.mxu0 %vm5359_vm1, %v5358_v0 }
  0x91   : > { %4705 = vmatmul.mubr.msk.bf16.gmra.mxu0 %vm695_vm2, %v5118_v20 }
  0x92   : > { %4708 = vmatprep.mubr.msk.bf16.mxu0 %vm5359_vm1, %v5358_v0 }
  0x99   : > { %4709 = vmatmul.mubr.msk.bf16.gmra.mxu0 %vm695_vm2, %v5119_v21 }
  0x9a   : > { %4712 = vmatprep.mubr.msk.bf16.mxu0 %vm5359_vm1, %v5358_v0 }
  0xa1   : > { %4713 = vmatmul.mubr.msk.bf16.gmra.mxu0 %vm695_vm2, %v5120_v22 }
  0xa2   : > { %4716 = vmatprep.mubr.msk.bf16.mxu0 %vm5359_vm1, %v5358_v0 }
  0xa9   : > { %4717 = vmatmul.mubr.msk.bf16.gmra.mxu0 %vm695_vm2, %v5121_v23 }
  0xaa   : > { %4720 = vmatprep.mubr.msk.bf16.mxu0 %vm5359_vm1, %v5358_v0 }
  0xb1   : > { %4721 = vmatmul.mubr.msk.bf16.gmra.mxu0 %vm695_vm2, %v5122_v24 }
  0xb2   : > { %4724 = vmatprep.mubr.msk.bf16.mxu0 %vm5359_vm1, %v5358_v0 }
  0xb9   : > { %4725 = vmatmul.mubr.msk.bf16.gmra.mxu0 %vm695_vm2, %v5123_v25 }
  0xba   : > { %4728 = vmatprep.mubr.msk.bf16.mxu0 %vm5359_vm1, %v5358_v0 }
  0xc1   : > { %4729 = vmatmul.mubr.msk.bf16.gmra.mxu0 %vm695_vm2, %v5124_v26 }
  0xc2   : > { %4732 = vmatprep.mubr.msk.bf16.mxu0 %vm5359_vm1, %v5358_v0 }
  0xc9   : > { %4733 = vmatmul.mubr.msk.bf16.gmra.mxu0 %vm695_vm2, %v5125_v27 }
  0xca   : > { %4736 = vmatprep.mubr.msk.bf16.mxu0 %vm5359_vm1, %v5358_v0 }
  0xd1   : > { %v809_v29 = vpop.f32.mrf.mxu0  ;;  %4737 = vmatmul.mubr.msk.bf16.gmra.mxu0 %vm695_vm2, %v5126_v28 }
  0xd2   : > { %v1008_v30 = vmul.f32 %v809_v29, %v809_v29  ;;  %4742 = vmatprep.mubr.msk.bf16.mxu0 %vm5359_vm1, %v5358_v0 }
  0xd3   : > { %v4642_v31 = vpop.f32.mrf.mxu0 }
  0xd4   : > { %v1058_v32 = vmul.f32 %v1008_v30, %v809_v29 }
  0xd5   : > { %v5572_v33 = vpop.f32.mrf.mxu0 }
  0xd6   : > { %v1108_v34 = vmul.f32 0.044715, %v1058_v32  ;;  %v1009_v35 = vmul.f32 %v5572_v33, %v5572_v33 }
  0xd7   : > { %v4643_v36 = vpop.f32.mrf.mxu0 }
  0xd8   : > { %v1158_v37 = vadd.f32 %v1108_v34, %v809_v29  ;;  %v1059_v38 = vmul.f32 %v1009_v35, %v5572_v33 }
  0xd9   : > { %v5577_v39 = vpop.f32.mrf.mxu0 }
  0xda   : > { %v1208_v40 = vmul.f32 0.7978846, %v1158_v37  ;;  %v1109_v41 = vmul.f32 0.044715, %v1059_v38  ;;  %v1010_v42 = vmul.f32 %v5577_v39, %v5577_v39 }
  0xdb   : > { %v4646_v43 = vpop.f32.mrf.mxu0 }
  0xdc   : > { %5146 = vtanh.f32 %v1208_v40  ;;  %v1159_v44 = vadd.f32 %v1109_v41, %v5572_v33  ;;  %v1060_v45 = vmul.f32 %v1010_v42, %v5577_v39 }
  0xdd   : > { %v5583_v46 = vpop.f32.mrf.mxu0 }
  0xde   : > { %v1209_v47 = vmul.f32 0.7978846, %v1159_v44  ;;  %v1110_v48 = vmul.f32 0.044715, %v1060_v45  ;;  %v1011_v49 = vmul.f32 %v5583_v46, %v5583_v46 }
  0xdf   : > { %v4647_v50 = vpop.f32.mrf.mxu0 }
  0xe0   : > { %5148 = vtanh.f32 %v1209_v47  ;;  %v1160_v51 = vadd.f32 %v1110_v48, %v5577_v39  ;;  %v1061_v52 = vmul.f32 %v1011_v49, %v5583_v46 }
  0xe1   : > { %v5589_v53 = vpop.f32.mrf.mxu0 }
  0xe2   : > { %v1210_v54 = vmul.f32 0.7978846, %v1160_v51  ;;  %v1111_v55 = vmul.f32 0.044715, %v1061_v52  ;;  %v1012_v56 = vmul.f32 %v5589_v53, %v5589_v53 }
  0xe3   : > { %v4650_v57 = vpop.f32.mrf.mxu0 }
  0xe4   : > { %5150 = vtanh.f32 %v1210_v54  ;;  %v1161_v58 = vadd.f32 %v1111_v55, %v5583_v46  ;;  %v1062_v59 = vmul.f32 %v1012_v56, %v5589_v53 }
  0xe5   : > { %v5595_v60 = vpop.f32.mrf.mxu0 }
  0xe6   : > { %v1211_v61 = vmul.f32 0.7978846, %v1161_v58  ;;  %v1112_v62 = vmul.f32 0.044715, %v1062_v59  ;;  %v1013_v63 = vmul.f32 %v5595_v60, %v5595_v60 }
  0xe7   : > { %v4651_v1 = vpop.f32.mrf.mxu0 }
  0xe8   : > { %5152 = vtanh.f32 %v1211_v61  ;;  %v1162_v2 = vadd.f32 %v1112_v62, %v5589_v53  ;;  %v1063_v3 = vmul.f32 %v1013_v63, %v5595_v60 }
  0xe9   : > { %v5147_v4 = vpop.eup %5146  ;;  %v5601_v5 = vpop.f32.mrf.mxu0 }
  0xea   : > { %v1308_v6 = vadd.f32 1.0, %v5147_v4  ;;  %v1212_v7 = vmul.f32 0.7978846, %v1162_v2  ;;  %v1113_v8 = vmul.f32 0.044715, %v1063_v3  ;;  %v1014_v9 = vmul.f32 %v5601_v5, %v5601_v5 }
  0xeb   : > { %v4654_v10 = vpop.f32.mrf.mxu0 }
  0xec   : > { %v1358_v11 = vmul.f32 0.5, %v1308_v6  ;;  %5154 = vtanh.f32 %v1212_v7  ;;  %v1163_v12 = vadd.f32 %v1113_v8, %v5595_v60  ;;  %v1064_v13 = vmul.f32 %v1014_v9, %v5601_v5 }
  0xed   : > { %v5149_v14 = vpop.eup %5148  ;;  %v5607_v15 = vpop.f32.mrf.mxu0 }
  0xee   : > { %v1408_v16 = vmul.f32 %v1358_v11, %v809_v29  ;;  %v1309_v17 = vadd.f32 1.0, %v5149_v14  ;;  %v1213_v18 = vmul.f32 0.7978846, %v1163_v12  ;;  %v1114_v19 = vmul.f32 0.044715, %v1064_v13  ;;  %v5128_v14 = vld [vmem:[%s6843_s2 + $0x10] sm:$0xff]  }
  0xef   : > { %v1015_v20 = vmul.f32 %v5607_v15, %v5607_v15  ;;  %v4655_v21 = vpop.f32.mrf.mxu0 }
  0xf0   : > { %1459 = vst.msk [vmem:[#allocation2] sm:$0xff] %vm1458_vm3, %v1408_v16  ;;  %v1359_v22 = vmul.f32 0.5, %v1309_v17  ;;  %5156 = vtanh.f32 %v1213_v18  ;;  %v1164_v23 = vadd.f32 %v1114_v19, %v5601_v5 }
  0xf1   : > { %v5151_v24 = vpop.eup %5150  ;;  %v1065_v25 = vmul.f32 %v1015_v20, %v5607_v15  ;;  %v5614_v26 = vpop.f32.mrf.mxu0 }
  0xf2   : > { %v1409_v27 = vmul.f32 %v1359_v22, %v5572_v33  ;;  %v1310_v28 = vadd.f32 1.0, %v5151_v24  ;;  %v1214_v29 = vmul.f32 0.7978846, %v1164_v23  ;;  %v1016_v30 = vmul.f32 %v5614_v26, %v5614_v26 }
  0xf3   : > { %v1115_v31 = vmul.f32 0.044715, %v1065_v25  ;;  %v4658_v32 = vpop.f32.mrf.mxu0 }
  0xf4   : > { %1460 = vst.msk [vmem:[#allocation2 + $0x8] sm:$0xff] %vm1458_vm3, %v1409_v27  ;;  %v1360_v34 = vmul.f32 0.5, %v1310_v28  ;;  %5158 = vtanh.f32 %v1214_v29  ;;  %v1066_v35 = vmul.f32 %v1016_v30, %v5614_v26 }
  0xf5   : > { %v5153_v36 = vpop.eup %5152  ;;  %v1165_v37 = vadd.f32 %v1115_v31, %v5607_v15  ;;  %v5622_v38 = vpop.f32.mrf.mxu0 }
  0xf6   : > { %v1410_v33 = vmul.f32 %v1360_v34, %v5577_v39  ;;  %v1311_v40 = vadd.f32 1.0, %v5153_v36  ;;  %v1116_v41 = vmul.f32 0.044715, %v1066_v35  ;;  %v1017_v42 = vmul.f32 %v5622_v38, %v5622_v38 }
  0xf7   : > { %v1215_v43 = vmul.f32 0.7978846, %v1165_v37  ;;  %v4659_v44 = vpop.f32.mrf.mxu0 }
  0xf8   : > { %1461 = vst.msk [vmem:[#allocation2 + $0x10] sm:$0xff] %vm1458_vm3, %v1410_v33  ;;  %v1361_v45 = vmul.f32 0.5, %v1311_v40  ;;  %v1166_v47 = vadd.f32 %v1116_v41, %v5614_v26  ;;  %v1067_v48 = vmul.f32 %v1017_v42, %v5622_v38 }
  0xf9   : > { %v5155_v49 = vpop.eup %5154  ;;  %5160 = vtanh.f32 %v1215_v43  ;;  %v5630_v50 = vpop.f32.mrf.mxu0 }
  0xfa   : > { %v1411_v39 = vmul.f32 %v1361_v45, %v5583_v46  ;;  %v1312_v51 = vadd.f32 1.0, %v5155_v49  ;;  %v1216_v52 = vmul.f32 0.7978846, %v1166_v47  ;;  %v1117_v54 = vmul.f32 0.044715, %v1067_v48 }
  0xfb   : > { %v1018_v55 = vmul.f32 %v5630_v50, %v5630_v50  ;;  %v4662_v56 = vpop.f32.mrf.mxu0  ;;  %v1575_v18 = vld [vmem:[#allocation2 + $0x1] ss:$2 sm:$0xff] }
  0xfc   : > { %1462 = vst.msk [vmem:[#allocation2 + $0x18] sm:$0xff] %vm1458_vm3, %v1411_v39  ;;  %v1362_v57 = vmul.f32 0.5, %v1312_v51  ;;  %5162 = vtanh.f32 %v1216_v52  ;;  %v1167_v58 = vadd.f32 %v1117_v54, %v5622_v38 }
  0xfd   : > { %v5157_v59 = vpop.eup %5156  ;;  %v1068_v61 = vmul.f32 %v1018_v55, %v5630_v50  ;;  %v5638_v62 = vpop.f32.mrf.mxu0 }
  0xfe   : > { %v1412_v46 = vmul.f32 %v1362_v57, %v5589_v53  ;;  %v1313_v63 = vadd.f32 1.0, %v5157_v59  ;;  %v1217_v1 = vmul.f32 0.7978846, %v1167_v58  ;;  %v1019_v2 = vmul.f32 %v5638_v62, %v5638_v62 }
  0xff   : > { %v1118_v3 = vmul.f32 0.044715, %v1068_v61  ;;  %v4663_v4 = vpop.f32.mrf.mxu0  ;;  %v2002_v33 = vld [vmem:[#allocation2 + $0x2] ss:$2 sm:$0xff] }
 0x100   : > { %1463 = vst.msk [vmem:[#allocation2 + $0x20] sm:$0xff] %vm1458_vm3, %v1412_v46  ;;  %v1363_v6 = vmul.f32 0.5, %v1313_v63  ;;  %5164 = vtanh.f32 %v1217_v1  ;;  %v1069_v7 = vmul.f32 %v1019_v2, %v5638_v62 }
 0x101   : > { %v5159_v8 = vpop.eup %5158  ;;  %v1168_v9 = vadd.f32 %v1118_v3, %v5630_v50  ;;  %v5646_v10 = vpop.f32.mrf.mxu0 }
 0x102   : > { %v1413_v53 = vmul.f32 %v1363_v6, %v5595_v60  ;;  %v1314_v11 = vadd.f32 1.0, %v5159_v8  ;;  %v1119_v12 = vmul.f32 0.044715, %v1069_v7  ;;  %v1020_v13 = vmul.f32 %v5646_v10, %v5646_v10 }
 0x103   : > { %v1218_v16 = vmul.f32 0.7978846, %v1168_v9  ;;  %v4666_v17 = vpop.f32.mrf.mxu0  ;;  %v1577_v19 = vld [vmem:[#allocation2 + $0x11] ss:$2 sm:$0xff] }
 0x104   : > { %1464 = vst.msk [vmem:[#allocation2 + $0x28] sm:$0xff] %vm1458_vm3, %v1413_v53  ;;  %v1364_v20 = vmul.f32 0.5, %v1314_v11  ;;  %v1169_v21 = vadd.f32 %v1119_v12, %v5638_v62  ;;  %v1070_v60 = vmul.f32 %v1020_v13, %v5646_v10  ;;  %v1626_v22 = vpack.c.bf16 %v1577_v19, %v1575_v18  ;;  %v5129_v11 = vld [vmem:[%s6843_s2] sm:$0xff]  }
 0x105   : > { %5166 = vtanh.f32 %v1218_v16  ;;  %v5657_v23 = vpop.f32.mrf.mxu0 }
 0x106   : > { %v5161_v24 = vpop.eup %5160  ;;  %v1414_v25 = vmul.f32 %v1364_v20, %v5601_v5  ;;  %v1219_v27 = vmul.f32 0.7978846, %v1169_v21  ;;  %v1120_v28 = vmul.f32 0.044715, %v1070_v60  ;;  %v1021_v29 = vmul.f32 %v5657_v23, %v5657_v23  ;;  %4743 = vmatmul.mubr.msk.bf16.vlgmr.msra.gmra.mxu0 %vm1458_vm3, %v1626_v22 }
 0x107   : > { %v1315_v30 = vadd.f32 1.0, %v5161_v24  ;;  %v4667_v31 = vpop.f32.mrf.mxu0  ;;  %4849 = vmatpush3.bf16.msra.mxu0 %v5128_v14  ;;  %4850 = vmatprep.mubr.msk.bf16.mxu0 %vm5359_vm1, %v5358_v0  ;;  %v2004_v34 = vld [vmem:[#allocation2 + $0x12] ss:$2 sm:$0xff] }
 0x108   : > { %1465 = vst.msk [vmem:[#allocation2 + $0x30] sm:$0xff] %vm1458_vm3, %v1414_v25  ;;  %5168 = vtanh.f32 %v1219_v27  ;;  %v1170_v32 = vadd.f32 %v1120_v28, %v5646_v10  ;;  %v1071_v5 = vmul.f32 %v1021_v29, %v5657_v23  ;;  %4962 = vmatprep.subr.bf16.mxu0 %v5358_v0  ;;  %v2053_v47 = vpack.c.bf16 %v2004_v34, %v2002_v33 }
 0x109   : > { %v5163_v35 = vpop.eup %5162  ;;  %v1365_v36 = vmul.f32 0.5, %v1315_v30  ;;  %v5669_v37 = vpop.f32.mrf.mxu0 }
 0x10a   : > { %v1316_v40 = vadd.f32 1.0, %v5163_v35  ;;  %v1220_v41 = vmul.f32 0.7978846, %v1170_v32  ;;  %v1121_v42 = vmul.f32 0.044715, %v1071_v5  ;;  %v1022_v43 = vmul.f32 %v5669_v37, %v5669_v37 }
 0x10b   : > { %v1415_v44 = vmul.f32 %v1365_v36, %v5607_v15  ;;  %v4670_v45 = vpop.f32.mrf.mxu0  ;;  %v1579_v9 = vld [vmem:[#allocation2 + $0x21] ss:$2 sm:$0xff] }
 0x10c   : > { %v1366_v48 = vmul.f32 0.5, %v1316_v40  ;;  %5170 = vtanh.f32 %v1220_v41  ;;  %v1171_v49 = vadd.f32 %v1121_v42, %v5657_v23  ;;  %v1072_v39 = vmul.f32 %v1022_v43, %v5669_v37 }
 0x10d   : > { %v5165_v51 = vpop.eup %5164  ;;  %1466 = vst.msk [vmem:[#allocation2 + $0x38] sm:$0xff] %vm1458_vm3, %v1415_v44  ;;  %v5677_v52 = vpop.f32.mrf.mxu0 }
 0x10e   : > { %v1416_v54 = vmul.f32 %v1366_v48, %v5614_v26  ;;  %v1317_v55 = vadd.f32 1.0, %v5165_v51  ;;  %v1221_v56 = vmul.f32 0.7978846, %v1171_v49  ;;  %v1122_v57 = vmul.f32 0.044715, %v1072_v39  ;;  %4851 = vmatmul.mubr.msk.bf16.vlgmr.msra.gmra.mxu0 %vm1458_vm3, %v2053_v47 }
 0x10f   : > { %v1023_v15 = vmul.f32 %v5677_v52, %v5677_v52  ;;  %v4671_v58 = vpop.f32.mrf.mxu0  ;;  %4854 = vmatprep.mubr.msk.bf16.mxu0 %vm5359_vm1, %v5358_v0  ;;  %v2006_v22 = vld [vmem:[#allocation2 + $0x22] ss:$2 sm:$0xff] }
 0x110   : > { %1467 = vst.msk [vmem:[#allocation2 + $0x40] sm:$0xff] %vm1458_vm3, %v1416_v54  ;;  %v1367_v59 = vmul.f32 0.5, %v1317_v55  ;;  %5172 = vtanh.f32 %v1221_v56  ;;  %v1172_v61 = vadd.f32 %v1122_v57, %v5669_v37 }
 0x111   : > { %v1073_v26 = vmul.f32 %v1023_v15, %v5677_v52  ;;  %v5688_v46 = vpop.f32.mrf.mxu0 }
 0x112   : > { %v5167_v63 = vpop.eup %5166  ;;  %v1417_v1 = vmul.f32 %v1367_v59, %v5622_v38  ;;  %v1222_v2 = vmul.f32 0.7978846, %v1172_v61  ;;  %v1024_v3 = vmul.f32 %v5688_v46, %v5688_v46 }
 0x113   : > { %v1318_v4 = vadd.f32 1.0, %v5167_v63  ;;  %v1123_v6 = vmul.f32 0.044715, %v1073_v26  ;;  %v4674_v7 = vpop.f32.mrf.mxu0 }
 0x114   : > { %1468 = vst.msk [vmem:[#allocation2 + $0x48] sm:$0xff] %vm1458_vm3, %v1417_v1  ;;  %5174 = vtanh.f32 %v1222_v2  ;;  %v1074_v8 = vmul.f32 %v1024_v3, %v5688_v46  ;;  %v1581_v53 = vld [vmem:[#allocation2 + $0x31] ss:$2 sm:$0xff] }
 0x115   : > { %v5169_v12 = vpop.eup %5168  ;;  %v1368_v38 = vmul.f32 0.5, %v1318_v4  ;;  %v1173_v13 = vadd.f32 %v1123_v6, %v5677_v52  ;;  %v5699_v14 = vpop.f32.mrf.mxu0  ;;  %v1627_v16 = vpack.c.bf16 %v1581_v53, %v1579_v9 }
 0x116   : > { %v1319_v17 = vadd.f32 1.0, %v5169_v12  ;;  %v1124_v18 = vmul.f32 0.044715, %v1074_v8  ;;  %v1025_v19 = vmul.f32 %v5699_v14, %v5699_v14 }
 0x117   : > { %v1418_v20 = vmul.f32 %v1368_v38, %v5630_v50  ;;  %v1223_v21 = vmul.f32 0.7978846, %v1173_v13  ;;  %4747 = vmatmul.mubr.msk.bf16.vlgmr.msra.gmra.mxu1 %vm1458_vm3, %v1627_v16  ;;  %v4675_v60 = vpop.f32.mrf.mxu0  ;;  %v2008_v24 = vld [vmem:[#allocation2 + $0x32] ss:$2 sm:$0xff] }
 0x118   : > { %v1369_v25 = vmul.f32 0.5, %v1319_v17  ;;  %v1174_v27 = vadd.f32 %v1124_v18, %v5688_v46  ;;  %v1075_v28 = vmul.f32 %v1025_v19, %v5699_v14  ;;  %v2054_v29 = vpack.c.bf16 %v2008_v24, %v2006_v22  ;;  %4750 = vmatprep.mubr.msk.bf16.mxu1 %vm5359_vm1, %v5358_v0  ;;  %4795 = vmatpush3.bf16.msra.mxu1 %v5129_v11 }
 0x119   : > { %v5171_v30 = vpop.eup %5170  ;;  %1469 = vst.msk [vmem:[#allocation2 + $0x50] sm:$0xff] %vm1458_vm3, %v1418_v20  ;;  %5176 = vtanh.f32 %v1223_v21  ;;  %v5710_v50 = vpop.f32.mrf.mxu0  ;;  %4902 = vmatprep.subr.bf16.mxu1 %v5358_v0 }
 0x11a   : > { %v1419_v31 = vmul.f32 %v1369_v25, %v5638_v62  ;;  %v1320_v32 = vadd.f32 1.0, %v5171_v30  ;;  %v1224_v5 = vmul.f32 0.7978846, %v1174_v27  ;;  %v1125_v34 = vmul.f32 0.044715, %v1075_v28  ;;  %4855 = vmatmul.mubr.msk.bf16.gmra.mxu0 %vm1458_vm3, %v2054_v29 }
 0x11b   : > { %v1026_v35 = vmul.f32 %v5710_v50, %v5710_v50  ;;  %v4678_v36 = vpop.f32.mrf.mxu0  ;;  %4858 = vmatprep.mubr.msk.bf16.mxu0 %vm5359_vm1, %v5358_v0  ;;  %v1583_v26 = vld [vmem:[#allocation2 + $0x41] ss:$2 sm:$0xff] }
 0x11c   : > { %1470 = vst.msk [vmem:[#allocation2 + $0x58] sm:$0xff] %vm1458_vm3, %v1419_v31  ;;  %v1370_v33 = vmul.f32 0.5, %v1320_v32  ;;  %5178 = vtanh.f32 %v1224_v5  ;;  %v1175_v40 = vadd.f32 %v1125_v34, %v5699_v14 }
 0x11d   : > { %v5173_v41 = vpop.eup %5172  ;;  %v1076_v62 = vmul.f32 %v1026_v35, %v5710_v50  ;;  %v5722_v42 = vpop.f32.mrf.mxu0 }
 0x11e   : > { %v1420_v43 = vmul.f32 %v1370_v33, %v5646_v10  ;;  %v1321_v44 = vadd.f32 1.0, %v5173_v41  ;;  %v1225_v45 = vmul.f32 0.7978846, %v1175_v40  ;;  %v1027_v47 = vmul.f32 %v5722_v42, %v5722_v42 }
 0x11f   : > { %v1126_v48 = vmul.f32 0.044715, %v1076_v62  ;;  %v4679_v49 = vpop.f32.mrf.mxu0 }
 0x120   : > { %1471 = vst.msk [vmem:[#allocation2 + $0x60] sm:$0xff] %vm1458_vm3, %v1420_v43  ;;  %v1371_v39 = vmul.f32 0.5, %v1321_v44  ;;  %5180 = vtanh.f32 %v1225_v45  ;;  %v1077_v51 = vmul.f32 %v1027_v47, %v5722_v42  ;;  %v2010_v38 = vld [vmem:[#allocation2 + $0x42] ss:$2 sm:$0xff] }
 0x121   : > { %v5175_v54 = vpop.eup %5174  ;;  %v1176_v55 = vadd.f32 %v1126_v48, %v5710_v50  ;;  %v5730_v56 = vpop.f32.mrf.mxu0 }
 0x122   : > { %v1421_v10 = vmul.f32 %v1371_v39, %v5657_v23  ;;  %v1322_v57 = vadd.f32 1.0, %v5175_v54  ;;  %v1127_v15 = vmul.f32 0.044715, %v1077_v51  ;;  %v1028_v58 = vmul.f32 %v5730_v56, %v5730_v56 }
 0x123   : > { %v1226_v59 = vmul.f32 0.7978846, %v1176_v55  ;;  %v4682_v61 = vpop.f32.mrf.mxu0  ;;  %v1585_v63 = vld [vmem:[#allocation2 + $0x51] ss:$2 sm:$0xff] }
 0x124   : > { %1472 = vst.msk [vmem:[#allocation2 + $0x68] sm:$0xff] %vm1458_vm3, %v1421_v10  ;;  %v1372_v1 = vmul.f32 0.5, %v1322_v57  ;;  %v1177_v2 = vadd.f32 %v1127_v15, %v5722_v42  ;;  %v1078_v3 = vmul.f32 %v1028_v58, %v5730_v56  ;;  %v1628_v4 = vpack.c.bf16 %v1585_v63, %v1583_v26 }
 0x125   : > { %5182 = vtanh.f32 %v1226_v59  ;;  %v5738_v6 = vpop.f32.mrf.mxu0 }
 0x126   : > { %v5177_v23 = vpop.eup %5176  ;;  %v1422_v7 = vmul.f32 %v1372_v1, %v5669_v37  ;;  %v1227_v8 = vmul.f32 0.7978846, %v1177_v2  ;;  %v1128_v9 = vmul.f32 0.044715, %v1078_v3  ;;  %v1029_v53 = vmul.f32 %v5738_v6, %v5738_v6  ;;  %4751 = vmatmul.mubr.msk.bf16.gmra.mxu1 %vm1458_vm3, %v1628_v4 }
 0x127   : > { %v1323_v11 = vadd.f32 1.0, %v5177_v23  ;;  %v4683_v12 = vpop.f32.mrf.mxu0  ;;  %v2012_v13 = vld [vmem:[#allocation2 + $0x52] ss:$2 sm:$0xff]  ;;  %4754 = vmatprep.mubr.msk.bf16.mxu1 %vm5359_vm1, %v5358_v0 }
 0x128   : > { %1473 = vst.msk [vmem:[#allocation2 + $0x70] sm:$0xff] %vm1458_vm3, %v1422_v7  ;;  %5184 = vtanh.f32 %v1227_v8  ;;  %v1178_v16 = vadd.f32 %v1128_v9, %v5730_v56  ;;  %v1079_v37 = vmul.f32 %v1029_v53, %v5738_v6  ;;  %v2055_v17 = vpack.c.bf16 %v2012_v13, %v2010_v38 }
 0x129   : > { %v5179_v18 = vpop.eup %5178  ;;  %v1373_v19 = vmul.f32 0.5, %v1323_v11  ;;  %v5749_v20 = vpop.f32.mrf.mxu0 }
 0x12a   : > { %v1324_v21 = vadd.f32 1.0, %v5179_v18  ;;  %v1228_v60 = vmul.f32 0.7978846, %v1178_v16  ;;  %v1129_v22 = vmul.f32 0.044715, %v1079_v37  ;;  %v1030_v24 = vmul.f32 %v5749_v20, %v5749_v20  ;;  %4859 = vmatmul.mubr.msk.bf16.gmra.mxu0 %vm1458_vm3, %v2055_v17 }
 0x12b   : > { %v1423_v25 = vmul.f32 %v1373_v19, %v5677_v52  ;;  %v4686_v27 = vpop.f32.mrf.mxu0  ;;  %4862 = vmatprep.mubr.msk.bf16.mxu0 %vm5359_vm1, %v5358_v0  ;;  %v1587_v54 = vld [vmem:[#allocation2 + $0x61] ss:$2 sm:$0xff] }
 0x12c   : > { %v1374_v28 = vmul.f32 0.5, %v1324_v21  ;;  %5186 = vtanh.f32 %v1228_v60  ;;  %v1179_v29 = vadd.f32 %v1129_v22, %v5738_v6  ;;  %v1080_v30 = vmul.f32 %v1030_v24, %v5749_v20 }
 0x12d   : > { %v5181_v31 = vpop.eup %5180  ;;  %1474 = vst.msk [vmem:[#allocation2 + $0x78] sm:$0xff] %vm1458_vm3, %v1423_v25  ;;  %v5760_v32 = vpop.f32.mrf.mxu0 }
 0x12e   : > { %v1424_v5 = vmul.f32 %v1374_v28, %v5688_v46  ;;  %v1325_v34 = vadd.f32 1.0, %v5181_v31  ;;  %v1229_v35 = vmul.f32 0.7978846, %v1179_v29  ;;  %v1130_v52 = vmul.f32 0.044715, %v1080_v30 }
 0x12f   : > { %v1031_v36 = vmul.f32 %v5760_v32, %v5760_v32  ;;  %v4687_v33 = vpop.f32.mrf.mxu0  ;;  %v2014_v3 = vld [vmem:[#allocation2 + $0x62] ss:$2 sm:$0xff] }
 0x130   : > { %1475 = vst.msk [vmem:[#allocation2 + $0x80] sm:$0xff] %vm1458_vm3, %v1424_v5  ;;  %v1375_v40 = vmul.f32 0.5, %v1325_v34  ;;  %5188 = vtanh.f32 %v1229_v35  ;;  %v1180_v41 = vadd.f32 %v1130_v52, %v5749_v20 }
 0x131   : > { %v1081_v62 = vmul.f32 %v1031_v36, %v5760_v32  ;;  %v5768_v43 = vpop.f32.mrf.mxu0 }
 0x132   : > { %v5183_v44 = vpop.eup %5182  ;;  %v1425_v46 = vmul.f32 %v1375_v40, %v5699_v14  ;;  %v1230_v45 = vmul.f32 0.7978846, %v1180_v41  ;;  %v1032_v47 = vmul.f32 %v5768_v43, %v5768_v43 }
 0x133   : > { %v1326_v48 = vadd.f32 1.0, %v5183_v44  ;;  %v1131_v49 = vmul.f32 0.044715, %v1081_v62  ;;  %v4690_v39 = vpop.f32.mrf.mxu0 }
 0x134   : > { %1476 = vst.msk [vmem:[#allocation2 + $0x88] sm:$0xff] %vm1458_vm3, %v1425_v46  ;;  %5190 = vtanh.f32 %v1230_v45  ;;  %v1082_v51 = vmul.f32 %v1032_v47, %v5768_v43  ;;  %v1589_v55 = vld [vmem:[#allocation2 + $0x71] ss:$2 sm:$0xff] }
 0x135   : > { %v5185_v10 = vpop.eup %5184  ;;  %v1376_v57 = vmul.f32 0.5, %v1326_v48  ;;  %v1181_v15 = vadd.f32 %v1131_v49, %v5760_v32  ;;  %v5776_v58 = vpop.f32.mrf.mxu0  ;;  %v1629_v14 = vpack.c.bf16 %v1589_v55, %v1587_v54 }
 0x136   : > { %v1327_v59 = vadd.f32 1.0, %v5185_v10  ;;  %v1132_v61 = vmul.f32 0.044715, %v1082_v51  ;;  %v1033_v26 = vmul.f32 %v5776_v58, %v5776_v58 }
 0x137   : > { %v1426_v63 = vmul.f32 %v1376_v57, %v5710_v50  ;;  %v1231_v1 = vmul.f32 0.7978846, %v1181_v15  ;;  %4755 = vmatmul.mubr.msk.bf16.gmra.mxu1 %vm1458_vm3, %v1629_v14  ;;  %v4691_v2 = vpop.f32.mrf.mxu0  ;;  %v2016_v4 = vld [vmem:[#allocation2 + $0x72] ss:$2 sm:$0xff] }
 0x138   : > { %v1377_v23 = vmul.f32 0.5, %v1327_v59  ;;  %v1182_v7 = vadd.f32 %v1132_v61, %v5768_v43  ;;  %v1083_v8 = vmul.f32 %v1033_v26, %v5776_v58  ;;  %v2056_v9 = vpack.c.bf16 %v2016_v4, %v2014_v3  ;;  %4758 = vmatprep.mubr.msk.bf16.mxu1 %vm5359_vm1, %v5358_v0 }
 0x139   : > { %v5187_v53 = vpop.eup %5186  ;;  %1477 = vst.msk [vmem:[#allocation2 + $0x90] sm:$0xff] %vm1458_vm3, %v1426_v63  ;;  %5192 = vtanh.f32 %v1231_v1  ;;  %v5787_v50 = vpop.f32.mrf.mxu0 }
 0x13a   : > { %v1427_v11 = vmul.f32 %v1377_v23, %v5722_v42  ;;  %v1328_v12 = vadd.f32 1.0, %v5187_v53  ;;  %v1232_v38 = vmul.f32 0.7978846, %v1182_v7  ;;  %v1133_v13 = vmul.f32 0.044715, %v1083_v8  ;;  %4863 = vmatmul.mubr.msk.bf16.gmra.mxu0 %vm1458_vm3, %v2056_v9 }
 0x13b   : > { %v1034_v16 = vmul.f32 %v5787_v50, %v5787_v50  ;;  %v4694_v37 = vpop.f32.mrf.mxu0  ;;  %4866 = vmatprep.mubr.msk.bf16.mxu0 %vm5359_vm1, %v5358_v0  ;;  %v1591_v41 = vld [vmem:[#allocation2 + $0x81] ss:$2 sm:$0xff] }
 0x13c   : > { %1478 = vst.msk [vmem:[#allocation2 + $0x98] sm:$0xff] %vm1458_vm3, %v1427_v11  ;;  %v1378_v17 = vmul.f32 0.5, %v1328_v12  ;;  %5194 = vtanh.f32 %v1232_v38  ;;  %v1183_v18 = vadd.f32 %v1133_v13, %v5776_v58 }
 0x13d   : > { %v5189_v19 = vpop.eup %5188  ;;  %v1084_v42 = vmul.f32 %v1034_v16, %v5787_v50  ;;  %v5798_v21 = vpop.f32.mrf.mxu0 }
 0x13e   : > { %v1428_v60 = vmul.f32 %v1378_v17, %v5730_v56  ;;  %v1329_v22 = vadd.f32 1.0, %v5189_v19  ;;  %v1233_v24 = vmul.f32 0.7978846, %v1183_v18  ;;  %v1035_v25 = vmul.f32 %v5798_v21, %v5798_v21 }
 0x13f   : > { %v1134_v27 = vmul.f32 0.044715, %v1084_v42  ;;  %v4695_v28 = vpop.f32.mrf.mxu0 }
 0x140   : > { %1479 = vst.msk [vmem:[#allocation2 + $0xa0] sm:$0xff] %vm1458_vm3, %v1428_v60  ;;  %v1379_v29 = vmul.f32 0.5, %v1329_v22  ;;  %5196 = vtanh.f32 %v1233_v24  ;;  %v1085_v30 = vmul.f32 %v1035_v25, %v5798_v21  ;;  %v2018_v57 = vld [vmem:[#allocation2 + $0x82] ss:$2 sm:$0xff] }
 0x141   : > { %v5191_v31 = vpop.eup %5190  ;;  %v1184_v5 = vadd.f32 %v1134_v27, %v5787_v50  ;;  %v5806_v34 = vpop.f32.mrf.mxu0 }
 0x142   : > { %v1429_v56 = vmul.f32 %v1379_v29, %v5738_v6  ;;  %v1330_v35 = vadd.f32 1.0, %v5191_v31  ;;  %v1135_v52 = vmul.f32 0.044715, %v1085_v30  ;;  %v1036_v36 = vmul.f32 %v5806_v34, %v5806_v34 }
 0x143   : > { %v1234_v33 = vmul.f32 0.7978846, %v1184_v5  ;;  %v4698_v40 = vpop.f32.mrf.mxu0  ;;  %v1593_v62 = vld [vmem:[#allocation2 + $0x91] ss:$2 sm:$0xff] }
 0x144   : > { %1480 = vst.msk [vmem:[#allocation2 + $0xa8] sm:$0xff] %vm1458_vm3, %v1429_v56  ;;  %v1380_v44 = vmul.f32 0.5, %v1330_v35  ;;  %v1185_v46 = vadd.f32 %v1135_v52, %v5798_v21  ;;  %v1086_v45 = vmul.f32 %v1036_v36, %v5806_v34  ;;  %v1630_v47 = vpack.c.bf16 %v1593_v62, %v1591_v41 }
 0x145   : > { %5198 = vtanh.f32 %v1234_v33  ;;  %v5814_v48 = vpop.f32.mrf.mxu0 }
 0x146   : > { %v5193_v6 = vpop.eup %5192  ;;  %v1430_v49 = vmul.f32 %v1380_v44, %v5749_v20  ;;  %v1235_v39 = vmul.f32 0.7978846, %v1185_v46  ;;  %v1136_v51 = vmul.f32 0.044715, %v1086_v45  ;;  %v1037_v54 = vmul.f32 %v5814_v48, %v5814_v48  ;;  %4759 = vmatmul.mubr.msk.bf16.gmra.mxu1 %vm1458_vm3, %v1630_v47 }
 0x147   : > { %v1331_v55 = vadd.f32 1.0, %v5193_v6  ;;  %v4699_v10 = vpop.f32.mrf.mxu0  ;;  %v2020_v15 = vld [vmem:[#allocation2 + $0x92] ss:$2 sm:$0xff]  ;;  %4762 = vmatprep.mubr.msk.bf16.mxu1 %vm5359_vm1, %v5358_v0 }
 0x148   : > { %1481 = vst.msk [vmem:[#allocation2 + $0xb0] sm:$0xff] %vm1458_vm3, %v1430_v49  ;;  %5200 = vtanh.f32 %v1235_v39  ;;  %v1186_v14 = vadd.f32 %v1136_v51, %v5806_v34  ;;  %v1087_v20 = vmul.f32 %v1037_v54, %v5814_v48  ;;  %v2057_v59 = vpack.c.bf16 %v2020_v15, %v2018_v57 }
 0x149   : > { %v5195_v61 = vpop.eup %5194  ;;  %v1381_v26 = vmul.f32 0.5, %v1331_v55  ;;  %v5825_v63 = vpop.f32.mrf.mxu0 }
 0x14a   : > { %v1332_v1 = vadd.f32 1.0, %v5195_v61  ;;  %v1236_v2 = vmul.f32 0.7978846, %v1186_v14  ;;  %v1137_v3 = vmul.f32 0.044715, %v1087_v20  ;;  %v1038_v4 = vmul.f32 %v5825_v63, %v5825_v63  ;;  %4867 = vmatmul.mubr.msk.bf16.gmra.mxu0 %vm1458_vm3, %v2057_v59 }
 0x14b   : > { %v1431_v23 = vmul.f32 %v1381_v26, %v5760_v32  ;;  %v4702_v7 = vpop.f32.mrf.mxu0  ;;  %4870 = vmatprep.mubr.msk.bf16.mxu0 %vm5359_vm1, %v5358_v0  ;;  %v1595_v31 = vld [vmem:[#allocation2 + $0xa1] ss:$2 sm:$0xff] }
 0x14c   : > { %v1382_v8 = vmul.f32 0.5, %v1332_v1  ;;  %5202 = vtanh.f32 %v1236_v2  ;;  %v1187_v9 = vadd.f32 %v1137_v3, %v5814_v48  ;;  %v1088_v53 = vmul.f32 %v1038_v4, %v5825_v63 }
 0x14d   : > { %v5197_v11 = vpop.eup %5196  ;;  %1482 = vst.msk [vmem:[#allocation2 + $0xb8] sm:$0xff] %vm1458_vm3, %v1431_v23  ;;  %v5836_v12 = vpop.f32.mrf.mxu0 }
 0x14e   : > { %v1432_v38 = vmul.f32 %v1382_v8, %v5768_v43  ;;  %v1333_v13 = vadd.f32 1.0, %v5197_v11  ;;  %v1237_v16 = vmul.f32 0.7978846, %v1187_v9  ;;  %v1138_v32 = vmul.f32 0.044715, %v1088_v53 }
 0x14f   : > { %v1039_v37 = vmul.f32 %v5836_v12, %v5836_v12  ;;  %v4703_v17 = vpop.f32.mrf.mxu0  ;;  %v2022_v45 = vld [vmem:[#allocation2 + $0xa2] ss:$2 sm:$0xff] }
 0x150   : > { %1483 = vst.msk [vmem:[#allocation2 + $0xc0] sm:$0xff] %vm1458_vm3, %v1432_v38  ;;  %v1383_v18 = vmul.f32 0.5, %v1333_v13  ;;  %5204 = vtanh.f32 %v1237_v16  ;;  %v1188_v19 = vadd.f32 %v1138_v32, %v5825_v63 }
 0x151   : > { %v1089_v42 = vmul.f32 %v1039_v37, %v5836_v12  ;;  %v5844_v60 = vpop.f32.mrf.mxu0 }
 0x152   : > { %v5199_v22 = vpop.eup %5198  ;;  %v1433_v43 = vmul.f32 %v1383_v18, %v5776_v58  ;;  %v1238_v24 = vmul.f32 0.7978846, %v1188_v19  ;;  %v1040_v25 = vmul.f32 %v5844_v60, %v5844_v60 }
 0x153   : > { %v1334_v27 = vadd.f32 1.0, %v5199_v22  ;;  %v1139_v28 = vmul.f32 0.044715, %v1089_v42  ;;  %v4706_v29 = vpop.f32.mrf.mxu0 }
 0x154   : > { %1484 = vst.msk [vmem:[#allocation2 + $0xc8] sm:$0xff] %vm1458_vm3, %v1433_v43  ;;  %5206 = vtanh.f32 %v1238_v24  ;;  %v1090_v30 = vmul.f32 %v1040_v25, %v5844_v60  ;;  %v1597_v5 = vld [vmem:[#allocation2 + $0xb1] ss:$2 sm:$0xff] }
 0x155   : > { %v5201_v56 = vpop.eup %5200  ;;  %v1384_v35 = vmul.f32 0.5, %v1334_v27  ;;  %v1189_v52 = vadd.f32 %v1139_v28, %v5836_v12  ;;  %v5852_v36 = vpop.f32.mrf.mxu0  ;;  %v1631_v58 = vpack.c.bf16 %v1597_v5, %v1595_v31 }
 0x156   : > { %v1335_v33 = vadd.f32 1.0, %v5201_v56  ;;  %v1140_v40 = vmul.f32 0.044715, %v1090_v30  ;;  %v1041_v41 = vmul.f32 %v5852_v36, %v5852_v36 }
 0x157   : > { %v1434_v62 = vmul.f32 %v1384_v35, %v5787_v50  ;;  %v1239_v44 = vmul.f32 0.7978846, %v1189_v52  ;;  %4763 = vmatmul.mubr.msk.bf16.gmra.mxu1 %vm1458_vm3, %v1631_v58  ;;  %v4707_v46 = vpop.f32.mrf.mxu0  ;;  %v2024_v47 = vld [vmem:[#allocation2 + $0xb2] ss:$2 sm:$0xff] }
 0x158   : > { %v1385_v6 = vmul.f32 0.5, %v1335_v33  ;;  %v1190_v49 = vadd.f32 %v1140_v40, %v5844_v60  ;;  %v1091_v39 = vmul.f32 %v1041_v41, %v5852_v36  ;;  %v2058_v51 = vpack.c.bf16 %v2024_v47, %v2022_v45  ;;  %4766 = vmatprep.mubr.msk.bf16.mxu1 %vm5359_vm1, %v5358_v0 }
 0x159   : > { %v5203_v54 = vpop.eup %5202  ;;  %1485 = vst.msk [vmem:[#allocation2 + $0xd0] sm:$0xff] %vm1458_vm3, %v1434_v62  ;;  %5208 = vtanh.f32 %v1239_v44  ;;  %v5863_v50 = vpop.f32.mrf.mxu0 }
 0x15a   : > { %v1435_v55 = vmul.f32 %v1385_v6, %v5798_v21  ;;  %v1336_v10 = vadd.f32 1.0, %v5203_v54  ;;  %v1240_v57 = vmul.f32 0.7978846, %v1190_v49  ;;  %v1141_v15 = vmul.f32 0.044715, %v1091_v39  ;;  %4871 = vmatmul.mubr.msk.bf16.gmra.mxu0 %vm1458_vm3, %v2058_v51 }
 0x15b   : > { %v1042_v14 = vmul.f32 %v5863_v50, %v5863_v50  ;;  %v4710_v20 = vpop.f32.mrf.mxu0  ;;  %4874 = vmatprep.mubr.msk.bf16.mxu0 %vm5359_vm1, %v5358_v0  ;;  %v1599_v19 = vld [vmem:[#allocation2 + $0xc1] ss:$2 sm:$0xff] }
 0x15c   : > { %1486 = vst.msk [vmem:[#allocation2 + $0xd8] sm:$0xff] %vm1458_vm3, %v1435_v55  ;;  %v1386_v59 = vmul.f32 0.5, %v1336_v10  ;;  %5210 = vtanh.f32 %v1240_v57  ;;  %v1191_v61 = vadd.f32 %v1141_v15, %v5852_v36 }
 0x15d   : > { %v5205_v26 = vpop.eup %5204  ;;  %v1092_v21 = vmul.f32 %v1042_v14, %v5863_v50  ;;  %v5874_v1 = vpop.f32.mrf.mxu0 }
 0x15e   : > { %v1436_v2 = vmul.f32 %v1386_v59, %v5806_v34  ;;  %v1337_v3 = vadd.f32 1.0, %v5205_v26  ;;  %v1241_v4 = vmul.f32 0.7978846, %v1191_v61  ;;  %v1043_v23 = vmul.f32 %v5874_v1, %v5874_v1 }
 0x15f   : > { %v1142_v7 = vmul.f32 0.044715, %v1092_v21  ;;  %v4711_v8 = vpop.f32.mrf.mxu0 }
 0x160   : > { %1487 = vst.msk [vmem:[#allocation2 + $0xe0] sm:$0xff] %vm1458_vm3, %v1436_v2  ;;  %v1387_v9 = vmul.f32 0.5, %v1337_v3  ;;  %5212 = vtanh.f32 %v1241_v4  ;;  %v1093_v53 = vmul.f32 %v1043_v23, %v5874_v1  ;;  %v2026_v35 = vld [vmem:[#allocation2 + $0xc2] ss:$2 sm:$0xff] }
 0x161   : > { %v5207_v11 = vpop.eup %5206  ;;  %v1192_v38 = vadd.f32 %v1142_v7, %v5863_v50  ;;  %v5882_v13 = vpop.f32.mrf.mxu0 }
 0x162   : > { %v1437_v34 = vmul.f32 %v1387_v9, %v5814_v48  ;;  %v1338_v16 = vadd.f32 1.0, %v5207_v11  ;;  %v1143_v32 = vmul.f32 0.044715, %v1093_v53  ;;  %v1044_v37 = vmul.f32 %v5882_v13, %v5882_v13 }
 0x163   : > { %v1242_v17 = vmul.f32 0.7978846, %v1192_v38  ;;  %v4714_v18 = vpop.f32.mrf.mxu0  ;;  %v1601_v42 = vld [vmem:[#allocation2 + $0xd1] ss:$2 sm:$0xff] }
 0x164   : > { %1488 = vst.msk [vmem:[#allocation2 + $0xe8] sm:$0xff] %vm1458_vm3, %v1437_v34  ;;  %v1388_v22 = vmul.f32 0.5, %v1338_v16  ;;  %v1193_v43 = vadd.f32 %v1143_v32, %v5874_v1  ;;  %v1094_v24 = vmul.f32 %v1044_v37, %v5882_v13  ;;  %v1632_v25 = vpack.c.bf16 %v1601_v42, %v1599_v19 }
 0x165   : > { %5214 = vtanh.f32 %v1242_v17  ;;  %v5890_v27 = vpop.f32.mrf.mxu0 }
 0x166   : > { %v5209_v48 = vpop.eup %5208  ;;  %v1438_v28 = vmul.f32 %v1388_v22, %v5825_v63  ;;  %v1243_v29 = vmul.f32 0.7978846, %v1193_v43  ;;  %v1144_v30 = vmul.f32 0.044715, %v1094_v24  ;;  %v1045_v31 = vmul.f32 %v5890_v27, %v5890_v27  ;;  %4767 = vmatmul.mubr.msk.bf16.gmra.mxu1 %vm1458_vm3, %v1632_v25 }
 0x167   : > { %v1339_v5 = vadd.f32 1.0, %v5209_v48  ;;  %v4715_v56 = vpop.f32.mrf.mxu0  ;;  %v2028_v52 = vld [vmem:[#allocation2 + $0xd2] ss:$2 sm:$0xff]  ;;  %4770 = vmatprep.mubr.msk.bf16.mxu1 %vm5359_vm1, %v5358_v0 }
 0x168   : > { %1489 = vst.msk [vmem:[#allocation2 + $0xf0] sm:$0xff] %vm1458_vm3, %v1438_v28  ;;  %5216 = vtanh.f32 %v1243_v29  ;;  %v1194_v58 = vadd.f32 %v1144_v30, %v5882_v13  ;;  %v1095_v63 = vmul.f32 %v1045_v31, %v5890_v27  ;;  %v2059_v33 = vpack.c.bf16 %v2028_v52, %v2026_v35 }
 0x169   : > { %v5211_v40 = vpop.eup %5210  ;;  %v1389_v41 = vmul.f32 0.5, %v1339_v5  ;;  %v5901_v62 = vpop.f32.mrf.mxu0 }
 0x16a   : > { %v1340_v44 = vadd.f32 1.0, %v5211_v40  ;;  %v1244_v46 = vmul.f32 0.7978846, %v1194_v58  ;;  %v1145_v45 = vmul.f32 0.044715, %v1095_v63  ;;  %v1046_v47 = vmul.f32 %v5901_v62, %v5901_v62  ;;  %4875 = vmatmul.mubr.msk.bf16.gmra.mxu0 %vm1458_vm3, %v2059_v33 }
 0x16b   : > { %v1439_v6 = vmul.f32 %v1389_v41, %v5836_v12  ;;  %v4718_v49 = vpop.f32.mrf.mxu0  ;;  %4878 = vmatprep.mubr.msk.bf16.mxu0 %vm5359_vm1, %v5358_v0  ;;  %v1603_v11 = vld [vmem:[#allocation2 + $0xe1] ss:$2 sm:$0xff] }
 0x16c   : > { %v1390_v39 = vmul.f32 0.5, %v1340_v44  ;;  %5218 = vtanh.f32 %v1244_v46  ;;  %v1195_v51 = vadd.f32 %v1145_v45, %v5890_v27  ;;  %v1096_v54 = vmul.f32 %v1046_v47, %v5901_v62 }
 0x16d   : > { %v5213_v55 = vpop.eup %5212  ;;  %1490 = vst.msk [vmem:[#allocation2 + $0xf8] sm:$0xff] %vm1458_vm3, %v1439_v6  ;;  %v5912_v10 = vpop.f32.mrf.mxu0 }
 0x16e   : > { %v1440_v57 = vmul.f32 %v1390_v39, %v5844_v60  ;;  %v1341_v15 = vadd.f32 1.0, %v5213_v55  ;;  %v1245_v14 = vmul.f32 0.7978846, %v1195_v51  ;;  %v1146_v12 = vmul.f32 0.044715, %v1096_v54 }
 0x16f   : > { %v1047_v20 = vmul.f32 %v5912_v10, %v5912_v10  ;;  %v4719_v59 = vpop.f32.mrf.mxu0  ;;  %v2030_v24 = vld [vmem:[#allocation2 + $0xe2] ss:$2 sm:$0xff] }
 0x170   : > { %1491 = vst.msk [vmem:[#allocation2 + $0x100] sm:$0xff] %vm1458_vm3, %v1440_v57  ;;  %v1391_v61 = vmul.f32 0.5, %v1341_v15  ;;  %5220 = vtanh.f32 %v1245_v14  ;;  %v1196_v26 = vadd.f32 %v1146_v12, %v5901_v62 }
 0x171   : > { %v1097_v21 = vmul.f32 %v1047_v20, %v5912_v10  ;;  %v5920_v2 = vpop.f32.mrf.mxu0 }
 0x172   : > { %v5215_v3 = vpop.eup %5214  ;;  %v1441_v60 = vmul.f32 %v1391_v61, %v5852_v36  ;;  %v1246_v4 = vmul.f32 0.7978846, %v1196_v26  ;;  %v1048_v23 = vmul.f32 %v5920_v2, %v5920_v2 }
 0x173   : > { %v1342_v7 = vadd.f32 1.0, %v5215_v3  ;;  %v1147_v8 = vmul.f32 0.044715, %v1097_v21  ;;  %v4722_v9 = vpop.f32.mrf.mxu0 }
 0x174   : > { %1492 = vst.msk [vmem:[#allocation2 + $0x108] sm:$0xff] %vm1458_vm3, %v1441_v60  ;;  %5222 = vtanh.f32 %v1246_v4  ;;  %v1098_v53 = vmul.f32 %v1048_v23, %v5920_v2  ;;  %v1605_v38 = vld [vmem:[#allocation2 + $0xf1] ss:$2 sm:$0xff] }
 0x175   : > { %v5217_v34 = vpop.eup %5216  ;;  %v1392_v16 = vmul.f32 0.5, %v1342_v7  ;;  %v1197_v32 = vadd.f32 %v1147_v8, %v5912_v10  ;;  %v5928_v37 = vpop.f32.mrf.mxu0  ;;  %v1633_v36 = vpack.c.bf16 %v1605_v38, %v1603_v11 }
 0x176   : > { %v1343_v17 = vadd.f32 1.0, %v5217_v34  ;;  %v1148_v18 = vmul.f32 0.044715, %v1098_v53  ;;  %v1049_v19 = vmul.f32 %v5928_v37, %v5928_v37 }
 0x177   : > { %v1442_v42 = vmul.f32 %v1392_v16, %v5863_v50  ;;  %v1247_v22 = vmul.f32 0.7978846, %v1197_v32  ;;  %4771 = vmatmul.mubr.msk.bf16.gmra.mxu1 %vm1458_vm3, %v1633_v36  ;;  %v4723_v43 = vpop.f32.mrf.mxu0  ;;  %v2032_v25 = vld [vmem:[#allocation2 + $0xf2] ss:$2 sm:$0xff] }
 0x178   : > { %v1393_v48 = vmul.f32 0.5, %v1343_v17  ;;  %v1198_v28 = vadd.f32 %v1148_v18, %v5920_v2  ;;  %v1099_v29 = vmul.f32 %v1049_v19, %v5928_v37  ;;  %v2060_v30 = vpack.c.bf16 %v2032_v25, %v2030_v24  ;;  %4774 = vmatprep.mubr.msk.bf16.mxu1 %vm5359_vm1, %v5358_v0 }
 0x179   : > { %v5219_v31 = vpop.eup %5218  ;;  %1493 = vst.msk [vmem:[#allocation2 + $0x110] sm:$0xff] %vm1458_vm3, %v1442_v42  ;;  %5224 = vtanh.f32 %v1247_v22  ;;  %v5939_v50 = vpop.f32.mrf.mxu0 }
 0x17a   : > { %v1443_v5 = vmul.f32 %v1393_v48, %v5874_v1  ;;  %v1344_v56 = vadd.f32 1.0, %v5219_v31  ;;  %v1248_v35 = vmul.f32 0.7978846, %v1198_v28  ;;  %v1149_v52 = vmul.f32 0.044715, %v1099_v29  ;;  %4879 = vmatmul.mubr.msk.bf16.gmra.mxu0 %vm1458_vm3, %v2060_v30 }
 0x17b   : > { %v1050_v58 = vmul.f32 %v5939_v50, %v5939_v50  ;;  %v4726_v63 = vpop.f32.mrf.mxu0  ;;  %4882 = vmatprep.mubr.msk.bf16.mxu0 %vm5359_vm1, %v5358_v0  ;;  %v1607_v26 = vld [vmem:[#allocation2 + $0x101] ss:$2 sm:$0xff] }
 0x17c   : > { %1494 = vst.msk [vmem:[#allocation2 + $0x118] sm:$0xff] %vm1458_vm3, %v1443_v5  ;;  %v1394_v33 = vmul.f32 0.5, %v1344_v56  ;;  %5226 = vtanh.f32 %v1248_v35  ;;  %v1199_v40 = vadd.f32 %v1149_v52, %v5928_v37 }
 0x17d   : > { %v5221_v41 = vpop.eup %5220  ;;  %v1100_v1 = vmul.f32 %v1050_v58, %v5939_v50  ;;  %v5950_v44 = vpop.f32.mrf.mxu0 }
 0x17e   : > { %v1444_v46 = vmul.f32 %v1394_v33, %v5882_v13  ;;  %v1345_v45 = vadd.f32 1.0, %v5221_v41  ;;  %v1249_v47 = vmul.f32 0.7978846, %v1199_v40  ;;  %v1051_v6 = vmul.f32 %v5950_v44, %v5950_v44 }
 0x17f   : > { %v1150_v49 = vmul.f32 0.044715, %v1100_v1  ;;  %v4727_v39 = vpop.f32.mrf.mxu0 }
 0x180   : > { %1495 = vst.msk [vmem:[#allocation2 + $0x120] sm:$0xff] %vm1458_vm3, %v1444_v46  ;;  %v1395_v51 = vmul.f32 0.5, %v1345_v45  ;;  %5228 = vtanh.f32 %v1249_v47  ;;  %v1101_v54 = vmul.f32 %v1051_v6, %v5950_v44  ;;  %v2034_v16 = vld [vmem:[#allocation2 + $0x102] ss:$2 sm:$0xff] }
 0x181   : > { %v5223_v55 = vpop.eup %5222  ;;  %v1200_v57 = vadd.f32 %v1150_v49, %v5939_v50  ;;  %v5958_v15 = vpop.f32.mrf.mxu0 }
 0x182   : > { %v1445_v13 = vmul.f32 %v1395_v51, %v5890_v27  ;;  %v1346_v14 = vadd.f32 1.0, %v5223_v55  ;;  %v1151_v12 = vmul.f32 0.044715, %v1101_v54  ;;  %v1052_v20 = vmul.f32 %v5958_v15, %v5958_v15 }
 0x183   : > { %v1250_v59 = vmul.f32 0.7978846, %v1200_v57  ;;  %v4730_v61 = vpop.f32.mrf.mxu0  ;;  %v1609_v21 = vld [vmem:[#allocation2 + $0x111] ss:$2 sm:$0xff] }
 0x184   : > { %1496 = vst.msk [vmem:[#allocation2 + $0x128] sm:$0xff] %vm1458_vm3, %v1445_v13  ;;  %v1396_v3 = vmul.f32 0.5, %v1346_v14  ;;  %v1201_v60 = vadd.f32 %v1151_v12, %v5950_v44  ;;  %v1102_v4 = vmul.f32 %v1052_v20, %v5958_v15  ;;  %v1634_v23 = vpack.c.bf16 %v1609_v21, %v1607_v26 }
 0x185   : > { %5230 = vtanh.f32 %v1250_v59  ;;  %v5966_v7 = vpop.f32.mrf.mxu0 }
 0x186   : > { %v5225_v27 = vpop.eup %5224  ;;  %v1446_v8 = vmul.f32 %v1396_v3, %v5901_v62  ;;  %v1251_v9 = vmul.f32 0.7978846, %v1201_v60  ;;  %v1152_v53 = vmul.f32 0.044715, %v1102_v4  ;;  %v1053_v11 = vmul.f32 %v5966_v7, %v5966_v7  ;;  %4775 = vmatmul.mubr.msk.bf16.gmra.mxu1 %vm1458_vm3, %v1634_v23 }
 0x187   : > { %v1347_v38 = vadd.f32 1.0, %v5225_v27  ;;  %v4731_v34 = vpop.f32.mrf.mxu0  ;;  %v2036_v32 = vld [vmem:[#allocation2 + $0x112] ss:$2 sm:$0xff]  ;;  %4778 = vmatprep.mubr.msk.bf16.mxu1 %vm5359_vm1, %v5358_v0 }
 0x188   : > { %1497 = vst.msk [vmem:[#allocation2 + $0x130] sm:$0xff] %vm1458_vm3, %v1446_v8  ;;  %5232 = vtanh.f32 %v1251_v9  ;;  %v1202_v36 = vadd.f32 %v1152_v53, %v5958_v15  ;;  %v1103_v62 = vmul.f32 %v1053_v11, %v5966_v7  ;;  %v2061_v17 = vpack.c.bf16 %v2036_v32, %v2034_v16 }
 0x189   : > { %v5227_v18 = vpop.eup %5226  ;;  %v1397_v19 = vmul.f32 0.5, %v1347_v38  ;;  %v5977_v42 = vpop.f32.mrf.mxu0 }
 0x18a   : > { %v1348_v22 = vadd.f32 1.0, %v5227_v18  ;;  %v1252_v43 = vmul.f32 0.7978846, %v1202_v36  ;;  %v1153_v24 = vmul.f32 0.044715, %v1103_v62  ;;  %v1054_v25 = vmul.f32 %v5977_v42, %v5977_v42  ;;  %4883 = vmatmul.mubr.msk.bf16.gmra.mxu0 %vm1458_vm3, %v2061_v17 }
 0x18b   : > { %v1447_v48 = vmul.f32 %v1397_v19, %v5912_v10  ;;  %v4734_v28 = vpop.f32.mrf.mxu0  ;;  %4886 = vmatprep.mubr.msk.bf16.mxu0 %vm5359_vm1, %v5358_v0  ;;  %v1611_v55 = vld [vmem:[#allocation2 + $0x121] ss:$2 sm:$0xff] }
 0x18c   : > { %v1398_v29 = vmul.f32 0.5, %v1348_v22  ;;  %5234 = vtanh.f32 %v1252_v43  ;;  %v1203_v30 = vadd.f32 %v1153_v24, %v5966_v7  ;;  %v1104_v31 = vmul.f32 %v1054_v25, %v5977_v42 }
 0x18d   : > { %v5229_v5 = vpop.eup %5228  ;;  %1498 = vst.msk [vmem:[#allocation2 + $0x138] sm:$0xff] %vm1458_vm3, %v1447_v48  ;;  %v5988_v56 = vpop.f32.mrf.mxu0 }
 0x18e   : > { %v1448_v35 = vmul.f32 %v1398_v29, %v5920_v2  ;;  %v1349_v52 = vadd.f32 1.0, %v5229_v5  ;;  %v1253_v58 = vmul.f32 0.7978846, %v1203_v30  ;;  %v1154_v10 = vmul.f32 0.044715, %v1104_v31 }
 0x18f   : > { %v1055_v63 = vmul.f32 %v5988_v56, %v5988_v56  ;;  %v4735_v33 = vpop.f32.mrf.mxu0  ;;  %v2038_v4 = vld [vmem:[#allocation2 + $0x122] ss:$2 sm:$0xff] }
 0x190   : > { %1499 = vst.msk [vmem:[#allocation2 + $0x140] sm:$0xff] %vm1458_vm3, %v1448_v35  ;;  %v1399_v40 = vmul.f32 0.5, %v1349_v52  ;;  %5236 = vtanh.f32 %v1253_v58  ;;  %v1204_v41 = vadd.f32 %v1154_v10, %v5977_v42 }
 0x191   : > { %v1105_v1 = vmul.f32 %v1055_v63, %v5988_v56  ;;  %v5996_v46 = vpop.f32.mrf.mxu0 }
 0x192   : > { %v5231_v45 = vpop.eup %5230  ;;  %v1449_v2 = vmul.f32 %v1399_v40, %v5928_v37  ;;  %v1254_v47 = vmul.f32 0.7978846, %v1204_v41  ;;  %v1056_v6 = vmul.f32 %v5996_v46, %v5996_v46 }
 0x193   : > { %v1350_v49 = vadd.f32 1.0, %v5231_v45  ;;  %v1155_v39 = vmul.f32 0.044715, %v1105_v1  ;;  %v4738_v51 = vpop.f32.mrf.mxu0 }
 0x194   : > { %1500 = vst.msk [vmem:[#allocation2 + $0x148] sm:$0xff] %vm1458_vm3, %v1449_v2  ;;  %5238 = vtanh.f32 %v1254_v47  ;;  %v1106_v54 = vmul.f32 %v1056_v6, %v5996_v46  ;;  %v1613_v57 = vld [vmem:[#allocation2 + $0x131] ss:$2 sm:$0xff] }
 0x195   : > { %v5233_v13 = vpop.eup %5232  ;;  %v1400_v14 = vmul.f32 0.5, %v1350_v49  ;;  %v1205_v12 = vadd.f32 %v1155_v39, %v5988_v56  ;;  %v6004_v20 = vpop.f32.mrf.mxu0  ;;  %v1635_v37 = vpack.c.bf16 %v1613_v57, %v1611_v55  ;;  %v1512_v57 = vld [vmem:[#allocation2 + $0x10] ss:$2 sm:$0xff] }
 0x196   : > { %v1351_v59 = vadd.f32 1.0, %v5233_v13  ;;  %v1156_v61 = vmul.f32 0.044715, %v1106_v54  ;;  %v1057_v26 = vmul.f32 %v6004_v20, %v6004_v20  ;;  %v1510_v13 = vld [vmem:[#allocation2] ss:$2 sm:$0xff] }
 0x197   : > { %v1450_v21 = vmul.f32 %v1400_v14, %v5939_v50  ;;  %v1255_v3 = vmul.f32 0.7978846, %v1205_v12  ;;  %4779 = vmatmul.mubr.msk.bf16.gmra.mxu1 %vm1458_vm3, %v1635_v37  ;;  %v4739_v60 = vpop.f32.mrf.mxu0  ;;  %v2040_v23 = vld [vmem:[#allocation2 + $0x132] ss:$2 sm:$0xff]  ;;  %v1561_v14 = vpack.c.bf16 %v1512_v57, %v1510_v13 }
 0x198   : > { %v1401_v27 = vmul.f32 0.5, %v1351_v59  ;;  %v1206_v8 = vadd.f32 %v1156_v61, %v5996_v46  ;;  %v1107_v9 = vmul.f32 %v1057_v26, %v6004_v20  ;;  %v2062_v53 = vpack.c.bf16 %v2040_v23, %v2038_v4  ;;  %4782 = vmatprep.mubr.msk.bf16.mxu1 %vm5359_vm1, %v5358_v0  ;;  %v1516_v59 = vld [vmem:[#allocation2 + $0x30] ss:$2 sm:$0xff]  ;;  %v1514_v26 = vld [vmem:[#allocation2 + $0x20] ss:$2 sm:$0xff] }
 0x199   : > { %v5235_v11 = vpop.eup %5234  ;;  %1501 = vst.msk [vmem:[#allocation2 + $0x150] sm:$0xff] %vm1458_vm3, %v1450_v21  ;;  %5240 = vtanh.f32 %v1255_v3  ;;  %v1562_v21 = vpack.c.bf16 %v1516_v59, %v1514_v26  ;;  %v1520_v23 = vld [vmem:[#allocation2 + $0x50] ss:$2 sm:$0xff]  ;;  %v1546_v59 = vld [vmem:[#allocation2 + $0x120] ss:$2 sm:$0xff] }
 0x19a   : > { %v1451_v50 = vmul.f32 %v1401_v27, %v5950_v44  ;;  %v1352_v38 = vadd.f32 1.0, %v5235_v11  ;;  %v1256_v34 = vmul.f32 0.7978846, %v1206_v8  ;;  %v1157_v16 = vmul.f32 0.044715, %v1107_v9  ;;  %4887 = vmatmul.mubr.msk.bf16.gmra.mxu0 %vm1458_vm3, %v2062_v53 }
 0x19b   : > { %4890 = vmatprep.mubr.msk.bf16.mxu0 %vm5359_vm1, %v5358_v0  ;;  %v1615_v25 = vld [vmem:[#allocation2 + $0x141] ss:$2 sm:$0xff]  ;;  %v1518_v8 = vld [vmem:[#allocation2 + $0x40] ss:$2 sm:$0xff]  ;;  %v1548_v13 = vld [vmem:[#allocation2 + $0x130] ss:$2 sm:$0xff] }
 0x19c   : > { %1502 = vst.msk [vmem:[#allocation2 + $0x158] sm:$0xff] %vm1458_vm3, %v1451_v50  ;;  %v1402_v32 = vmul.f32 0.5, %v1352_v38  ;;  %5242 = vtanh.f32 %v1256_v34  ;;  %v1207_v36 = vadd.f32 %v1157_v16, %v6004_v20  ;;  %v1563_v9 = vpack.c.bf16 %v1520_v23, %v1518_v8  ;;  %v1524_v38 = vld [vmem:[#allocation2 + $0x70] ss:$2 sm:$0xff]  ;;  %v1550_v23 = vld [vmem:[#allocation2 + $0x140] ss:$2 sm:$0xff] }
 0x19d   : > { %v5237_v62 = vpop.eup %5236 }
 0x19e   : > { %v1452_v17 = vmul.f32 %v1402_v32, %v5958_v15  ;;  %v1353_v18 = vadd.f32 1.0, %v5237_v62  ;;  %v1257_v19 = vmul.f32 0.7978846, %v1207_v36  ;;  %v1522_v32 = vld [vmem:[#allocation2 + $0x60] ss:$2 sm:$0xff] }
 0x19f   : > { %v1564_v62 = vpack.c.bf16 %v1524_v38, %v1522_v32 }
 0x1a0   : > { %1503 = vst.msk [vmem:[#allocation2 + $0x160] sm:$0xff] %vm1458_vm3, %v1452_v17  ;;  %v1403_v44 = vmul.f32 0.5, %v1353_v18  ;;  %5244 = vtanh.f32 %v1257_v19  ;;  %v2042_v5 = vld [vmem:[#allocation2 + $0x142] ss:$2 sm:$0xff] }
 0x1a1   : > { %v5239_v22 = vpop.eup %5238  ;;  %v1528_v19 = vld [vmem:[#allocation2 + $0x90] ss:$2 sm:$0xff] }
 0x1a2   : > { %v1453_v43 = vmul.f32 %v1403_v44, %v5966_v7  ;;  %v1354_v24 = vadd.f32 1.0, %v5239_v22  ;;  %v1526_v44 = vld [vmem:[#allocation2 + $0x80] ss:$2 sm:$0xff] }
 0x1a3   : > { %v1617_v48 = vld [vmem:[#allocation2 + $0x151] ss:$2 sm:$0xff]  ;;  %v1565_v22 = vpack.c.bf16 %v1528_v19, %v1526_v44 }
 0x1a4   : > { %1504 = vst.msk [vmem:[#allocation2 + $0x168] sm:$0xff] %vm1458_vm3, %v1453_v43  ;;  %v1404_v28 = vmul.f32 0.5, %v1354_v24  ;;  %v1636_v29 = vpack.c.bf16 %v1617_v48, %v1615_v25 }
 0x1a6   : > { %v5241_v30 = vpop.eup %5240  ;;  %v1454_v31 = vmul.f32 %v1404_v28, %v5977_v42  ;;  %4783 = vmatmul.mubr.msk.bf16.gmra.mxu1 %vm1458_vm3, %v1636_v29  ;;  %v1532_v28 = vld [vmem:[#allocation2 + $0xb0] ss:$2 sm:$0xff] }
 0x1a7   : > { %v1355_v15 = vadd.f32 1.0, %v5241_v30  ;;  %v2044_v35 = vld [vmem:[#allocation2 + $0x152] ss:$2 sm:$0xff]  ;;  %4786 = vmatprep.mubr.msk.bf16.mxu1 %vm5359_vm1, %v5358_v0 }
 0x1a8   : > { %1505 = vst.msk [vmem:[#allocation2 + $0x170] sm:$0xff] %vm1458_vm3, %v1454_v31  ;;  %v2063_v7 = vpack.c.bf16 %v2044_v35, %v2042_v5  ;;  %v1530_v31 = vld [vmem:[#allocation2 + $0xa0] ss:$2 sm:$0xff] }
 0x1a9   : > { %v5243_v52 = vpop.eup %5242  ;;  %v1405_v58 = vmul.f32 0.5, %v1355_v15  ;;  %v1566_v15 = vpack.c.bf16 %v1532_v28, %v1530_v31 }
 0x1aa   : > { %v1356_v10 = vadd.f32 1.0, %v5243_v52  ;;  %4891 = vmatmul.mubr.msk.bf16.gmra.mxu0 %vm1458_vm3, %v2063_v7  ;;  %v1536_v7 = vld [vmem:[#allocation2 + $0xd0] ss:$2 sm:$0xff]  ;;  %v1534_v52 = vld [vmem:[#allocation2 + $0xc0] ss:$2 sm:$0xff] }
 0x1ab   : > { %v1455_v63 = vmul.f32 %v1405_v58, %v5988_v56  ;;  %4894 = vmatprep.mubr.msk.bf16.mxu0 %vm5359_vm1, %v5358_v0  ;;  %v1619_v2 = vld [vmem:[#allocation2 + $0x161] ss:$2 sm:$0xff]  ;;  %v1567_v58 = vpack.c.bf16 %v1536_v7, %v1534_v52 }
 0x1ac   : > { %v1406_v42 = vmul.f32 0.5, %v1356_v10 }
 0x1ad   : > { %v5245_v33 = vpop.eup %5244  ;;  %1506 = vst.msk [vmem:[#allocation2 + $0x178] sm:$0xff] %vm1458_vm3, %v1455_v63 }
 0x1ae   : > { %v1456_v40 = vmul.f32 %v1406_v42, %v5996_v46  ;;  %v1357_v41 = vadd.f32 1.0, %v5245_v33  ;;  %v1540_v33 = vld [vmem:[#allocation2 + $0xf0] ss:$2 sm:$0xff] }
 0x1af   : > { %v2046_v6 = vld [vmem:[#allocation2 + $0x162] ss:$2 sm:$0xff] }
 0x1b0   : > { %1507 = vst.msk [vmem:[#allocation2 + $0x180] sm:$0xff] %vm1458_vm3, %v1456_v40  ;;  %v1407_v1 = vmul.f32 0.5, %v1357_v41 }
 0x1b2   : > { %v1457_v45 = vmul.f32 %v1407_v1, %v6004_v20  ;;  %v1538_v1 = vld [vmem:[#allocation2 + $0xe0] ss:$2 sm:$0xff] }
 0x1b4   : > { %1509 = vst.msk [vmem:[#allocation2 + $0x188] sm:$0x7f] %vm1508_vm4, %v1457_v45  ;;  %v1621_v56 = vld [vmem:[#allocation2 + $0x171] ss:$2 sm:$0xff]  ;;  %v1556_v38 = vld [vmem:[#allocation2 + $0x170] ss:$2 sm:$0xff] }
 0x1b5   : > { %v1637_v47 = vpack.c.bf16 %v1621_v56, %v1619_v2  ;;  %v1568_v2 = vpack.c.bf16 %v1540_v33, %v1538_v1 }
 0x1b7   : > { %4787 = vmatmul.mubr.msk.bf16.gmra.mxu1 %vm1458_vm3, %v1637_v47  ;;  %v2048_v49 = vld [vmem:[#allocation2 + $0x172] ss:$2 sm:$0xff]  ;;  %v5130_v47 = vld [vmem:[%s6844_s3 + $0x8] sm:$0xff]  }
 0x1b8   : > { %v2064_v39 = vpack.c.bf16 %v2048_v49, %v2046_v6  ;;  %4790 = vmatprep.mubr.msk.bf16.mxu1 %vm5359_vm1, %v5358_v0  ;;  %v1544_v49 = vld [vmem:[#allocation2 + $0x110] ss:$2 sm:$0xff] }
 0x1ba   : > { %4895 = vmatmul.mubr.msk.bf16.gmra.mxu0 %vm1458_vm3, %v2064_v39  ;;  %v1542_v39 = vld [vmem:[#allocation2 + $0x100] ss:$2 sm:$0xff] }
 0x1bb   : > { %v1623_v46 = vld [vmem:[#allocation2 + $0x181] ss:$2 sm:$0x7f]  ;;  %4898 = vmatprep.mubr.msk.bf16.mxu0 %vm5359_vm1, %v5358_v0  ;;  %v2050_v54 = vld [vmem:[#allocation2 + $0x182] ss:$2 sm:$0x7f] }
 0x1bc   : > { %v1638_v51 = vpack.c.bf16 %v1623_v46, %v1623_v46  ;;  %v2065_v55 = vpack.c.bf16 %v2050_v54, %v2050_v54  ;;  %v1569_v46 = vpack.c.bf16 %v1544_v49, %v1542_v39 }
 0x1bf   : > { %4791 = vmatmul.mubr.msk.bf16.gmra.mxu1 %vm1458_vm3, %v1638_v51 }
 0x1c0   : > { %4796 = vmatprep.mubr.msk.bf16.mxu1 %vm5359_vm1, %v5358_v0 }
 0x1c2   : > { %4899 = vmatmul.mubr.msk.bf16.gmra.mxu0 %vm1458_vm3, %v2065_v55 }
 0x1c3   : > { %4964 = vmatprep.mubr.msk.bf16.mxu0 %vm5359_vm1, %v5358_v0 }
 0x1c6   : > { %v6051_v12 = vpop.f32.mrf.mxu0 }
 0x1c7   : > { %4797 = vmatmul.mubr.msk.bf16.vlgmr.msra.gmra.mxu1 %vm1458_vm3, %v1561_v14 }
 0x1c8   : > { %v4744_v20 = vpop.f32.mrf.mxu0  ;;  %4800 = vmatprep.mubr.msk.bf16.mxu1 %vm5359_vm1, %v5358_v0  ;;  %4903 = vmatpush3.bf16.msra.mxu1 %v5130_v47 }
 0x1c9   : > { %4932 = vmatprep.subr.bf16.mxu1 %v5358_v0 }
 0x1ca   : > { %v6056_v37 = vpop.f32.mrf.mxu0 }
 0x1cc   : > { %v4745_v61 = vpop.f32.mrf.mxu0 }
 0x1cd   : > { %v1570_v61 = vpack.c.bf16 %v1548_v13, %v1546_v59 }
 0x1ce   : > { %v6058_v3 = vpop.f32.mrf.mxu0 }
 0x1cf   : > { %4801 = vmatmul.mubr.msk.bf16.gmra.mxu1 %vm1458_vm3, %v1562_v21 }
 0x1d0   : > { %v4852_v60 = vpop.f32.mrf.mxu0  ;;  %4804 = vmatprep.mubr.msk.bf16.mxu1 %vm5359_vm1, %v5358_v0 }
 0x1d1   : > { %v1552_v60 = vld [vmem:[#allocation2 + $0x150] ss:$2 sm:$0xff] }
 0x1d2   : > { %v6063_v4 = vpop.f32.mrf.mxu0 }
 0x1d4   : > { %v4853_v27 = vpop.f32.mrf.mxu0 }
 0x1d5   : > { %v1571_v27 = vpack.c.bf16 %v1552_v60, %v1550_v23 }
 0x1d7   : > { %v6065_v53 = vpop.f32.mrf.mxu1  ;;  %4805 = vmatmul.mubr.msk.bf16.gmra.mxu1 %vm1458_vm3, %v1563_v9 }
 0x1d8   : > { %4808 = vmatprep.mubr.msk.bf16.mxu1 %vm5359_vm1, %v5358_v0 }
 0x1d9   : > { %v4748_v11 = vpop.f32.mrf.mxu1 }
 0x1da   : > { %v6070_v50 = vpop.f32.mrf.mxu0 }
 0x1db   : > { %v6072_v34 = vpop.f32.mrf.mxu1 }
 0x1dc   : > { %v4856_v16 = vpop.f32.mrf.mxu0 }
 0x1dd   : > { %v4749_v36 = vpop.f32.mrf.mxu1 }
 0x1de   : > { %v6074_v17 = vpop.f32.mrf.mxu0  ;;  %v1554_v36 = vld [vmem:[#allocation2 + $0x160] ss:$2 sm:$0xff] }
 0x1df   : > { %4809 = vmatmul.mubr.msk.bf16.gmra.mxu1 %vm1458_vm3, %v1564_v62 }
 0x1e0   : > { %v4857_v18 = vpop.f32.mrf.mxu0  ;;  %4812 = vmatprep.mubr.msk.bf16.mxu1 %vm5359_vm1, %v5358_v0 }
 0x1e1   : > { %v1572_v18 = vpack.c.bf16 %v1556_v38, %v1554_v36 }
 0x1e6   : > { %v6079_v43 = vpop.f32.mrf.mxu1 }
 0x1e7   : > { %4813 = vmatmul.mubr.msk.bf16.gmra.mxu1 %vm1458_vm3, %v1565_v22  ;;  %v1558_v22 = vld [vmem:[#allocation2 + $0x180] ss:$2 sm:$0x7f] }
 0x1e8   : > { %v4752_v24 = vpop.f32.mrf.mxu1  ;;  %4816 = vmatprep.mubr.msk.bf16.mxu1 %vm5359_vm1, %v5358_v0 }
 0x1e9   : > { %v1573_v24 = vpack.c.bf16 %v1558_v22, %v1558_v22 }
 0x1ea   : > { %v6084_v25 = vpop.f32.mrf.mxu1  ;;  %v6086_v48 = vpop.f32.mrf.mxu0 }
 0x1ec   : > { %v4753_v29 = vpop.f32.mrf.mxu1  ;;  %v4860_v30 = vpop.f32.mrf.mxu0 }
 0x1ee   : > { %v6088_v5 = vpop.f32.mrf.mxu0 }
 0x1ef   : > { %4817 = vmatmul.mubr.msk.bf16.gmra.mxu1 %vm1458_vm3, %v1566_v15 }
 0x1f0   : > { %v4861_v35 = vpop.f32.mrf.mxu0  ;;  %4820 = vmatprep.mubr.msk.bf16.mxu1 %vm5359_vm1, %v5358_v0 }
 0x1f7   : > { %v6093_v10 = vpop.f32.mrf.mxu1  ;;  %4821 = vmatmul.mubr.msk.bf16.gmra.mxu1 %vm1458_vm3, %v1567_v58 }
 0x1f8   : > { %4824 = vmatprep.mubr.msk.bf16.mxu1 %vm5359_vm1, %v5358_v0 }
 0x1f9   : > { %v4756_v63 = vpop.f32.mrf.mxu1 }
 0x1fa   : > { %v6098_v42 = vpop.f32.mrf.mxu0 }
 0x1fb   : > { %v6100_v40 = vpop.f32.mrf.mxu1 }
 0x1fc   : > { %v4864_v41 = vpop.f32.mrf.mxu0 }
 0x1fd   : > { %v4757_v45 = vpop.f32.mrf.mxu1 }
 0x1fe   : > { %v6102_v56 = vpop.f32.mrf.mxu0 }
 0x1ff   : > { %4825 = vmatmul.mubr.msk.bf16.gmra.mxu1 %vm1458_vm3, %v1568_v2 }
 0x200   : > { %v4865_v6 = vpop.f32.mrf.mxu0  ;;  %4828 = vmatprep.mubr.msk.bf16.mxu1 %vm5359_vm1, %v5358_v0 }
 0x201   : > { %v5131_v6 = vld [vmem:[%s6844_s3 + $0x10] sm:$0xff]  }
 0x202   : > { %4963 = vmatpush3.bf16.msra.mxu0 %v5131_v6 }
 0x206   : > { %v6111_v51 = vpop.f32.mrf.mxu1 }
 0x207   : > { %4829 = vmatmul.mubr.msk.bf16.gmra.mxu1 %vm1458_vm3, %v1569_v46 }
 0x208   : > { %v4760_v54 = vpop.f32.mrf.mxu1  ;;  %4832 = vmatprep.mubr.msk.bf16.mxu1 %vm5359_vm1, %v5358_v0 }
 0x20a   : > { %v6116_v55 = vpop.f32.mrf.mxu1  ;;  %v6118_v57 = vpop.f32.mrf.mxu0 }
 0x20c   : > { %v4761_v14 = vpop.f32.mrf.mxu1  ;;  %v4868_v20 = vpop.f32.mrf.mxu0 }
 0x20e   : > { %v6120_v26 = vpop.f32.mrf.mxu0 }
 0x20f   : > { %4833 = vmatmul.mubr.msk.bf16.gmra.mxu1 %vm1458_vm3, %v1570_v61 }
 0x210   : > { %v4869_v21 = vpop.f32.mrf.mxu0  ;;  %4836 = vmatprep.mubr.msk.bf16.mxu1 %vm5359_vm1, %v5358_v0 }
 0x217   : > { %v6125_v8 = vpop.f32.mrf.mxu1  ;;  %4837 = vmatmul.mubr.msk.bf16.gmra.mxu1 %vm1458_vm3, %v1571_v27 }
 0x218   : > { %4840 = vmatprep.mubr.msk.bf16.mxu1 %vm5359_vm1, %v5358_v0 }
 0x219   : > { %v4764_v9 = vpop.f32.mrf.mxu1 }
 0x21a   : > { %v6130_v11 = vpop.f32.mrf.mxu0 }
 0x21b   : > { %v6132_v16 = vpop.f32.mrf.mxu1 }
 0x21c   : > { %v4872_v32 = vpop.f32.mrf.mxu0 }
 0x21d   : > { %v4765_v62 = vpop.f32.mrf.mxu1 }
 0x21e   : > { %v6134_v19 = vpop.f32.mrf.mxu0 }
 0x21f   : > { %4841 = vmatmul.mubr.msk.bf16.gmra.mxu1 %vm1458_vm3, %v1572_v18 }
 0x220   : > { %v4873_v44 = vpop.f32.mrf.mxu0  ;;  %4844 = vmatprep.mubr.msk.bf16.mxu1 %vm5359_vm1, %v5358_v0 }
 0x226   : > { %v6139_v28 = vpop.f32.mrf.mxu1 }
 0x227   : > { %4845 = vmatmul.mubr.msk.bf16.gmra.mxu1 %vm1458_vm3, %v1573_v24 }
 0x228   : > { %v4768_v29 = vpop.f32.mrf.mxu1  ;;  %4904 = vmatprep.mubr.msk.bf16.mxu1 %vm5359_vm1, %v5358_v0 }
 0x22a   : > { %v6144_v30 = vpop.f32.mrf.mxu1  ;;  %v6146_v31 = vpop.f32.mrf.mxu0 }
 0x22c   : > { %v4769_v15 = vpop.f32.mrf.mxu1  ;;  %v4876_v35 = vpop.f32.mrf.mxu0 }
 0x22e   : > { %v6148_v7 = vpop.f32.mrf.mxu0 }
 0x230   : > { %v4877_v52 = vpop.f32.mrf.mxu0 }
 0x237   : > { %v6150_v58 = vpop.f32.mrf.mxu1 }
 0x239   : > { %v4772_v63 = vpop.f32.mrf.mxu1 }
 0x23a   : > { %v6152_v33 = vpop.f32.mrf.mxu0 }
 0x23b   : > { %v6154_v41 = vpop.f32.mrf.mxu1 }
 0x23c   : > { %v4880_v1 = vpop.f32.mrf.mxu0 }
 0x23d   : > { %v4773_v45 = vpop.f32.mrf.mxu1 }
 0x23e   : > { %v6156_v2 = vpop.f32.mrf.mxu0 }
 0x240   : > { %v4881_v47 = vpop.f32.mrf.mxu0 }
 0x246   : > { %v6161_v49 = vpop.f32.mrf.mxu1 }
 0x248   : > { %v4776_v39 = vpop.f32.mrf.mxu1 }
 0x24a   : > { %v6163_v46 = vpop.f32.mrf.mxu1  ;;  %v6165_v54 = vpop.f32.mrf.mxu0 }
 0x24c   : > { %v4777_v13 = vpop.f32.mrf.mxu1  ;;  %v4884_v14 = vpop.f32.mrf.mxu0 }
 0x24e   : > { %v6167_v20 = vpop.f32.mrf.mxu0 }
 0x250   : > { %v4885_v59 = vpop.f32.mrf.mxu0 }
 0x257   : > { %v6169_v61 = vpop.f32.mrf.mxu1 }
 0x259   : > { %v4780_v21 = vpop.f32.mrf.mxu1 }
 0x25a   : > { %v6171_v60 = vpop.f32.mrf.mxu0 }
 0x25b   : > { %v6173_v23 = vpop.f32.mrf.mxu1 }
 0x25c   : > { %v4888_v27 = vpop.f32.mrf.mxu0 }
 0x25d   : > { %v4781_v9 = vpop.f32.mrf.mxu1 }
 0x25e   : > { %v6175_v38 = vpop.f32.mrf.mxu0 }
 0x260   : > { %v4889_v32 = vpop.f32.mrf.mxu0 }
 0x266   : > { %v6177_v36 = vpop.f32.mrf.mxu1 }
 0x268   : > { %v4784_v62 = vpop.f32.mrf.mxu1 }
 0x26a   : > { %v6179_v18 = vpop.f32.mrf.mxu1  ;;  %v6181_v44 = vpop.f32.mrf.mxu0 }
 0x26c   : > { %v4785_v22 = vpop.f32.mrf.mxu1  ;;  %v4892_v24 = vpop.f32.mrf.mxu0 }
 0x26e   : > { %v6183_v29 = vpop.f32.mrf.mxu0 }
 0x270   : > { %v4893_v15 = vpop.f32.mrf.mxu0 }
 0x277   : > { %v6185_v35 = vpop.f32.mrf.mxu1 }
 0x279   : > { %v4788_v52 = vpop.f32.mrf.mxu1 }
 0x27a   : > { %v6187_v63 = vpop.f32.mrf.mxu0 }
 0x27b   : > { %v6189_v1 = vpop.f32.mrf.mxu1 }
 0x27c   : > { %v4896_v45 = vpop.f32.mrf.mxu0 }
 0x27d   : > { %v4789_v47 = vpop.f32.mrf.mxu1 }
 0x27e   : > { %v6191_v6 = vpop.f32.mrf.mxu0 }
 0x27f   : > { %v6193_v39 = vpop.f32.mrf.mxu1 }
 0x280   : > { %v4897_v13 = vpop.f32.mrf.mxu0 }
 0x281   : > { %v4792_v14 = vpop.f32.mrf.mxu1 }
 0x282   : > { %v6195_v59 = vpop.f32.mrf.mxu0 }
 0x283   : > { %v1817_v21 = vpop.f32.mrf.mxu1 }
 0x284   : > { %v4900_v27 = vpop.f32.mrf.mxu0 }
 0x285   : > { %v4793_v9 = vpop.f32.mrf.mxu1 }
 0x286   : > { %v2244_v32 = vpop.f32.mrf.mxu0 }
 0x287   : > { %v1899_v62 = vpop.f32.mrf.mxu1 }
 0x288   : > { %v1900_v22 = vadd.f32 %v1899_v62, %v6051_v12  ;;  %v4901_v24 = vpop.f32.mrf.mxu0 }
 0x289   : > { %v4798_v15 = vpop.f32.mrf.mxu1 }
 0x28a   : > { %v6199_v52 = vadd.f32 %v6058_v3, %v1900_v22 }
 0x28b   : > { %v1902_v45 = vpop.f32.mrf.mxu1 }
 0x28c   : > { %v2272_v47 = vmul.f32 %v6199_v52, %v6199_v52  ;;  %v1903_v13 = vadd.f32 %v1902_v45, %v6056_v37 }
 0x28d   : > { %v4799_v14 = vpop.f32.mrf.mxu1 }
 0x28e   : > { %v2297_v21 = vmul.f32 %v2272_v47, %v6199_v52  ;;  %v6206_v27 = vadd.f32 %v6063_v4, %v1903_v13 }
 0x28f   : > { %v1907_v9 = vpop.f32.mrf.mxu1 }
 0x290   : > { %v2322_v32 = vmul.f32 0.044715, %v2297_v21  ;;  %v2273_v12 = vmul.f32 %v6206_v27, %v6206_v27  ;;  %v1908_v3 = vadd.f32 %v1907_v9, %v6065_v53 }
 0x291   : > { %v4802_v62 = vpop.f32.mrf.mxu1 }
 0x292   : > { %v2347_v22 = vadd.f32 %v2322_v32, %v6199_v52  ;;  %v2298_v24 = vmul.f32 %v2273_v12, %v6206_v27  ;;  %v6214_v37 = vadd.f32 %v6070_v50, %v1908_v3 }
 0x293   : > { %v1910_v15 = vpop.f32.mrf.mxu1 }
 0x294   : > { %v2372_v45 = vmul.f32 0.7978846, %v2347_v22  ;;  %v2323_v47 = vmul.f32 0.044715, %v2298_v24  ;;  %v2274_v4 = vmul.f32 %v6214_v37, %v6214_v37  ;;  %v1911_v13 = vadd.f32 %v1910_v15, %v6072_v34 }
 0x295   : > { %v4803_v14 = vpop.f32.mrf.mxu1 }
 0x296   : > { %5246 = vtanh.f32 %v2372_v45  ;;  %v2348_v53 = vadd.f32 %v2323_v47, %v6206_v27  ;;  %v2299_v21 = vmul.f32 %v2274_v4, %v6214_v37  ;;  %v6222_v9 = vadd.f32 %v6074_v17, %v1911_v13 }
 0x297   : > { %v1915_v32 = vpop.f32.mrf.mxu1 }
 0x298   : > { %v2373_v50 = vmul.f32 0.7978846, %v2348_v53  ;;  %v2324_v12 = vmul.f32 0.044715, %v2299_v21  ;;  %v2275_v3 = vmul.f32 %v6222_v9, %v6222_v9  ;;  %v1916_v62 = vadd.f32 %v1915_v32, %v6079_v43 }
 0x299   : > { %v4806_v22 = vpop.f32.mrf.mxu1 }
 0x29a   : > { %5248 = vtanh.f32 %v2373_v50  ;;  %v2349_v34 = vadd.f32 %v2324_v12, %v6214_v37  ;;  %v2300_v24 = vmul.f32 %v2275_v3, %v6222_v9  ;;  %v6230_v15 = vadd.f32 %v6086_v48, %v1916_v62 }
 0x29b   : > { %v1918_v45 = vpop.f32.mrf.mxu1 }
 0x29c   : > { %v2374_v17 = vmul.f32 0.7978846, %v2349_v34  ;;  %v2325_v47 = vmul.f32 0.044715, %v2300_v24  ;;  %v2276_v4 = vmul.f32 %v6230_v15, %v6230_v15  ;;  %v1919_v13 = vadd.f32 %v1918_v45, %v6084_v25 }
 0x29d   : > { %v4807_v14 = vpop.f32.mrf.mxu1 }
 0x29e   : > { %5250 = vtanh.f32 %v2374_v17  ;;  %v2350_v43 = vadd.f32 %v2325_v47, %v6222_v9  ;;  %v2301_v53 = vmul.f32 %v2276_v4, %v6230_v15  ;;  %v6238_v21 = vadd.f32 %v6088_v5, %v1919_v13 }
 0x29f   : > { %v1923_v32 = vpop.f32.mrf.mxu1 }
 0x2a0   : > { %v2375_v48 = vmul.f32 0.7978846, %v2350_v43  ;;  %v2326_v50 = vmul.f32 0.044715, %v2301_v53  ;;  %v2277_v12 = vmul.f32 %v6238_v21, %v6238_v21  ;;  %v1924_v3 = vadd.f32 %v1923_v32, %v6093_v10 }
 0x2a1   : > { %v4810_v62 = vpop.f32.mrf.mxu1 }
 0x2a2   : > { %5252 = vtanh.f32 %v2375_v48  ;;  %v2351_v25 = vadd.f32 %v2326_v50, %v6230_v15  ;;  %v2302_v22 = vmul.f32 %v2277_v12, %v6238_v21  ;;  %v6246_v34 = vadd.f32 %v6098_v42, %v1924_v3 }
 0x2a3   : > { %v5247_v24 = vpop.eup %5246  ;;  %v1926_v5 = vpop.f32.mrf.mxu1 }
 0x2a4   : > { %v2422_v45 = vadd.f32 1.0, %v5247_v24  ;;  %v2376_v17 = vmul.f32 0.7978846, %v2351_v25  ;;  %v2327_v47 = vmul.f32 0.044715, %v2302_v22  ;;  %v2278_v4 = vmul.f32 %v6246_v34, %v6246_v34 }
 0x2a5   : > { %v1927_v13 = vadd.f32 %v1926_v5, %v6100_v40  ;;  %v4811_v10 = vpop.f32.mrf.mxu1 }
 0x2a6   : > { %v2447_v14 = vmul.f32 0.5, %v2422_v45  ;;  %5254 = vtanh.f32 %v2376_v17  ;;  %v2352_v43 = vadd.f32 %v2327_v47, %v6238_v21  ;;  %v2303_v53 = vmul.f32 %v2278_v4, %v6246_v34 }
 0x2a7   : > { %v5249_v32 = vpop.eup %5248  ;;  %v6254_v42 = vadd.f32 %v6102_v56, %v1927_v13  ;;  %v1931_v48 = vpop.f32.mrf.mxu1 }
 0x2a8   : > { %v2472_v50 = vmul.f32 %v2447_v14, %v6199_v52  ;;  %v2423_v12 = vadd.f32 1.0, %v5249_v32  ;;  %v2377_v3 = vmul.f32 0.7978846, %v2352_v43  ;;  %v2328_v62 = vmul.f32 0.044715, %v2303_v53 }
 0x2a9   : > { %v2279_v40 = vmul.f32 %v6254_v42, %v6254_v42  ;;  %v1932_v25 = vadd.f32 %v1931_v48, %v6111_v51  ;;  %v4814_v22 = vpop.f32.mrf.mxu1 }
 0x2aa   : > { %2497 = vst.msk [vmem:[#allocation3] sm:$0xff] %vm1458_vm3, %v2472_v50  ;;  %v2448_v24 = vmul.f32 0.5, %v2423_v12  ;;  %5256 = vtanh.f32 %v2377_v3  ;;  %v2353_v5 = vadd.f32 %v2328_v62, %v6246_v34 }
 0x2ab   : > { %v5251_v56 = vpop.eup %5250  ;;  %v2304_v45 = vmul.f32 %v2279_v40, %v6254_v42  ;;  %v6264_v52 = vadd.f32 %v6118_v57, %v1932_v25  ;;  %v1934_v17 = vpop.f32.mrf.mxu1 }
 0x2ac   : > { %v2473_v47 = vmul.f32 %v2448_v24, %v6206_v27  ;;  %v2424_v4 = vadd.f32 1.0, %v5251_v56  ;;  %v2378_v13 = vmul.f32 0.7978846, %v2353_v5  ;;  %v1935_v51 = vadd.f32 %v1934_v17, %v6116_v55 }
 0x2ad   : > { %v2329_v10 = vmul.f32 0.044715, %v2304_v45  ;;  %v2280_v14 = vmul.f32 %v6264_v52, %v6264_v52  ;;  %v4815_v43 = vpop.f32.mrf.mxu1 }
 0x2ae   : > { %2498 = vst.msk [vmem:[#allocation3 + $0x8] sm:$0xff] %vm1458_vm3, %v2473_v47  ;;  %v2449_v53 = vmul.f32 0.5, %v2424_v4  ;;  %5258 = vtanh.f32 %v2378_v13  ;;  %v6272_v32 = vadd.f32 %v6120_v26, %v1935_v51 }
 0x2af   : > { %v5253_v57 = vpop.eup %5252  ;;  %v2354_v48 = vadd.f32 %v2329_v10, %v6254_v42  ;;  %v2305_v27 = vmul.f32 %v2280_v14, %v6264_v52  ;;  %v1939_v50 = vpop.f32.mrf.mxu1 }
 0x2b0   : > { %v2474_v55 = vmul.f32 %v2449_v53, %v6214_v37  ;;  %v2425_v12 = vadd.f32 1.0, %v5253_v57  ;;  %v2281_v3 = vmul.f32 %v6272_v32, %v6272_v32  ;;  %v1940_v62 = vadd.f32 %v1939_v50, %v6125_v8 }
 0x2b1   : > { %v2379_v40 = vmul.f32 0.7978846, %v2354_v48  ;;  %v2330_v25 = vmul.f32 0.044715, %v2305_v27  ;;  %v4818_v22 = vpop.f32.mrf.mxu1 }
 0x2b2   : > { %2499 = vst.msk [vmem:[#allocation3 + $0x10] sm:$0xff] %vm1458_vm3, %v2474_v55  ;;  %v2450_v26 = vmul.f32 0.5, %v2425_v12  ;;  %v2306_v24 = vmul.f32 %v2281_v3, %v6272_v32  ;;  %v6283_v5 = vadd.f32 %v6130_v11, %v1940_v62 }
 0x2b3   : > { %v5255_v56 = vpop.eup %5254  ;;  %5260 = vtanh.f32 %v2379_v40  ;;  %v2355_v37 = vadd.f32 %v2330_v25, %v6264_v52  ;;  %v1942_v45 = vpop.f32.mrf.mxu1 }
 0x2b4   : > { %v2475_v17 = vmul.f32 %v2450_v26, %v6222_v9  ;;  %v2426_v47 = vadd.f32 1.0, %v5255_v56  ;;  %v2331_v8 = vmul.f32 0.044715, %v2306_v24  ;;  %v2282_v4 = vmul.f32 %v6283_v5, %v6283_v5 }
 0x2b5   : > { %v2380_v13 = vmul.f32 0.7978846, %v2355_v37  ;;  %v1943_v51 = vadd.f32 %v1942_v45, %v6132_v16  ;;  %v4819_v10 = vpop.f32.mrf.mxu1  ;;  %v5132_v37 = vld [vmem:[%s6844_s3] sm:$0xff]  }
 0x2b6   : > { %2500 = vst.msk [vmem:[#allocation3 + $0x18] sm:$0xff] %vm1458_vm3, %v2475_v17  ;;  %v2451_v11 = vmul.f32 0.5, %v2426_v47  ;;  %v2356_v14 = vadd.f32 %v2331_v8, %v6272_v32  ;;  %v2307_v43 = vmul.f32 %v2282_v4, %v6283_v5  ;;  %v2557_v8 = vld [vmem:[#allocation3 + $0x1] ss:$2 sm:$0xff] }
 0x2b7   : > { %v5257_v53 = vpop.eup %5256  ;;  %5262 = vtanh.f32 %v2380_v13  ;;  %v6294_v9 = vadd.f32 %v6134_v19, %v1943_v51  ;;  %v1947_v57 = vpop.f32.mrf.mxu1 }
 0x2b8   : > { %v2476_v48 = vmul.f32 %v2451_v11, %v6230_v15  ;;  %v2427_v27 = vadd.f32 1.0, %v5257_v53  ;;  %v2381_v50 = vmul.f32 0.7978846, %v2356_v14  ;;  %v2332_v55 = vmul.f32 0.044715, %v2307_v43 }
 0x2b9   : > { %v2283_v16 = vmul.f32 %v6294_v9, %v6294_v9  ;;  %v1948_v12 = vadd.f32 %v1947_v57, %v6139_v28  ;;  %v4822_v3 = vpop.f32.mrf.mxu1 }
 0x2ba   : > { %2501 = vst.msk [vmem:[#allocation3 + $0x20] sm:$0xff] %vm1458_vm3, %v2476_v48  ;;  %v2452_v62 = vmul.f32 0.5, %v2427_v27  ;;  %5264 = vtanh.f32 %v2381_v50  ;;  %v2357_v40 = vadd.f32 %v2332_v55, %v6283_v5  ;;  %v2822_v55 = vld [vmem:[#allocation3 + $0x2] ss:$2 sm:$0xff] }
 0x2bb   : > { %v5259_v19 = vpop.eup %5258  ;;  %v2308_v25 = vmul.f32 %v2283_v16, %v6294_v9  ;;  %v6304_v15 = vadd.f32 %v6146_v31, %v1948_v12  ;;  %v1950_v22 = vpop.f32.mrf.mxu1 }
 0x2bc   : > { %v2477_v26 = vmul.f32 %v2452_v62, %v6238_v21  ;;  %v2428_v24 = vadd.f32 1.0, %v5259_v19  ;;  %v2382_v56 = vmul.f32 0.7978846, %v2357_v40  ;;  %v1951_v28 = vadd.f32 %v1950_v22, %v6144_v30 }
 0x2bd   : > { %v2333_v45 = vmul.f32 0.044715, %v2308_v25  ;;  %v2284_v17 = vmul.f32 %v6304_v15, %v6304_v15  ;;  %v4823_v47 = vpop.f32.mrf.mxu1  ;;  %v2559_v4 = vld [vmem:[#allocation3 + $0x11] ss:$2 sm:$0xff] }
 0x2be   : > { %2502 = vst.msk [vmem:[#allocation3 + $0x28] sm:$0xff] %vm1458_vm3, %v2477_v26  ;;  %v2453_v31 = vmul.f32 0.5, %v2428_v24  ;;  %5266 = vtanh.f32 %v2382_v56  ;;  %v6315_v21 = vadd.f32 %v6148_v7, %v1951_v28  ;;  %v2584_v13 = vpack.c.bf16 %v2559_v4, %v2557_v8 }
 0x2bf   : > { %v2358_v30 = vadd.f32 %v2333_v45, %v6294_v9  ;;  %v2309_v51 = vmul.f32 %v2284_v17, %v6304_v15  ;;  %v1955_v10 = vpop.f32.mrf.mxu1 }
 0x2c0   : > { %v5261_v11 = vpop.eup %5260  ;;  %v2478_v14 = vmul.f32 %v2453_v31, %v6246_v34  ;;  %v2285_v43 = vmul.f32 %v6315_v21, %v6315_v21  ;;  %v1956_v53 = vadd.f32 %v1955_v10, %v6150_v58  ;;  %4905 = vmatmul.mubr.msk.bf16.vlgmr.msra.gmra.mxu1 %vm1458_vm3, %v2584_v13 }
 0x2c1   : > { %v2429_v57 = vadd.f32 1.0, %v5261_v11  ;;  %v2383_v48 = vmul.f32 0.7978846, %v2358_v30  ;;  %v2334_v7 = vmul.f32 0.044715, %v2309_v51  ;;  %v4826_v27 = vpop.f32.mrf.mxu1  ;;  %4908 = vmatprep.mubr.msk.bf16.mxu1 %vm5359_vm1, %v5358_v0  ;;  %4933 = vmatpush3.bf16.msra.mxu1 %v5132_v37 }
 0x2c2   : > { %2503 = vst.msk [vmem:[#allocation3 + $0x30] sm:$0xff] %vm1458_vm3, %v2478_v14  ;;  %v2310_v50 = vmul.f32 %v2285_v43, %v6315_v21  ;;  %v6329_v34 = vadd.f32 %v6152_v33, %v1956_v53  ;;  %v2824_v16 = vld [vmem:[#allocation3 + $0x12] ss:$2 sm:$0xff] }
 0x2c3   : > { %v2454_v58 = vmul.f32 0.5, %v2429_v57  ;;  %5268 = vtanh.f32 %v2383_v48  ;;  %v2359_v12 = vadd.f32 %v2334_v7, %v6304_v15  ;;  %v1958_v3 = vpop.f32.mrf.mxu1  ;;  %v2849_v62 = vpack.c.bf16 %v2824_v16, %v2822_v55 }
 0x2c4   : > { %v5263_v40 = vpop.eup %5262  ;;  %v2335_v19 = vmul.f32 0.044715, %v2310_v50  ;;  %v2286_v25 = vmul.f32 %v6329_v34, %v6329_v34  ;;  %v1959_v22 = vadd.f32 %v1958_v3, %v6154_v41 }
 0x2c5   : > { %v2479_v26 = vmul.f32 %v2454_v58, %v6254_v42  ;;  %v2430_v24 = vadd.f32 1.0, %v5263_v40  ;;  %v2384_v33 = vmul.f32 0.7978846, %v2359_v12  ;;  %4965 = vmatmul.mubr.msk.bf16.vlgmr.msra.gmra.mxu0 %vm1458_vm3, %v2849_v62  ;;  %v4827_v56 = vpop.f32.mrf.mxu1 }
 0x2c6   : > { %v2360_v28 = vadd.f32 %v2335_v19, %v6315_v21  ;;  %v2311_v37 = vmul.f32 %v2286_v25, %v6329_v34  ;;  %v6340_v45 = vadd.f32 %v6156_v2, %v1959_v22  ;;  %4968 = vmatprep.mubr.msk.bf16.mxu0 %vm5359_vm1, %v5358_v0 }
 0x2c7   : > { %v5265_v17 = vpop.eup %5264  ;;  %2504 = vst.msk [vmem:[#allocation3 + $0x38] sm:$0xff] %vm1458_vm3, %v2479_v26  ;;  %v2455_v41 = vmul.f32 0.5, %v2430_v24  ;;  %5270 = vtanh.f32 %v2384_v33  ;;  %v1963_v42 = vpop.f32.mrf.mxu1 }
 0x2c8   : > { %v2431_v47 = vadd.f32 1.0, %v5265_v17  ;;  %v2385_v8 = vmul.f32 0.7978846, %v2360_v28  ;;  %v2336_v4 = vmul.f32 0.044715, %v2311_v37  ;;  %v2287_v31 = vmul.f32 %v6340_v45, %v6340_v45 }
 0x2c9   : > { %v2480_v13 = vmul.f32 %v2455_v41, %v6264_v52  ;;  %v1964_v2 = vadd.f32 %v1963_v42, %v6161_v49  ;;  %v4830_v30 = vpop.f32.mrf.mxu1  ;;  %v2826_v56 = vld [vmem:[#allocation3 + $0x22] ss:$2 sm:$0xff] }
 0x2ca   : > { %v2456_v51 = vmul.f32 0.5, %v2431_v47  ;;  %5272 = vtanh.f32 %v2385_v8  ;;  %v2361_v10 = vadd.f32 %v2336_v4, %v6329_v34  ;;  %v2312_v11 = vmul.f32 %v2287_v31, %v6340_v45 }
 0x2cb   : > { %v5267_v14 = vpop.eup %5266  ;;  %2505 = vst.msk [vmem:[#allocation3 + $0x40] sm:$0xff] %vm1458_vm3, %v2480_v13  ;;  %v6353_v43 = vadd.f32 %v6165_v54, %v1964_v2  ;;  %v1966_v53 = vpop.f32.mrf.mxu1  ;;  %v2561_v54 = vld [vmem:[#allocation3 + $0x21] ss:$2 sm:$0xff] }
 0x2cc   : > { %v2481_v57 = vmul.f32 %v2456_v51, %v6272_v32  ;;  %v2432_v48 = vadd.f32 1.0, %v5267_v14  ;;  %v2386_v52 = vmul.f32 0.7978846, %v2361_v10  ;;  %v2337_v7 = vmul.f32 0.044715, %v2312_v11 }
 0x2cd   : > { %v2288_v49 = vmul.f32 %v6353_v43, %v6353_v43  ;;  %v1967_v27 = vadd.f32 %v1966_v53, %v6163_v46  ;;  %v4831_v50 = vpop.f32.mrf.mxu1 }
 0x2ce   : > { %2506 = vst.msk [vmem:[#allocation3 + $0x48] sm:$0xff] %vm1458_vm3, %v2481_v57  ;;  %v2457_v55 = vmul.f32 0.5, %v2432_v48  ;;  %5274 = vtanh.f32 %v2386_v52  ;;  %v2362_v16 = vadd.f32 %v2337_v7, %v6340_v45  ;;  %v2563_v58 = vld [vmem:[#allocation3 + $0x31] ss:$2 sm:$0xff] }
 0x2cf   : > { %v2313_v12 = vmul.f32 %v2288_v49, %v6353_v43  ;;  %v6363_v32 = vadd.f32 %v6167_v20, %v1967_v27  ;;  %v1971_v3 = vpop.f32.mrf.mxu1  ;;  %v2585_v62 = vpack.c.bf16 %v2563_v58, %v2561_v54 }
 0x2d0   : > { %v5269_v40 = vpop.eup %5268  ;;  %v2482_v19 = vmul.f32 %v2457_v55, %v6283_v5  ;;  %v2387_v46 = vmul.f32 0.7978846, %v2362_v16  ;;  %v1972_v25 = vadd.f32 %v1971_v3, %v6169_v61 }
 0x2d1   : > { %v2433_v22 = vadd.f32 1.0, %v5269_v40  ;;  %v2338_v26 = vmul.f32 0.044715, %v2313_v12  ;;  %v2289_v24 = vmul.f32 %v6363_v32, %v6363_v32  ;;  %4909 = vmatmul.mubr.msk.bf16.gmra.mxu1 %vm1458_vm3, %v2585_v62  ;;  %v4834_v33 = vpop.f32.mrf.mxu1 }
 0x2d2   : > { %2507 = vst.msk [vmem:[#allocation3 + $0x50] sm:$0xff] %vm1458_vm3, %v2482_v19  ;;  %5276 = vtanh.f32 %v2387_v46  ;;  %v6372_v20 = vadd.f32 %v6171_v60, %v1972_v25  ;;  %v2828_v28 = vld [vmem:[#allocation3 + $0x32] ss:$2 sm:$0xff]  ;;  %4912 = vmatprep.mubr.msk.bf16.mxu1 %vm5359_vm1, %v5358_v0 }
 0x2d3   : > { %v2458_v61 = vmul.f32 0.5, %v2433_v22  ;;  %v2363_v5 = vadd.f32 %v2338_v26, %v6353_v43  ;;  %v2314_v37 = vmul.f32 %v2289_v24, %v6363_v32  ;;  %v1974_v17 = vpop.f32.mrf.mxu1  ;;  %v2850_v41 = vpack.c.bf16 %v2828_v28, %v2826_v56 }
 0x2d4   : > { %v5271_v42 = vpop.eup %5270  ;;  %v2290_v47 = vmul.f32 %v6372_v20, %v6372_v20  ;;  %v1975_v8 = vadd.f32 %v1974_v17, %v6173_v23 }
 0x2d5   : > { %v2483_v60 = vmul.f32 %v2458_v61, %v6294_v9  ;;  %v2434_v4 = vadd.f32 1.0, %v5271_v42  ;;  %v2388_v31 = vmul.f32 0.7978846, %v2363_v5  ;;  %v2339_v13 = vmul.f32 0.044715, %v2314_v37  ;;  %4969 = vmatmul.mubr.msk.bf16.gmra.mxu0 %vm1458_vm3, %v2850_v41  ;;  %v4835_v2 = vpop.f32.mrf.mxu1 }
 0x2d6   : > { %v2315_v30 = vmul.f32 %v2290_v47, %v6372_v20  ;;  %v6385_v51 = vadd.f32 %v6175_v38, %v1975_v8  ;;  %4972 = vmatprep.mubr.msk.bf16.mxu0 %vm5359_vm1, %v5358_v0  ;;  %v2565_v46 = vld [vmem:[#allocation3 + $0x41] ss:$2 sm:$0xff] }
 0x2d7   : > { %v5273_v10 = vpop.eup %5272  ;;  %2508 = vst.msk [vmem:[#allocation3 + $0x58] sm:$0xff] %vm1458_vm3, %v2483_v60  ;;  %v2459_v23 = vmul.f32 0.5, %v2434_v4  ;;  %5278 = vtanh.f32 %v2388_v31  ;;  %v2364_v9 = vadd.f32 %v2339_v13, %v6363_v32  ;;  %v1979_v11 = vpop.f32.mrf.mxu1 }
 0x2d8   : > { %v2435_v14 = vadd.f32 1.0, %v5273_v10  ;;  %v2340_v53 = vmul.f32 0.044715, %v2315_v30  ;;  %v2291_v57 = vmul.f32 %v6385_v51, %v6385_v51  ;;  %v1980_v48 = vadd.f32 %v1979_v11, %v6177_v36 }
 0x2d9   : > { %v2484_v38 = vmul.f32 %v2459_v23, %v6304_v15  ;;  %v2389_v52 = vmul.f32 0.7978846, %v2364_v9  ;;  %v4838_v7 = vpop.f32.mrf.mxu1  ;;  %v2830_v42 = vld [vmem:[#allocation3 + $0x42] ss:$2 sm:$0xff] }
 0x2da   : > { %v2460_v49 = vmul.f32 0.5, %v2435_v14  ;;  %v2365_v27 = vadd.f32 %v2340_v53, %v6372_v20  ;;  %v2316_v50 = vmul.f32 %v2291_v57, %v6385_v51  ;;  %v6398_v55 = vadd.f32 %v6181_v44, %v1980_v48 }
 0x2db   : > { %v5275_v16 = vpop.eup %5274  ;;  %2509 = vst.msk [vmem:[#allocation3 + $0x60] sm:$0xff] %vm1458_vm3, %v2484_v38  ;;  %5280 = vtanh.f32 %v2389_v52  ;;  %v1982_v54 = vpop.f32.mrf.mxu1 }
 0x2dc   : > { %v2485_v58 = vmul.f32 %v2460_v49, %v6315_v21  ;;  %v2436_v36 = vadd.f32 1.0, %v5275_v16  ;;  %v2390_v12 = vmul.f32 0.7978846, %v2365_v27  ;;  %v2341_v15 = vmul.f32 0.044715, %v2316_v50 }
 0x2dd   : > { %v2292_v3 = vmul.f32 %v6398_v55, %v6398_v55  ;;  %v1983_v62 = vadd.f32 %v1982_v54, %v6179_v18  ;;  %v4839_v40 = vpop.f32.mrf.mxu1 }
 0x2de   : > { %2510 = vst.msk [vmem:[#allocation3 + $0x68] sm:$0xff] %vm1458_vm3, %v2485_v58  ;;  %v2461_v44 = vmul.f32 0.5, %v2436_v36  ;;  %5282 = vtanh.f32 %v2390_v12  ;;  %v2366_v19 = vadd.f32 %v2341_v15, %v6385_v51  ;;  %v2567_v25 = vld [vmem:[#allocation3 + $0x51] ss:$2 sm:$0xff] }
 0x2df   : > { %v5277_v22 = vpop.eup %5276  ;;  %v2317_v21 = vmul.f32 %v2292_v3, %v6398_v55  ;;  %v6409_v26 = vadd.f32 %v6183_v29, %v1983_v62  ;;  %v1987_v24 = vpop.f32.mrf.mxu1  ;;  %v2586_v33 = vpack.c.bf16 %v2567_v25, %v2565_v46 }
 0x2e0   : > { %v2486_v56 = vmul.f32 %v2461_v44, %v6329_v34  ;;  %v2437_v18 = vadd.f32 1.0, %v5277_v22  ;;  %v2391_v28 = vmul.f32 0.7978846, %v2366_v19  ;;  %v1988_v61 = vadd.f32 %v1987_v24, %v6185_v35 }
 0x2e1   : > { %v2342_v5 = vmul.f32 0.044715, %v2317_v21  ;;  %v2293_v37 = vmul.f32 %v6409_v26, %v6409_v26  ;;  %4913 = vmatmul.mubr.msk.bf16.gmra.mxu1 %vm1458_vm3, %v2586_v33  ;;  %v4842_v17 = vpop.f32.mrf.mxu1 }
 0x2e2   : > { %2511 = vst.msk [vmem:[#allocation3 + $0x70] sm:$0xff] %vm1458_vm3, %v2486_v56  ;;  %v2462_v41 = vmul.f32 0.5, %v2437_v18  ;;  %5284 = vtanh.f32 %v2391_v28  ;;  %v6418_v29 = vadd.f32 %v6187_v63, %v1988_v61  ;;  %v2832_v34 = vld [vmem:[#allocation3 + $0x52] ss:$2 sm:$0xff]  ;;  %4916 = vmatprep.mubr.msk.bf16.mxu1 %vm5359_vm1, %v5358_v0 }
 0x2e3   : > { %v2367_v35 = vadd.f32 %v2342_v5, %v6398_v55  ;;  %v2318_v47 = vmul.f32 %v2293_v37, %v6409_v26  ;;  %v1990_v8 = vpop.f32.mrf.mxu1  ;;  %v2851_v60 = vpack.c.bf16 %v2832_v34, %v2830_v42 }
 0x2e4   : > { %v5279_v4 = vpop.eup %5278  ;;  %v2487_v31 = vmul.f32 %v2462_v41, %v6340_v45  ;;  %v2294_v13 = vmul.f32 %v6418_v29, %v6418_v29  ;;  %v1991_v63 = vadd.f32 %v1990_v8, %v6189_v1 }
 0x2e5   : > { %v2438_v2 = vadd.f32 1.0, %v5279_v4  ;;  %v2392_v30 = vmul.f32 0.7978846, %v2367_v35  ;;  %v2343_v10 = vmul.f32 0.044715, %v2318_v47  ;;  %4973 = vmatmul.mubr.msk.bf16.gmra.mxu0 %vm1458_vm3, %v2851_v60  ;;  %v4843_v23 = vpop.f32.mrf.mxu1 }
 0x2e6   : > { %2512 = vst.msk [vmem:[#allocation3 + $0x78] sm:$0xff] %vm1458_vm3, %v2487_v31  ;;  %v2319_v9 = vmul.f32 %v2294_v13, %v6418_v29  ;;  %v6432_v11 = vadd.f32 %v6191_v6, %v1991_v63  ;;  %4976 = vmatprep.mubr.msk.bf16.mxu0 %vm5359_vm1, %v5358_v0  ;;  %v2569_v46 = vld [vmem:[#allocation3 + $0x61] ss:$2 sm:$0xff] }
 0x2e7   : > { %v2463_v45 = vmul.f32 0.5, %v2438_v2  ;;  %5286 = vtanh.f32 %v2392_v30  ;;  %v2368_v1 = vadd.f32 %v2343_v10, %v6409_v26  ;;  %v1995_v14 = vpop.f32.mrf.mxu1 }
 0x2e8   : > { %v5281_v53 = vpop.eup %5280  ;;  %v2344_v57 = vmul.f32 0.044715, %v2319_v9  ;;  %v2295_v48 = vmul.f32 %v6432_v11, %v6432_v11  ;;  %v1996_v38 = vadd.f32 %v1995_v14, %v6193_v39 }
 0x2e9   : > { %v2488_v52 = vmul.f32 %v2463_v45, %v6353_v43  ;;  %v2439_v7 = vadd.f32 1.0, %v5281_v53  ;;  %v2393_v6 = vmul.f32 0.7978846, %v2368_v1  ;;  %v4846_v49 = vpop.f32.mrf.mxu1  ;;  %v2834_v28 = vld [vmem:[#allocation3 + $0x62] ss:$2 sm:$0xff] }
 0x2ea   : > { %v2369_v27 = vadd.f32 %v2344_v57, %v6418_v29  ;;  %v2320_v50 = vmul.f32 %v2295_v48, %v6432_v11  ;;  %v6444_v16 = vadd.f32 %v6195_v59, %v1996_v38 }
 0x2eb   : > { %v5283_v54 = vpop.eup %5282  ;;  %2513 = vst.msk [vmem:[#allocation3 + $0x80] sm:$0xff] %vm1458_vm3, %v2488_v52  ;;  %v2464_v58 = vmul.f32 0.5, %v2439_v7  ;;  %5288 = vtanh.f32 %v2393_v6  ;;  %v1998_v36 = vpop.f32.mrf.mxu1 }
 0x2ec   : > { %v2440_v12 = vadd.f32 1.0, %v5283_v54  ;;  %v2394_v39 = vmul.f32 0.7978846, %v2369_v27  ;;  %v2345_v15 = vmul.f32 0.044715, %v2320_v50  ;;  %v2296_v43 = vmul.f32 %v6444_v16, %v6444_v16 }
 0x2ed   : > { %v2489_v3 = vmul.f32 %v2464_v58, %v6363_v32  ;;  %v4847_v62 = vpop.f32.mrf.mxu1  ;;  %v2571_v40 = vld [vmem:[#allocation3 + $0x71] ss:$2 sm:$0xff]  ;;  %v2524_v54 = vld [vmem:[#allocation3 + $0x10] ss:$2 sm:$0xff]  ;;  %v2522_v58 = vld [vmem:[#allocation3] ss:$2 sm:$0xff] }
 0x2ee   : > { %v2465_v44 = vmul.f32 0.5, %v2440_v12  ;;  %5290 = vtanh.f32 %v2394_v39  ;;  %v2370_v59 = vadd.f32 %v2345_v15, %v6432_v11  ;;  %v2321_v19 = vmul.f32 %v2296_v43, %v6444_v16  ;;  %v2528_v12 = vld [vmem:[#allocation3 + $0x30] ss:$2 sm:$0xff]  ;;  %v2526_v39 = vld [vmem:[#allocation3 + $0x20] ss:$2 sm:$0xff] }
 0x2ef   : > { %v5285_v25 = vpop.eup %5284  ;;  %2514 = vst.msk [vmem:[#allocation3 + $0x88] sm:$0xff] %vm1458_vm3, %v2489_v3  ;;  %v2587_v22 = vpack.c.bf16 %v2571_v40, %v2569_v46  ;;  %v2549_v36 = vpack.c.bf16 %v2524_v54, %v2522_v58  ;;  %v2550_v15 = vpack.c.bf16 %v2528_v12, %v2526_v39  ;;  %v2532_v43 = vld [vmem:[#allocation3 + $0x50] ss:$2 sm:$0xff]  ;;  %v2530_v3 = vld [vmem:[#allocation3 + $0x40] ss:$2 sm:$0xff] }
 0x2f0   : > { %v2490_v21 = vmul.f32 %v2465_v44, %v6372_v20  ;;  %v2441_v24 = vadd.f32 1.0, %v5285_v25  ;;  %v2395_v33 = vmul.f32 0.7978846, %v2370_v59  ;;  %v2346_v56 = vmul.f32 0.044715, %v2321_v19 }
 0x2f1   : > { %4917 = vmatmul.mubr.msk.bf16.gmra.mxu1 %vm1458_vm3, %v2587_v22  ;;  %v2551_v62 = vpack.c.bf16 %v2532_v43, %v2530_v3  ;;  %v2536_v40 = vld [vmem:[#allocation3 + $0x70] ss:$2 sm:$0xff]  ;;  %v2534_v44 = vld [vmem:[#allocation3 + $0x60] ss:$2 sm:$0xff] }
 0x2f2   : > { %2515 = vst.msk [vmem:[#allocation3 + $0x90] sm:$0xff] %vm1458_vm3, %v2490_v21  ;;  %v2466_v32 = vmul.f32 0.5, %v2441_v24  ;;  %5292 = vtanh.f32 %v2395_v33  ;;  %v2371_v18 = vadd.f32 %v2346_v56, %v6444_v16  ;;  %v2836_v61 = vld [vmem:[#allocation3 + $0x72] ss:$2 sm:$0xff]  ;;  %4920 = vmatprep.mubr.msk.bf16.mxu1 %vm5359_vm1, %v5358_v0  ;;  %v2552_v59 = vpack.c.bf16 %v2536_v40, %v2534_v44 }
 0x2f3   : > { %v2852_v5 = vpack.c.bf16 %v2836_v61, %v2834_v28 }
 0x2f4   : > { %v5287_v37 = vpop.eup %5286  ;;  %v2491_v20 = vmul.f32 %v2466_v32, %v6385_v51  ;;  %v2396_v17 = vmul.f32 0.7978846, %v2371_v18 }
 0x2f5   : > { %v2442_v41 = vadd.f32 1.0, %v5287_v37  ;;  %4977 = vmatmul.mubr.msk.bf16.gmra.mxu0 %vm1458_vm3, %v2852_v5 }
 0x2f6   : > { %2516 = vst.msk [vmem:[#allocation3 + $0x98] sm:$0xff] %vm1458_vm3, %v2491_v20  ;;  %5294 = vtanh.f32 %v2396_v17  ;;  %4980 = vmatprep.mubr.msk.bf16.mxu0 %vm5359_vm1, %v5358_v0  ;;  %v2573_v31 = vld [vmem:[#allocation3 + $0x81] ss:$2 sm:$0xff]  ;;  %v2538_v46 = vld [vmem:[#allocation3 + $0x80] ss:$2 sm:$0xff] }
 0x2f7   : > { %v2467_v42 = vmul.f32 0.5, %v2442_v41 }
 0x2f8   : > { %v5289_v34 = vpop.eup %5288 }
 0x2f9   : > { %v2492_v35 = vmul.f32 %v2467_v42, %v6398_v55  ;;  %v2443_v47 = vadd.f32 1.0, %v5289_v34  ;;  %v2838_v9 = vld [vmem:[#allocation3 + $0x82] ss:$2 sm:$0xff] }
 0x2fb   : > { %v5291_v8 = vpop.eup %5290  ;;  %2517 = vst.msk [vmem:[#allocation3 + $0xa0] sm:$0xff] %vm1458_vm3, %v2492_v35  ;;  %v2468_v60 = vmul.f32 0.5, %v2443_v47 }
 0x2fc   : > { %v2444_v51 = vadd.f32 1.0, %v5291_v8 }
 0x2fd   : > { %v2493_v4 = vmul.f32 %v2468_v60, %v6409_v26  ;;  %v2575_v13 = vld [vmem:[#allocation3 + $0x91] ss:$2 sm:$0xff]  ;;  %v2540_v19 = vld [vmem:[#allocation3 + $0x90] ss:$2 sm:$0xff] }
 0x2fe   : > { %v2469_v63 = vmul.f32 0.5, %v2444_v51  ;;  %v2588_v2 = vpack.c.bf16 %v2575_v13, %v2573_v31  ;;  %v2553_v25 = vpack.c.bf16 %v2540_v19, %v2538_v46 }
 0x2ff   : > { %v5293_v30 = vpop.eup %5292  ;;  %2518 = vst.msk [vmem:[#allocation3 + $0xa8] sm:$0xff] %vm1458_vm3, %v2493_v4  ;;  %v5133_v4 = vld [vmem:[%s6845_s4 + $0x8] sm:$0xff]  }
 0x300   : > { %v2494_v10 = vmul.f32 %v2469_v63, %v6418_v29  ;;  %v2445_v23 = vadd.f32 1.0, %v5293_v30  ;;  %4921 = vmatmul.mubr.msk.bf16.gmra.mxu1 %vm1458_vm3, %v2588_v2  ;;  %4992 = vmatprep.subr.bf16.mxu1 %v5133_v4 }
 0x301   : > { %4924 = vmatprep.mubr.msk.bf16.mxu1 %vm5359_vm1, %v5358_v0 }
 0x302   : > { %2519 = vst.msk [vmem:[#allocation3 + $0xb0] sm:$0xff] %vm1458_vm3, %v2494_v10  ;;  %v2470_v55 = vmul.f32 0.5, %v2445_v23  ;;  %v2840_v26 = vld [vmem:[#allocation3 + $0x92] ss:$2 sm:$0xff] }
 0x303   : > { %v5295_v45 = vpop.eup %5294  ;;  %v2853_v1 = vpack.c.bf16 %v2840_v26, %v2838_v9 }
 0x304   : > { %v2495_v14 = vmul.f32 %v2470_v55, %v6432_v11  ;;  %v2446_v53 = vadd.f32 1.0, %v5295_v45  ;;  %v6537_v45 = vld [vmem:[%s6845_s4] sm:$0xff]  }
 0x305   : > { %4981 = vmatmul.mubr.msk.bf16.gmra.mxu0 %vm1458_vm3, %v2853_v1 }
 0x306   : > { %2520 = vst.msk [vmem:[#allocation3 + $0xb8] sm:$0xff] %vm1458_vm3, %v2495_v14  ;;  %v2471_v29 = vmul.f32 0.5, %v2446_v53  ;;  %4984 = vmatprep.mubr.msk.bf16.mxu0 %vm5359_vm1, %v5358_v0  ;;  %v2577_v48 = vld [vmem:[#allocation3 + $0xa1] ss:$2 sm:$0xff]  ;;  %v2542_v21 = vld [vmem:[#allocation3 + $0xa0] ss:$2 sm:$0xff] }
 0x308   : > { %v2496_v57 = vmul.f32 %v2471_v29, %v6444_v16 }
 0x309   : > { %v2842_v7 = vld [vmem:[#allocation3 + $0xa2] ss:$2 sm:$0xff] }
 0x30a   : > { %2521 = vst.msk [vmem:[#allocation3 + $0xc0] sm:$0x7f] %vm1508_vm4, %v2496_v57 }
 0x30d   : > { %v2579_v38 = vld [vmem:[#allocation3 + $0xb1] ss:$2 sm:$0xff]  ;;  %v2544_v22 = vld [vmem:[#allocation3 + $0xb0] ss:$2 sm:$0xff] }
 0x30e   : > { %v2589_v52 = vpack.c.bf16 %v2579_v38, %v2577_v48  ;;  %v2554_v24 = vpack.c.bf16 %v2544_v22, %v2542_v21 }
 0x310   : > { %4925 = vmatmul.mubr.msk.bf16.gmra.mxu1 %vm1458_vm3, %v2589_v52 }
 0x311   : > { %v2844_v11 = vld [vmem:[#allocation3 + $0xb2] ss:$2 sm:$0xff]  ;;  %4928 = vmatprep.mubr.msk.bf16.mxu1 %vm5359_vm1, %v5358_v0  ;;  %v2581_v49 = vld [vmem:[#allocation3 + $0xc1] ss:$2 sm:$0x7] }
 0x312   : > { %v2854_v6 = vpack.c.bf16 %v2844_v11, %v2842_v7  ;;  %v2590_v27 = vpack.c.bf16 %v2581_v49, %v2581_v49  ;;  %v2846_v50 = vld [vmem:[#allocation3 + $0xc2] ss:$2 sm:$0x7] }
 0x313   : > { %v2855_v16 = vpack.c.bf16 %v2846_v50, %v2846_v50  ;;  %v2546_v33 = vld [vmem:[#allocation3 + $0xc0] ss:$2 sm:$0x7] }
 0x314   : > { %4985 = vmatmul.mubr.msk.bf16.gmra.mxu0 %vm1458_vm3, %v2854_v6  ;;  %v2555_v56 = vpack.c.bf16 %v2546_v33, %v2546_v33 }
 0x315   : > { %4988 = vmatprep.mubr.msk.bf16.mxu0 %vm5359_vm1, %v5358_v0 }
 0x318   : > { %4929 = vmatmul.mubr.msk.bf16.gmra.mxu1 %vm1458_vm3, %v2590_v27 }
 0x319   : > { %4934 = vmatprep.mubr.msk.bf16.mxu1 %vm5359_vm1, %v5358_v0 }
 0x31c   : > { %4989 = vmatmul.mubr.msk.bf16.gmra.mxu0 %vm1458_vm3, %v2855_v16 }
 0x320   : > { %4935 = vmatmul.mubr.msk.bf16.vlgmr.msra.gmra.mxu1 %vm1458_vm3, %v2549_v36 }
 0x321   : > { %4938 = vmatprep.mubr.msk.bf16.mxu1 %vm5359_vm1, %v5358_v0  ;;  %4993 = vmatpush3.bf16.msra.mxu1 %v5133_v4 }
 0x322   : > { %5002 = vmatprep.subr.bf16.mxu1 %v6537_v45 }
 0x328   : > { %4939 = vmatmul.mubr.msk.bf16.gmra.mxu1 %vm1458_vm3, %v2550_v15 }
 0x329   : > { %4942 = vmatprep.mubr.msk.bf16.mxu1 %vm5359_vm1, %v5358_v0 }
 0x330   : > { %4943 = vmatmul.mubr.msk.bf16.gmra.mxu1 %vm1458_vm3, %v2551_v62 }
 0x331   : > { %4946 = vmatprep.mubr.msk.bf16.mxu1 %vm5359_vm1, %v5358_v0 }
 0x338   : > { %4947 = vmatmul.mubr.msk.bf16.gmra.mxu1 %vm1458_vm3, %v2552_v59 }
 0x339   : > { %4950 = vmatprep.mubr.msk.bf16.mxu1 %vm5359_vm1, %v5358_v0 }
 0x340   : > { %4951 = vmatmul.mubr.msk.bf16.gmra.mxu1 %vm1458_vm3, %v2553_v25 }
 0x341   : > { %4954 = vmatprep.mubr.msk.bf16.mxu1 %vm5359_vm1, %v5358_v0 }
 0x348   : > { %4955 = vmatmul.mubr.msk.bf16.gmra.mxu1 %vm1458_vm3, %v2554_v24 }
 0x349   : > { %4958 = vmatprep.mubr.msk.bf16.mxu1 %vm5359_vm1, %v5358_v0 }
 0x350   : > { %4959 = vmatmul.mubr.msk.bf16.gmra.mxu1 %vm1458_vm3, %v2555_v56 }
 0x380   : > { %v2652_v32 = vpop.f32.mrf.mxu1 }
 0x382   : > { %v4906_v18 = vpop.f32.mrf.mxu1 }
 0x384   : > { %v6509_v28 = vpop.f32.mrf.mxu1 }
 0x385   : > { %v2917_v61 = vpop.f32.mrf.mxu0 }
 0x386   : > { %v4907_v5 = vpop.f32.mrf.mxu1 }
 0x387   : > { %v4966_v37 = vpop.f32.mrf.mxu0 }
 0x389   : > { %v6511_v20 = vpop.f32.mrf.mxu0 }
 0x38b   : > { %v4967_v17 = vpop.f32.mrf.mxu0 }
 0x391   : > { %v6513_v41 = vpop.f32.mrf.mxu1 }
 0x393   : > { %v4910_v42 = vpop.f32.mrf.mxu1 }
 0x395   : > { %v6515_v34 = vpop.f32.mrf.mxu1  ;;  %v6517_v35 = vpop.f32.mrf.mxu0 }
 0x397   : > { %v4911_v47 = vpop.f32.mrf.mxu1  ;;  %v4970_v8 = vpop.f32.mrf.mxu0 }
 0x399   : > { %v6519_v60 = vpop.f32.mrf.mxu0 }
 0x39b   : > { %v4971_v51 = vpop.f32.mrf.mxu0 }
 0x3a1   : > { %v6524_v31 = vpop.f32.mrf.mxu1 }
 0x3a3   : > { %v4914_v13 = vpop.f32.mrf.mxu1 }
 0x3a5   : > { %v6526_v63 = vpop.f32.mrf.mxu1  ;;  %v6528_v2 = vpop.f32.mrf.mxu0 }
 0x3a7   : > { %v4915_v30 = vpop.f32.mrf.mxu1  ;;  %v4974_v10 = vpop.f32.mrf.mxu0 }
 0x3a9   : > { %v6530_v23 = vpop.f32.mrf.mxu0 }
 0x3ab   : > { %v4975_v55 = vpop.f32.mrf.mxu0 }
 0x3b1   : > { %v6532_v9 = vpop.f32.mrf.mxu1 }
 0x3b3   : > { %v4918_v26 = vpop.f32.mrf.mxu1 }
 0x3b5   : > { %v6539_v1 = vpop.f32.mrf.mxu1  ;;  %v6541_v14 = vpop.f32.mrf.mxu0 }
 0x3b7   : > { %v4919_v53 = vpop.f32.mrf.mxu1  ;;  %v4978_v29 = vpop.f32.mrf.mxu0 }
 0x3b9   : > { %v6544_v57 = vpop.f32.mrf.mxu0 }
 0x3bb   : > { %v4979_v48 = vpop.f32.mrf.mxu0 }
 0x3c0   : > { %v6546_v38 = vpop.f32.mrf.mxu1 }
 0x3c2   : > { %v4922_v52 = vpop.f32.mrf.mxu1 }
 0x3c4   : > { %v6548_v7 = vpop.f32.mrf.mxu1 }
 0x3c5   : > { %v6550_v11 = vpop.f32.mrf.mxu0 }
 0x3c6   : > { %v4923_v6 = vpop.f32.mrf.mxu1 }
 0x3c7   : > { %v4982_v49 = vpop.f32.mrf.mxu0 }
 0x3c9   : > { %v6552_v27 = vpop.f32.mrf.mxu0 }
 0x3cb   : > { %v4983_v50 = vpop.f32.mrf.mxu0 }
 0x3d0   : > { %v6554_v16 = vpop.f32.mrf.mxu1 }
 0x3d2   : > { %v4926_v54 = vpop.f32.mrf.mxu1 }
 0x3d4   : > { %v6556_v58 = vpop.f32.mrf.mxu1  ;;  %v6558_v36 = vpop.f32.mrf.mxu0 }
 0x3d6   : > { %v4927_v12 = vpop.f32.mrf.mxu1  ;;  %v4986_v39 = vpop.f32.mrf.mxu0 }
 0x3d8   : > { %v6560_v15 = vpop.f32.mrf.mxu1  ;;  %v6562_v43 = vpop.f32.mrf.mxu0 }
 0x3da   : > { %v4930_v3 = vpop.f32.mrf.mxu1  ;;  %v4987_v62 = vpop.f32.mrf.mxu0 }
 0x3dc   : > { %v2703_v40 = vpop.f32.mrf.mxu1  ;;  %v6564_v44 = vpop.f32.mrf.mxu0 }
 0x3de   : > { %v4931_v59 = vpop.f32.mrf.mxu1  ;;  %v4990_v19 = vpop.f32.mrf.mxu0 }
 0x3e0   : > { %v2767_v46 = vpop.f32.mrf.mxu1  ;;  %v2968_v25 = vpop.f32.mrf.mxu0 }
 0x3e1   : > { %v2768_v22 = vadd.f32 %v2767_v46, %v2652_v32 }
 0x3e2   : > { %v4936_v21 = vpop.f32.mrf.mxu1  ;;  %v4991_v24 = vpop.f32.mrf.mxu0 }
 0x3e3   : > { %v6566_v33 = vadd.f32 %v2917_v61, %v2768_v22 }
 0x3e4   : > { %v2770_v56 = vpop.f32.mrf.mxu1 }
 0x3e5   : > { %v2984_v18 = vmul.f32 %v6566_v33, %v6566_v33  ;;  %v2771_v5 = vadd.f32 %v2770_v56, %v6509_v28 }
 0x3e6   : > { %v4937_v37 = vpop.f32.mrf.mxu1 }
 0x3e7   : > { %v2997_v17 = vmul.f32 %v2984_v18, %v6566_v33  ;;  %v6573_v42 = vadd.f32 %v6511_v20, %v2771_v5 }
 0x3e8   : > { %v2775_v47 = vpop.f32.mrf.mxu1 }
 0x3e9   : > { %v3010_v8 = vmul.f32 0.044715, %v2997_v17  ;;  %v2985_v32 = vmul.f32 %v6573_v42, %v6573_v42  ;;  %v2776_v61 = vadd.f32 %v2775_v47, %v6513_v41 }
 0x3ea   : > { %v4940_v51 = vpop.f32.mrf.mxu1 }
 0x3eb   : > { %v3023_v4 = vadd.f32 %v3010_v8, %v6566_v33  ;;  %v2998_v13 = vmul.f32 %v2985_v32, %v6573_v42  ;;  %v6581_v28 = vadd.f32 %v6517_v35, %v2776_v61 }
 0x3ec   : > { %v2778_v30 = vpop.f32.mrf.mxu1 }
 0x3ed   : > { %v3036_v10 = vmul.f32 0.7978846, %v3023_v4  ;;  %v3011_v55 = vmul.f32 0.044715, %v2998_v13  ;;  %v2986_v20 = vmul.f32 %v6581_v28, %v6581_v28  ;;  %v2779_v26 = vadd.f32 %v2778_v30, %v6515_v34 }
 0x3ee   : > { %v4941_v53 = vpop.f32.mrf.mxu1 }
 0x3ef   : > { %5296 = vtanh.f32 %v3036_v10  ;;  %v3024_v41 = vadd.f32 %v3011_v55, %v6573_v42  ;;  %v2999_v29 = vmul.f32 %v2986_v20, %v6581_v28  ;;  %v6589_v48 = vadd.f32 %v6519_v60, %v2779_v26 }
 0x3f0   : > { %v2783_v52 = vpop.f32.mrf.mxu1 }
 0x3f1   : > { %v3037_v35 = vmul.f32 0.7978846, %v3024_v41  ;;  %v3012_v6 = vmul.f32 0.044715, %v2999_v29  ;;  %v2987_v49 = vmul.f32 %v6589_v48, %v6589_v48  ;;  %v2784_v50 = vadd.f32 %v2783_v52, %v6524_v31 }
 0x3f2   : > { %v4944_v54 = vpop.f32.mrf.mxu1 }
 0x3f3   : > { %5298 = vtanh.f32 %v3037_v35  ;;  %v3025_v34 = vadd.f32 %v3012_v6, %v6581_v28  ;;  %v3000_v12 = vmul.f32 %v2987_v49, %v6589_v48  ;;  %v6597_v39 = vadd.f32 %v6528_v2, %v2784_v50 }
 0x3f4   : > { %v2786_v3 = vpop.f32.mrf.mxu1 }
 0x3f5   : > { %v3038_v60 = vmul.f32 0.7978846, %v3025_v34  ;;  %v3013_v62 = vmul.f32 0.044715, %v3000_v12  ;;  %v2988_v40 = vmul.f32 %v6597_v39, %v6597_v39  ;;  %v2787_v59 = vadd.f32 %v2786_v3, %v6526_v63 }
 0x3f6   : > { %v4945_v19 = vpop.f32.mrf.mxu1 }
 0x3f7   : > { %5300 = vtanh.f32 %v3038_v60  ;;  %v3026_v31 = vadd.f32 %v3013_v62, %v6589_v48  ;;  %v3001_v46 = vmul.f32 %v2988_v40, %v6597_v39  ;;  %v6605_v25 = vadd.f32 %v6530_v23, %v2787_v59 }
 0x3f8   : > { %v2791_v22 = vpop.f32.mrf.mxu1 }
 0x3f9   : > { %v3039_v2 = vmul.f32 0.7978846, %v3026_v31  ;;  %v3014_v21 = vmul.f32 0.044715, %v3001_v46  ;;  %v2989_v24 = vmul.f32 %v6605_v25, %v6605_v25  ;;  %v2792_v56 = vadd.f32 %v2791_v22, %v6532_v9 }
 0x3fa   : > { %v4948_v18 = vpop.f32.mrf.mxu1 }
 0x3fb   : > { %5302 = vtanh.f32 %v3039_v2  ;;  %v3027_v63 = vadd.f32 %v3014_v21, %v6597_v39  ;;  %v3002_v5 = vmul.f32 %v2989_v24, %v6605_v25  ;;  %v6613_v37 = vadd.f32 %v6541_v14, %v2792_v56 }
 0x3fc   : > { %v5297_v17 = vpop.eup %5296  ;;  %v2794_v23 = vpop.f32.mrf.mxu1 }
 0x3fd   : > { %v3062_v47 = vadd.f32 1.0, %v5297_v17  ;;  %v3040_v8 = vmul.f32 0.7978846, %v3027_v63  ;;  %v3015_v32 = vmul.f32 0.044715, %v3002_v5  ;;  %v2990_v61 = vmul.f32 %v6613_v37, %v6613_v37 }
 0x3fe   : > { %v2795_v51 = vadd.f32 %v2794_v23, %v6539_v1  ;;  %v4949_v9 = vpop.f32.mrf.mxu1 }
 0x3ff   : > { %v3075_v4 = vmul.f32 0.5, %v3062_v47  ;;  %5304 = vtanh.f32 %v3040_v8  ;;  %v3028_v13 = vadd.f32 %v3015_v32, %v6605_v25  ;;  %v3003_v30 = vmul.f32 %v2990_v61, %v6613_v37 }
 0x400   : > { %v5299_v10 = vpop.eup %5298  ;;  %v6621_v14 = vadd.f32 %v6544_v57, %v2795_v51  ;;  %v2799_v55 = vpop.f32.mrf.mxu1 }
 0x401   : > { %v3088_v20 = vmul.f32 %v3075_v4, %v6566_v33  ;;  %v3063_v26 = vadd.f32 1.0, %v5299_v10  ;;  %v3041_v53 = vmul.f32 0.7978846, %v3028_v13  ;;  %v3016_v41 = vmul.f32 0.044715, %v3003_v30 }
 0x402   : > { %v2991_v1 = vmul.f32 %v6621_v14, %v6621_v14  ;;  %v2800_v29 = vadd.f32 %v2799_v55, %v6546_v38  ;;  %v4952_v52 = vpop.f32.mrf.mxu1 }
 0x403   : > { %3101 = vst.msk [vmem:[#allocation4] sm:$0xff] %vm1458_vm3, %v3088_v20  ;;  %v3076_v35 = vmul.f32 0.5, %v3063_v26  ;;  %5306 = vtanh.f32 %v3041_v53  ;;  %v3029_v6 = vadd.f32 %v3016_v41, %v6613_v37 }
 0x404   : > { %v5301_v57 = vpop.eup %5300  ;;  %v3004_v49 = vmul.f32 %v2991_v1, %v6621_v14  ;;  %v6631_v33 = vadd.f32 %v6550_v11, %v2800_v29  ;;  %v2802_v50 = vpop.f32.mrf.mxu1 }
 0x405   : > { %v3089_v54 = vmul.f32 %v3076_v35, %v6573_v42  ;;  %v3064_v34 = vadd.f32 1.0, %v5301_v57  ;;  %v3042_v12 = vmul.f32 0.7978846, %v3029_v6  ;;  %v2803_v38 = vadd.f32 %v2802_v50, %v6548_v7 }
 0x406   : > { %v3017_v3 = vmul.f32 0.044715, %v3004_v49  ;;  %v2992_v60 = vmul.f32 %v6631_v33, %v6631_v33  ;;  %v4953_v62 = vpop.f32.mrf.mxu1 }
 0x407   : > { %3102 = vst.msk [vmem:[#allocation4 + $0x8] sm:$0xff] %vm1458_vm3, %v3089_v54  ;;  %v3077_v40 = vmul.f32 0.5, %v3064_v34  ;;  %5308 = vtanh.f32 %v3042_v12  ;;  %v6639_v59 = vadd.f32 %v6552_v27, %v2803_v38 }
 0x408   : > { %v5303_v11 = vpop.eup %5302  ;;  %v3030_v19 = vadd.f32 %v3017_v3, %v6621_v14  ;;  %v3005_v42 = vmul.f32 %v2992_v60, %v6631_v33  ;;  %v2807_v31 = vpop.f32.mrf.mxu1 }
 0x409   : > { %v3090_v7 = vmul.f32 %v3077_v40, %v6581_v28  ;;  %v3065_v46 = vadd.f32 1.0, %v5303_v11  ;;  %v2993_v22 = vmul.f32 %v6639_v59, %v6639_v59  ;;  %v2808_v2 = vadd.f32 %v2807_v31, %v6554_v16 }
 0x40a   : > { %v3043_v21 = vmul.f32 0.7978846, %v3030_v19  ;;  %v3018_v24 = vmul.f32 0.044715, %v3005_v42  ;;  %v4956_v56 = vpop.f32.mrf.mxu1 }
 0x40b   : > { %3103 = vst.msk [vmem:[#allocation4 + $0x10] sm:$0xff] %vm1458_vm3, %v3090_v7  ;;  %v3078_v27 = vmul.f32 0.5, %v3065_v46  ;;  %v3006_v18 = vmul.f32 %v2993_v22, %v6639_v59  ;;  %v6650_v63 = vadd.f32 %v6558_v36, %v2808_v2 }
 0x40c   : > { %v5305_v5 = vpop.eup %5304  ;;  %5310 = vtanh.f32 %v3043_v21  ;;  %v3031_v28 = vadd.f32 %v3018_v24, %v6631_v33  ;;  %v2810_v17 = vpop.f32.mrf.mxu1 }
 0x40d   : > { %v3091_v23 = vmul.f32 %v3078_v27, %v6589_v48  ;;  %v3066_v47 = vadd.f32 1.0, %v5305_v5  ;;  %v3019_v16 = vmul.f32 0.044715, %v3006_v18  ;;  %v2994_v8 = vmul.f32 %v6650_v63, %v6650_v63 }
 0x40e   : > { %v3044_v32 = vmul.f32 0.7978846, %v3031_v28  ;;  %v2811_v61 = vadd.f32 %v2810_v17, %v6556_v58  ;;  %v4957_v51 = vpop.f32.mrf.mxu1  ;;  %v3135_v34 = vld [vmem:[#allocation4 + $0x1] ss:$2 sm:$0xff] }
 0x40f   : > { %3104 = vst.msk [vmem:[#allocation4 + $0x18] sm:$0xff] %vm1458_vm3, %v3091_v23  ;;  %v3079_v36 = vmul.f32 0.5, %v3066_v47  ;;  %v3032_v9 = vadd.f32 %v3019_v16, %v6639_v59  ;;  %v3007_v4 = vmul.f32 %v2994_v8, %v6650_v63  ;;  %v5135_v16 = vld [vmem:[%s6845_s4 + $0x10] sm:$0xff]  }
 0x410   : > { %v5307_v13 = vpop.eup %5306  ;;  %5312 = vtanh.f32 %v3044_v32  ;;  %v6661_v48 = vadd.f32 %v6562_v43, %v2811_v61  ;;  %v2815_v30 = vpop.f32.mrf.mxu1 }
 0x411   : > { %v3092_v10 = vmul.f32 %v3079_v36, %v6597_v39  ;;  %v3067_v55 = vadd.f32 1.0, %v5307_v13  ;;  %v3045_v20 = vmul.f32 0.7978846, %v3032_v9  ;;  %v3020_v26 = vmul.f32 0.044715, %v3007_v4 }
 0x412   : > { %v2995_v58 = vmul.f32 %v6661_v48, %v6661_v48  ;;  %v2816_v53 = vadd.f32 %v2815_v30, %v6560_v15  ;;  %v4960_v41 = vpop.f32.mrf.mxu1 }
 0x413   : > { %3105 = vst.msk [vmem:[#allocation4 + $0x20] sm:$0xff] %vm1458_vm3, %v3092_v10  ;;  %v3080_v1 = vmul.f32 0.5, %v3067_v55  ;;  %5314 = vtanh.f32 %v3045_v20  ;;  %v3033_v29 = vadd.f32 %v3020_v26, %v6650_v63  ;;  %v3115_v20 = vld [vmem:[#allocation4] ss:$2 sm:$0xff] }
 0x414   : > { %v5309_v43 = vpop.eup %5308  ;;  %v3008_v52 = vmul.f32 %v2995_v58, %v6661_v48  ;;  %v2983_v39 = vadd.f32 %v6564_v44, %v2816_v53  ;;  %v2818_v35 = vpop.f32.mrf.mxu1 }
 0x415   : > { %v3093_v6 = vmul.f32 %v3080_v1, %v6605_v25  ;;  %v3068_v57 = vadd.f32 1.0, %v5309_v43  ;;  %v3046_v49 = vmul.f32 0.7978846, %v3033_v29  ;;  %v3319_v35 = vld [vmem:[#allocation4 + $0x2] ss:$2 sm:$0xff] }
 0x416   : > { %v3021_v50 = vmul.f32 0.044715, %v3008_v52  ;;  %v2996_v54 = vmul.f32 %v2983_v39, %v2983_v39  ;;  %v4961_v15 = vpop.f32.mrf.mxu1  ;;  %v3137_v12 = vld [vmem:[#allocation4 + $0x11] ss:$2 sm:$0xff]  ;;  %v3117_v10 = vld [vmem:[#allocation4 + $0x10] ss:$2 sm:$0xff] }
 0x417   : > { %3106 = vst.msk [vmem:[#allocation4 + $0x28] sm:$0xff] %vm1458_vm3, %v3093_v6  ;;  %v3081_v38 = vmul.f32 0.5, %v3068_v57  ;;  %5316 = vtanh.f32 %v3046_v49  ;;  %v3150_v3 = vpack.c.bf16 %v3137_v12, %v3135_v34  ;;  %v3130_v26 = vpack.c.bf16 %v3117_v10, %v3115_v20 }
 0x418   : > { %v3034_v60 = vadd.f32 %v3021_v50, %v6661_v48  ;;  %v3009_v62 = vmul.f32 %v2996_v54, %v2983_v39 }
 0x419   : > { %v5311_v40 = vpop.eup %5310  ;;  %v3094_v44 = vmul.f32 %v3081_v38, %v6613_v37  ;;  %4994 = vmatprep.mubr.msk.bf16.mxu1 %vm1458_vm3, %v3150_v3  ;;  %v5136_v3 = vld [vmem:[%s6846_s5 + $0x8] sm:$0xff]  }
 0x41a   : > { %v3069_v25 = vadd.f32 1.0, %v5311_v40  ;;  %v3047_v11 = vmul.f32 0.7978846, %v3034_v60  ;;  %v3022_v19 = vmul.f32 0.044715, %v3009_v62  ;;  %5022 = vmatprep.subr.bf16.mxu0 %v5136_v3  ;;  %v5137_v60 = vld [vmem:[%s6846_s5 + $0x10] sm:$0xff]  }
 0x41b   : > { %3107 = vst.msk [vmem:[#allocation4 + $0x30] sm:$0xff] %vm1458_vm3, %v3094_v44  ;;  %v3321_v52 = vld [vmem:[#allocation4 + $0x12] ss:$2 sm:$0xff]  ;;  %5023 = vmatpush3.bf16.msra.mxu0 %v5136_v3  ;;  %v6712_v62 = vld [vmem:[%s6846_s5] sm:$0xff]  }
 0x41c   : > { %v3082_v42 = vmul.f32 0.5, %v3069_v25  ;;  %5318 = vtanh.f32 %v3047_v11  ;;  %v3035_v31 = vadd.f32 %v3022_v19, %v2983_v39  ;;  %v3334_v6 = vpack.c.bf16 %v3321_v52, %v3319_v35  ;;  %5028 = vmatprep.subr.bf16.mxu0 %v6712_v62 }
 0x41d   : > { %v5313_v7 = vpop.eup %5312 }
 0x41e   : > { %v3095_v46 = vmul.f32 %v3082_v42, %v6621_v14  ;;  %v3070_v22 = vadd.f32 1.0, %v5313_v7  ;;  %v3048_v2 = vmul.f32 0.7978846, %v3035_v31  ;;  %v3139_v17 = vld [vmem:[#allocation4 + $0x21] ss:$2 sm:$0xff] }
 0x41f   : > { %v3119_v53 = vld [vmem:[#allocation4 + $0x20] ss:$2 sm:$0xff] }
 0x420   : > { %v5315_v21 = vpop.eup %5314  ;;  %3108 = vst.msk [vmem:[#allocation4 + $0x38] sm:$0xff] %vm1458_vm3, %v3095_v46  ;;  %v3083_v24 = vmul.f32 0.5, %v3070_v22  ;;  %5320 = vtanh.f32 %v3048_v2 }
 0x421   : > { %v3071_v37 = vadd.f32 1.0, %v5315_v21 }
 0x422   : > { %v3096_v56 = vmul.f32 %v3083_v24, %v6631_v33  ;;  %v3323_v50 = vld [vmem:[#allocation4 + $0x22] ss:$2 sm:$0xff] }
 0x423   : > { %v3084_v27 = vmul.f32 0.5, %v3071_v37 }
 0x424   : > { %v5317_v18 = vpop.eup %5316  ;;  %3109 = vst.msk [vmem:[#allocation4 + $0x40] sm:$0xff] %vm1458_vm3, %v3096_v56 }
 0x425   : > { %v3097_v5 = vmul.f32 %v3084_v27, %v6639_v59  ;;  %v3072_v28 = vadd.f32 1.0, %v5317_v18 }
 0x427   : > { %3110 = vst.msk [vmem:[#allocation4 + $0x48] sm:$0xff] %vm1458_vm3, %v3097_v5  ;;  %v3085_v14 = vmul.f32 0.5, %v3072_v28  ;;  %v3141_v23 = vld [vmem:[#allocation4 + $0x31] ss:$2 sm:$0xff] }
 0x428   : > { %v3151_v47 = vpack.c.bf16 %v3141_v23, %v3139_v17 }
 0x429   : > { %v5319_v8 = vpop.eup %5318  ;;  %v3098_v33 = vmul.f32 %v3085_v14, %v6650_v63 }
 0x42a   : > { %v3073_v32 = vadd.f32 1.0, %v5319_v8  ;;  %4995 = vmatmul.mubr.msk.bf16.vlgmr.msra.gmra.mxu1 %vm1458_vm3, %v3151_v47 }
 0x42b   : > { %3111 = vst.msk [vmem:[#allocation4 + $0x50] sm:$0xff] %vm1458_vm3, %v3098_v33  ;;  %5003 = vmatpush3.bf16.msra.mxu1 %v6537_v45  ;;  %v3325_v57 = vld [vmem:[#allocation4 + $0x32] ss:$2 sm:$0xff] }
 0x42c   : > { %v3086_v59 = vmul.f32 0.5, %v3073_v32  ;;  %5012 = vmatprep.subr.bf16.mxu1 %v5135_v16  ;;  %v3335_v54 = vpack.c.bf16 %v3325_v57, %v3323_v50 }
 0x42d   : > { %v5321_v61 = vpop.eup %5320 }
 0x42e   : > { %v3099_v51 = vmul.f32 %v3086_v59, %v6661_v48  ;;  %v3074_v36 = vadd.f32 1.0, %v5321_v61  ;;  %v3143_v63 = vld [vmem:[#allocation4 + $0x41] ss:$2 sm:$0xff]  ;;  %v3121_v48 = vld [vmem:[#allocation4 + $0x30] ss:$2 sm:$0xff] }
 0x42f   : > { %v3131_v41 = vpack.c.bf16 %v3121_v48, %v3119_v53  ;;  %v3123_v1 = vld [vmem:[#allocation4 + $0x40] ss:$2 sm:$0xff] }
 0x430   : > { %3112 = vst.msk [vmem:[#allocation4 + $0x58] sm:$0xff] %vm1458_vm3, %v3099_v51  ;;  %v3087_v9 = vmul.f32 0.5, %v3074_v36 }
 0x432   : > { %v3100_v4 = vmul.f32 %v3087_v9, %v2983_v39  ;;  %v3327_v15 = vld [vmem:[#allocation4 + $0x42] ss:$2 sm:$0xff] }
 0x434   : > { %3114 = vst.msk [vmem:[#allocation4 + $0x60] sm:$0x7] %vm3113_vm5, %v3100_v4 }
 0x437   : > { %v3145_v13 = vld [vmem:[#allocation4 + $0x51] ss:$2 sm:$0xff]  ;;  %v3125_v58 = vld [vmem:[#allocation4 + $0x50] ss:$2 sm:$0xff] }
 0x438   : > { %v3152_v30 = vpack.c.bf16 %v3145_v13, %v3143_v63  ;;  %v3132_v29 = vpack.c.bf16 %v3125_v58, %v3123_v1 }
 0x43a   : > { %4998 = vmatprep.mubr.msk.bf16.mxu1 %vm1458_vm3, %v3152_v30 }
 0x43b   : > { %v3147_v55 = vld [vmem:[#allocation4 + $0x61] ss:$2 sm:$0x1]  ;;  %v3127_v43 = vld [vmem:[#allocation4 + $0x60] ss:$2 sm:$0x1] }
 0x43c   : > { %v3153_v45 = vpack.c.bf16 %v3147_v55, %v3147_v55  ;;  %v3133_v39 = vpack.c.bf16 %v3127_v43, %v3127_v43  ;;  %v3329_v49 = vld [vmem:[#allocation4 + $0x52] ss:$2 sm:$0xff]  ;;  %v3331_v12 = vld [vmem:[#allocation4 + $0x62] ss:$2 sm:$0x1] }
 0x43d   : > { %v3336_v34 = vpack.c.bf16 %v3329_v49, %v3327_v15  ;;  %v3337_v38 = vpack.c.bf16 %v3331_v12, %v3331_v12 }
 0x43e   : > { %4999 = vmatmul.mubr.msk.bf16.gmra.mxu1 %vm1458_vm3, %v3153_v45 }
 0x43f   : > { %5004 = vmatprep.mubr.msk.bf16.mxu1 %vm1458_vm3, %v3130_v26 }
 0x446   : > { %5005 = vmatmul.mubr.msk.bf16.vlgmr.msra.gmra.mxu1 %vm1458_vm3, %v3131_v41 }
 0x447   : > { %5013 = vmatpush3.bf16.msra.mxu1 %v5135_v16  ;;  %5008 = vmatprep.mubr.msk.bf16.mxu1 %vm1458_vm3, %v3132_v29 }
 0x448   : > { %5034 = vmatprep.subr.bf16.mxu1 %v5137_v60 }
 0x44e   : > { %5009 = vmatmul.mubr.msk.bf16.gmra.mxu1 %vm1458_vm3, %v3133_v39 }
 0x44f   : > { %5014 = vmatprep.mubr.msk.bf16.mxu1 %vm1458_vm3, %v3334_v6 }
 0x456   : > { %5015 = vmatmul.mubr.msk.bf16.vlgmr.msra.gmra.mxu1 %vm1458_vm3, %v3335_v54 }
 0x457   : > { %5018 = vmatprep.mubr.msk.bf16.mxu1 %vm1458_vm3, %v3336_v34  ;;  %5035 = vmatpush3.bf16.msra.mxu1 %v5137_v60 }
 0x458   : > { %5046 = vmatprep.subr.bf16.mxu1 %v5358_v0 }
 0x45e   : > { %5019 = vmatmul.mubr.msk.bf16.gmra.mxu1 %vm1458_vm3, %v3337_v38 }
 0x4ea   : > { %v4996_v40 = vpop.f32.mrf.mxu1 }
 0x4ec   : > { %v3206_v44 = vpop.f32.mrf.mxu1 }
 0x4ee   : > { %v4997_v25 = vpop.f32.mrf.mxu1 }
 0x4f0   : > { %v3209_v11 = vpop.f32.mrf.mxu1 }
 0x4fe   : > { %v5000_v19 = vpop.f32.mrf.mxu1 }
 0x500   : > { %v3222_v42 = vpop.f32.mrf.mxu1 }
 0x502   : > { %v5001_v31 = vpop.f32.mrf.mxu1 }
 0x504   : > { %v3225_v7 = vpop.f32.mrf.mxu1 }
 0x506   : > { %v5006_v46 = vpop.f32.mrf.mxu1 }
 0x507   : > { %v3297_v18 = vadd.f32 %v5006_v46, %v4996_v40 }
 0x508   : > { %v3288_v22 = vpop.f32.mrf.mxu1 }
 0x509   : > { %v3289_v28 = vadd.f32 %v3288_v22, %v3206_v44 }
 0x50a   : > { %v5007_v2 = vpop.f32.mrf.mxu1 }
 0x50b   : > { %v3300_v23 = vadd.f32 %v5007_v2, %v4997_v25 }
 0x50c   : > { %v3291_v21 = vpop.f32.mrf.mxu1 }
 0x50d   : > { %v3292_v33 = vadd.f32 %v3291_v21, %v3209_v11 }
 0x50e   : > { %v5010_v24 = vpop.f32.mrf.mxu1 }
 0x50f   : > { %v3313_v13 = vadd.f32 %v5010_v24, %v5000_v19 }
 0x510   : > { %v3304_v37 = vpop.f32.mrf.mxu1 }
 0x511   : > { %v3305_v26 = vadd.f32 %v3304_v37, %v3222_v42 }
 0x512   : > { %v5011_v56 = vpop.f32.mrf.mxu1 }
 0x514   : > { %v3307_v27 = vpop.f32.mrf.mxu1 }
 0x515   : > { %v3308_v43 = vadd.f32 %v3307_v27, %v3225_v7 }
 0x516   : > { %v5016_v5 = vpop.f32.mrf.mxu1 }
 0x517   : > { %v6715_v14 = vadd.f32 %v5016_v5, %v3297_v18 }
 0x518   : > { %v3390_v17 = vpop.f32.mrf.mxu1 }
 0x519   : > { %v3429_v47 = vmul.f32 %v6715_v14, %v6715_v14  ;;  %v6719_v16 = vadd.f32 %v3390_v17, %v3289_v28 }
 0x51a   : > { %v5017_v8 = vpop.f32.mrf.mxu1 }
 0x51b   : > { %v3436_v32 = vmul.f32 %v3429_v47, %v6715_v14  ;;  %v3427_v59 = vmul.f32 %v6719_v16, %v6719_v16  ;;  %v6724_v61 = vadd.f32 %v5017_v8, %v3300_v23 }
 0x51c   : > { %v3393_v51 = vpop.f32.mrf.mxu1 }
 0x51d   : > { %v3443_v36 = vmul.f32 0.044715, %v3436_v32  ;;  %v3434_v9 = vmul.f32 %v3427_v59, %v6719_v16  ;;  %v3430_v4 = vmul.f32 %v6724_v61, %v6724_v61  ;;  %v6729_v63 = vadd.f32 %v3393_v51, %v3292_v33 }
 0x51e   : > { %v5020_v30 = vpop.f32.mrf.mxu1 }
 0x51f   : > { %v3450_v10 = vadd.f32 %v3443_v36, %v6715_v14  ;;  %v3441_v55 = vmul.f32 0.044715, %v3434_v9  ;;  %v3437_v45 = vmul.f32 %v3430_v4, %v6724_v61  ;;  %v3428_v20 = vmul.f32 %v6729_v63, %v6729_v63 }
 0x520   : > { %v6735_v48 = vadd.f32 %v5020_v30, %v3313_v13  ;;  %v3406_v58 = vpop.f32.mrf.mxu1 }
 0x521   : > { %v3457_v53 = vmul.f32 0.7978846, %v3450_v10  ;;  %v3448_v41 = vadd.f32 %v3441_v55, %v6719_v16  ;;  %v3444_v1 = vmul.f32 0.044715, %v3437_v45  ;;  %v3435_v29 = vmul.f32 %v3428_v20, %v6729_v63 }
 0x522   : > { %v3433_v52 = vmul.f32 %v6735_v48, %v6735_v48  ;;  %v3424_v39 = vadd.f32 %v3406_v58, %v3305_v26  ;;  %v5021_v35 = vpop.f32.mrf.mxu1 }
 0x523   : > { %5322 = vtanh.f32 %v3457_v53  ;;  %v3455_v6 = vmul.f32 0.7978846, %v3448_v41  ;;  %v3451_v57 = vadd.f32 %v3444_v1, %v6724_v61  ;;  %v3442_v49 = vmul.f32 0.044715, %v3435_v29 }
 0x524   : > { %v3440_v50 = vmul.f32 %v3433_v52, %v6735_v48  ;;  %v3431_v54 = vmul.f32 %v3424_v39, %v3424_v39  ;;  %v3409_v15 = vpop.f32.mrf.mxu1 }
 0x525   : > { %5324 = vtanh.f32 %v3455_v6  ;;  %v3458_v34 = vmul.f32 0.7978846, %v3451_v57  ;;  %v3449_v12 = vadd.f32 %v3442_v49, %v6729_v63  ;;  %v3425_v38 = vadd.f32 %v3409_v15, %v3308_v43 }
 0x526   : > { %v3447_v3 = vmul.f32 0.044715, %v3440_v50  ;;  %v3438_v60 = vmul.f32 %v3431_v54, %v3424_v39  ;;  %v5139_v50 = vld [vmem:[%s6847_s6 + $0x8] sm:$0xff]  }
 0x527   : > { %5326 = vtanh.f32 %v3458_v34  ;;  %v3456_v40 = vmul.f32 0.7978846, %v3449_v12  ;;  %v3432_v44 = vmul.f32 %v3425_v38, %v3425_v38 }
 0x528   : > { %v3454_v25 = vadd.f32 %v3447_v3, %v6735_v48  ;;  %v3445_v11 = vmul.f32 0.044715, %v3438_v60 }
 0x529   : > { %5328 = vtanh.f32 %v3456_v40  ;;  %v3439_v19 = vmul.f32 %v3432_v44, %v3425_v38 }
 0x52a   : > { %v3461_v42 = vmul.f32 0.7978846, %v3454_v25  ;;  %v3452_v31 = vadd.f32 %v3445_v11, %v3424_v39 }
 0x52b   : > { %v3446_v7 = vmul.f32 0.044715, %v3439_v19 }
 0x52c   : > { %5330 = vtanh.f32 %v3461_v42  ;;  %v3459_v46 = vmul.f32 0.7978846, %v3452_v31 }
 0x52d   : > { %v3453_v22 = vadd.f32 %v3446_v7, %v3425_v38 }
 0x52e   : > { %5332 = vtanh.f32 %v3459_v46 }
 0x52f   : > { %v3460_v2 = vmul.f32 0.7978846, %v3453_v22 }
 0x530   : > { %v5323_v21 = vpop.eup %5322 }
 0x531   : > { %v3471_v24 = vadd.f32 1.0, %v5323_v21  ;;  %5334 = vtanh.f32 %v3460_v2 }
 0x532   : > { %v5325_v37 = vpop.eup %5324 }
 0x533   : > { %v3478_v56 = vmul.f32 0.5, %v3471_v24  ;;  %v3469_v27 = vadd.f32 1.0, %v5325_v37 }
 0x534   : > { %v5327_v18 = vpop.eup %5326 }
 0x535   : > { %v3485_v5 = vmul.f32 %v3478_v56, %v6715_v14  ;;  %v3476_v28 = vmul.f32 0.5, %v3469_v27  ;;  %v3472_v17 = vadd.f32 1.0, %v5327_v18 }
 0x536   : > { %v5329_v23 = vpop.eup %5328 }
 0x537   : > { %3492 = vst.msk [vmem:[#allocation5 + $0x10] sm:$0xff] %vm1458_vm3, %v3485_v5  ;;  %v3483_v47 = vmul.f32 %v3476_v28, %v6719_v16  ;;  %v3479_v8 = vmul.f32 0.5, %v3472_v17  ;;  %v3470_v33 = vadd.f32 1.0, %v5329_v23 }
 0x539   : > { %v5331_v32 = vpop.eup %5330  ;;  %3490 = vst.msk [vmem:[#allocation5] sm:$0xff] %vm1458_vm3, %v3483_v47  ;;  %v3486_v59 = vmul.f32 %v3479_v8, %v6724_v61  ;;  %v3477_v51 = vmul.f32 0.5, %v3470_v33 }
 0x53a   : > { %v3475_v36 = vadd.f32 1.0, %v5331_v32 }
 0x53b   : > { %v5333_v9 = vpop.eup %5332  ;;  %3493 = vst.msk [vmem:[#allocation5 + $0x18] sm:$0xff] %vm1458_vm3, %v3486_v59  ;;  %v3484_v14 = vmul.f32 %v3477_v51, %v6729_v63 }
 0x53c   : > { %v3482_v4 = vmul.f32 0.5, %v3475_v36  ;;  %v3473_v13 = vadd.f32 1.0, %v5333_v9 }
 0x53d   : > { %3491 = vst.msk [vmem:[#allocation5 + $0x8] sm:$0xff] %vm1458_vm3, %v3484_v14 }
 0x53e   : > { %v5335_v16 = vpop.eup %5334  ;;  %v3489_v30 = vmul.f32 %v3482_v4, %v6735_v48  ;;  %v3480_v10 = vmul.f32 0.5, %v3473_v13 }
 0x53f   : > { %v3474_v55 = vadd.f32 1.0, %v5335_v16 }
 0x540   : > { %3497 = vst.msk [vmem:[#allocation5 + $0x30] sm:$0x1] %vm3496_vm6, %v3489_v30  ;;  %v3487_v45 = vmul.f32 %v3480_v10, %v3424_v39 }
 0x541   : > { %v3481_v61 = vmul.f32 0.5, %v3474_v55 }
 0x542   : > { %3494 = vst.msk [vmem:[#allocation5 + $0x20] sm:$0xff] %vm1458_vm3, %v3487_v45  ;;  %v3510_v58 = vld [vmem:[#allocation5 + $0x11] ss:$2 sm:$0xff]  ;;  %v3500_v35 = vld [vmem:[#allocation5 + $0x10] ss:$2 sm:$0xff] }
 0x543   : > { %v3488_v20 = vmul.f32 %v3481_v61, %v3425_v38 }
 0x544   : > { %v3508_v26 = vld [vmem:[#allocation5 + $0x1] ss:$2 sm:$0xff]  ;;  %v3638_v53 = vld [vmem:[#allocation5 + $0x2] ss:$2 sm:$0xff] }
 0x545   : > { %3495 = vst.msk [vmem:[#allocation5 + $0x28] sm:$0xff] %vm1458_vm3, %v3488_v20  ;;  %v3515_v63 = vpack.c.bf16 %v3510_v58, %v3508_v26  ;;  %v3498_v29 = vld [vmem:[#allocation5] ss:$2 sm:$0xff] }
 0x546   : > { %v3505_v6 = vpack.c.bf16 %v3500_v35, %v3498_v29  ;;  %v5142_v29 = vld [vmem:[%s6848_s7] sm:$0xff]  }
 0x547   : > { %5024 = vmatprep.mubr.msk.bf16.mxu0 %vm1458_vm3, %v3515_v63 }
 0x549   : > { %v3640_v41 = vld [vmem:[#allocation5 + $0x12] ss:$2 sm:$0xff] }
 0x54a   : > { %v3645_v1 = vpack.c.bf16 %v3640_v41, %v3638_v53 }
 0x54c   : > { %5036 = vmatprep.mubr.msk.bf16.mxu1 %vm1458_vm3, %v3645_v1  ;;  %v3512_v48 = vld [vmem:[#allocation5 + $0x21] ss:$2 sm:$0xff]  ;;  %v3642_v43 = vld [vmem:[#allocation5 + $0x22] ss:$2 sm:$0xff] }
 0x54d   : > { %v3516_v52 = vpack.c.bf16 %v3512_v48, %v3512_v48  ;;  %v3646_v39 = vpack.c.bf16 %v3642_v43, %v3642_v43  ;;  %v3502_v57 = vld [vmem:[#allocation5 + $0x20] ss:$2 sm:$0xff] }
 0x54e   : > { %v3506_v49 = vpack.c.bf16 %v3502_v57, %v3502_v57  ;;  %v5141_v1 = vld [vmem:[%s6848_s7 + $0x8] sm:$0xff]  }
 0x54f   : > { %5025 = vmatmul.mubr.msk.bf16.vlgmr.msra.gmra.mxu0 %vm1458_vm3, %v3516_v52  ;;  %5037 = vmatmul.mubr.msk.bf16.vlgmr.msra.gmra.mxu1 %vm1458_vm3, %v3646_v39 }
 0x550   : > { %5029 = vmatpush3.bf16.msra.mxu0 %v6712_v62  ;;  %5030 = vmatprep.mubr.msk.bf16.mxu0 %vm1458_vm3, %v3505_v6  ;;  %v5140_v62 = vld [vmem:[%s6847_s6] sm:$0xff]  }
 0x551   : > { %5040 = vmatprep.subr.bf16.mxu0 %v5358_v0  ;;  %5048 = vmatprep.mubr.msk.bf16.mxu1 %vm5359_vm1, %v5358_v0 }
 0x552   : > { %5047 = vmatpush3.bf16.msra.mxu1 %v5140_v62 }
 0x553   : > { %5058 = vmatprep.subr.bf16.mxu1 %v5358_v0 }
 0x557   : > { %5031 = vmatmul.mubr.msk.bf16.vlgmr.msra.gmra.mxu0 %vm1458_vm3, %v3506_v49 }
 0x558   : > { %5042 = vmatprep.mubr.msk.bf16.mxu0 %vm5359_vm1, %v5358_v0  ;;  %5041 = vmatpush3.bf16.msra.mxu0 %v5139_v50 }
 0x559   : > { %5052 = vmatprep.subr.bf16.mxu0 %v5358_v0 }
 0x60f   : > { %v5026_v54 = vpop.f32.mrf.mxu0  ;;  %v5038_v15 = vpop.f32.mrf.mxu1 }
 0x611   : > { %v3563_v34 = vpop.f32.mrf.mxu0  ;;  %v3693_v12 = vpop.f32.mrf.mxu1 }
 0x613   : > { %v5027_v38 = vpop.f32.mrf.mxu0  ;;  %v5039_v3 = vpop.f32.mrf.mxu1 }
 0x615   : > { %v3566_v60 = vpop.f32.mrf.mxu0  ;;  %v3696_v24 = vpop.f32.mrf.mxu1 }
 0x617   : > { %v5032_v40 = vpop.f32.mrf.mxu0 }
 0x618   : > { %v3632_v44 = vadd.f32 %v5032_v40, %v5026_v54 }
 0x619   : > { %v3623_v25 = vpop.f32.mrf.mxu0 }
 0x61a   : > { %v3709_v11 = vadd.f32 %v5038_v15, %v3632_v44  ;;  %v3624_v19 = vadd.f32 %v3623_v25, %v3563_v34 }
 0x61b   : > { %v5033_v42 = vpop.f32.mrf.mxu0 }
 0x61c   : > { %v3712_v31 = vmul.f32 %v3709_v11, %v3709_v11  ;;  %v3707_v7 = vadd.f32 %v3693_v12, %v3624_v19 }
 0x61d   : > { %v3626_v46 = vpop.f32.mrf.mxu0 }
 0x61e   : > { %v3715_v22 = vmul.f32 %v3712_v31, %v3709_v11  ;;  %v3710_v2 = vmul.f32 %v3707_v7, %v3707_v7  ;;  %v3627_v21 = vadd.f32 %v3626_v46, %v3566_v60 }
 0x620   : > { %v3718_v37 = vmul.f32 0.044715, %v3715_v22  ;;  %v3713_v56 = vmul.f32 %v3710_v2, %v3707_v7  ;;  %v3708_v27 = vadd.f32 %v3696_v24, %v3627_v21 }
 0x622   : > { %v3721_v18 = vadd.f32 %v3718_v37, %v3709_v11  ;;  %v3716_v5 = vmul.f32 0.044715, %v3713_v56  ;;  %v3711_v28 = vmul.f32 %v3708_v27, %v3708_v27 }
 0x624   : > { %v3724_v17 = vmul.f32 0.7978846, %v3721_v18  ;;  %v3719_v23 = vadd.f32 %v3716_v5, %v3707_v7  ;;  %v3714_v47 = vmul.f32 %v3711_v28, %v3708_v27 }
 0x626   : > { %5336 = vtanh.f32 %v3724_v17  ;;  %v3722_v8 = vmul.f32 0.7978846, %v3719_v23  ;;  %v3717_v33 = vmul.f32 0.044715, %v3714_v47 }
 0x628   : > { %5338 = vtanh.f32 %v3722_v8  ;;  %v3720_v32 = vadd.f32 %v3717_v33, %v3708_v27 }
 0x62a   : > { %v3723_v59 = vmul.f32 0.7978846, %v3720_v32 }
 0x62c   : > { %5340 = vtanh.f32 %v3723_v59 }
 0x633   : > { %v5337_v51 = vpop.eup %5336 }
 0x634   : > { %v3730_v36 = vadd.f32 1.0, %v5337_v51 }
 0x635   : > { %v5339_v9 = vpop.eup %5338 }
 0x636   : > { %v3733_v14 = vmul.f32 0.5, %v3730_v36  ;;  %v3728_v4 = vadd.f32 1.0, %v5339_v9 }
 0x638   : > { %v3736_v13 = vmul.f32 %v3733_v14, %v3709_v11  ;;  %v3731_v16 = vmul.f32 0.5, %v3728_v4 }
 0x639   : > { %v5341_v30 = vpop.eup %5340 }
 0x63a   : > { %3739 = vst.msk [vmem:[#allocation6 + $0x10] sm:$0xff] %vm1458_vm3, %v3736_v13  ;;  %v3734_v10 = vmul.f32 %v3731_v16, %v3707_v7  ;;  %v3729_v55 = vadd.f32 1.0, %v5341_v30 }
 0x63c   : > { %3737 = vst.msk [vmem:[#allocation6] sm:$0xff] %vm1458_vm3, %v3734_v10  ;;  %v3732_v45 = vmul.f32 0.5, %v3729_v55 }
 0x63e   : > { %v3735_v61 = vmul.f32 %v3732_v45, %v3708_v27 }
 0x640   : > { %3738 = vst.msk [vmem:[#allocation6 + $0x8] sm:$0xff] %vm1458_vm3, %v3735_v61 }
 0x641   : > { %v3749_v20 = vld [vmem:[#allocation6 + $0x11] ss:$2 sm:$0xf]  ;;  %v3742_v26 = vld [vmem:[#allocation6 + $0x10] ss:$2 sm:$0xf] }
 0x647   : > { %v3747_v58 = vld [vmem:[#allocation6 + $0x1] ss:$2 sm:$0xff]  ;;  %v3740_v63 = vld [vmem:[#allocation6] ss:$2 sm:$0xff] }
 0x648   : > { %v3752_v53 = vpack.c.bf16 %v3749_v20, %v3747_v58  ;;  %v3745_v41 = vpack.c.bf16 %v3742_v26, %v3740_v63  ;;  %v5143_v26 = vld [vmem:[%s6851_s10] sm:$0xff]  }
 0x64a   : > { %5043 = vmatmul.mubr.msk.bf16.vlgmr.msra.gmra.mxu0 %vm1458_vm3, %v3752_v53  ;;  %5049 = vmatmul.mubr.msk.bf16.vlgmr.msra.gmra.mxu1 %vm1458_vm3, %v3745_v41 }
 0x64b   : > { %5054 = vmatprep.mubr.msk.bf16.mxu0 %vm5359_vm1, %v5358_v0  ;;  %5060 = vmatprep.mubr.msk.bf16.mxu1 %vm5359_vm1, %v5358_v0 }
 0x64c   : > { %5053 = vmatpush3.bf16.msra.mxu0 %v5141_v1  ;;  %5059 = vmatpush3.bf16.msra.mxu1 %v5142_v29  ;;  %v4494_v1 = vld [vmem:[%s6849_s8] ss:$0 sm:$0xff] }
 0x64d   : > { %5064 = vmatprep.subr.bf16.mxu0 %v5358_v0  ;;  %5070 = vmatprep.subr.bf16.mxu1 %v5358_v0 }
 0x70a   : > { %v3796_v48 = vpop.f32.mrf.mxu0  ;;  %v3846_v43 = vpop.f32.mrf.mxu1 }
 0x70b   : > { %v3847_v52 = vadd.f32 %v3846_v43, %v3796_v48  ;;  %v4495_v48 = vld [vmem:[%s6850_s9] ss:$0 sm:$0xff] }
 0x70c   : > { %v5044_v39 = vpop.f32.mrf.mxu0  ;;  %v5050_v35 = vpop.f32.mrf.mxu1 }
 0x70d   : > { %v3853_v6 = vmul.f32 %v3847_v52, %v3847_v52  ;;  %v5144_v35 = vld [vmem:[%s6854_s13 + $0x8] sm:$0xff]  }
 0x70e   : > { %v3799_v57 = vpop.f32.mrf.mxu0  ;;  %v3849_v49 = vpop.f32.mrf.mxu1 }
 0x70f   : > { %v3855_v50 = vmul.f32 %v3853_v6, %v3847_v52  ;;  %v3850_v62 = vadd.f32 %v3849_v49, %v3799_v57  ;;  %v5145_v6 = vld [vmem:[%s6854_s13] sm:$0xff]   ;;  %v5360_v57 = vmov 1966171168  }
 0x710   : > { %v5045_v54 = vpop.f32.mrf.mxu0  ;;  %v5051_v15 = vpop.f32.mrf.mxu1  ;;  %v4084_v49 = vunpack.c.l.s4 %v5360_v57 }
 0x711   : > { %v3857_v34 = vmul.f32 0.044715, %v3855_v50  ;;  %v3854_v12 = vmul.f32 %v3850_v62, %v3850_v62  ;;  %v4086_v50 = vlaneseq  ;;  %v4496_v15 = vld [vmem:[%s6852_s11] ss:$0 sm:$0xff] }
 0x713   : > { %v3859_v38 = vadd.f32 %v3857_v34, %v3847_v52  ;;  %v3856_v3 = vmul.f32 %v3854_v12, %v3850_v62  ;;  %v4087_v54 = vshrl.u32 %v4086_v50, 7 }
 0x715   : > { %v3861_v60 = vmul.f32 0.7978846, %v3859_v38  ;;  %v3858_v40 = vmul.f32 0.044715, %v3856_v3 }
 0x717   : > { %5342 = vtanh.f32 %v3861_v60  ;;  %v3860_v44 = vadd.f32 %v3858_v40, %v3850_v62 }
 0x719   : > { %v3862_v25 = vmul.f32 0.7978846, %v3860_v44  ;;  %v4131_v44 = vsub.s32 0, %v4087_v54 }
 0x71b   : > { %5344 = vtanh.f32 %v3862_v25 }
 0x724   : > { %v5343_v11 = vpop.eup %5342 }
 0x725   : > { %v3865_v19 = vadd.f32 1.0, %v5343_v11 }
 0x727   : > { %v3867_v42 = vmul.f32 0.5, %v3865_v19 }
 0x728   : > { %v5345_v31 = vpop.eup %5344 }
 0x729   : > { %v3869_v7 = vmul.f32 %v3867_v42, %v3847_v52  ;;  %v3866_v46 = vadd.f32 1.0, %v5345_v31  ;;  %v4080_v31 = vld [vmem:[%s506_s21] sm:$0xff] }
 0x72b   : > { %3871 = vst.msk [vmem:[#allocation7] sm:$0xff] %vm1458_vm3, %v3869_v7  ;;  %v3868_v22 = vmul.f32 0.5, %v3866_v46 }
 0x72d   : > { %v3870_v2 = vmul.f32 %v3868_v22, %v3850_v62  ;;  %v4085_v62 = vunpack.c.0.s8 %v4084_v49 }
 0x72f   : > { %3873 = vst.msk [vmem:[#allocation7 + $0x8] sm:$0xf] %vm3872_vm7, %v3870_v2  ;;  %v4088_v34 = vsub.s32 %v4085_v62, %v4087_v54 }
 0x736   : > { %v3879_v21 = vld [vmem:[#allocation7 + $0x1] ss:$2 sm:$0x3f]  ;;  %v3874_v24 = vld [vmem:[#allocation7] ss:$2 sm:$0x3f] }
 0x737   : > { %v3882_v37 = vpack.c.bf16 %v3879_v21, %v3879_v21  ;;  %v3877_v56 = vpack.c.bf16 %v3874_v24, %v3874_v24 }
 0x739   : > { %5055 = vmatmul.mubr.msk.bf16.vlgmr.msra.gmra.mxu0 %vm1458_vm3, %v3882_v37  ;;  %5061 = vmatmul.mubr.msk.bf16.vlgmr.msra.gmra.mxu1 %vm1458_vm3, %v3877_v56 }
 0x73a   : > { %5066 = vmatprep.mubr.msk.bf16.mxu0 %vm5359_vm1, %v5358_v0  ;;  %5074 = vmatprep.mubr.msk.bf16.mxu1 %vm5359_vm1, %v5358_v0 }
 0x73b   : > { %5065 = vmatpush3.bf16.msra.mxu0 %v5143_v26  ;;  %5071 = vmatpush3.bf16.msra.mxu1 %v5144_v35 }
 0x73c   : > { %5072 = vmatprep.subr.bf16.mxu1 %v5358_v0 }
 0x73f   : > { %5073 = vmatpush3.bf16.msra.mxu1 %v5145_v6 }
 0x7f9   : > { %v3926_v27 = vpop.f32.mrf.mxu0  ;;  %v3975_v18 = vpop.f32.mrf.mxu1 }
 0x7fa   : > { %v3976_v5 = vadd.f32 %v3975_v18, %v3926_v27 }
 0x7fb   : > { %v5056_v28 = vpop.f32.mrf.mxu0  ;;  %v5062_v17 = vpop.f32.mrf.mxu1 }
 0x7fc   : > { %v3981_v23 = vmul.f32 %v3976_v5, %v3976_v5 }
 0x7fd   : > { %v3929_v47 = vpop.f32.mrf.mxu0  ;;  %v3978_v8 = vpop.f32.mrf.mxu1 }
 0x7fe   : > { %v3982_v33 = vmul.f32 %v3981_v23, %v3976_v5 }
 0x7ff   : > { %v5057_v32 = vpop.f32.mrf.mxu0  ;;  %v5063_v59 = vpop.f32.mrf.mxu1 }
 0x800   : > { %v3983_v51 = vmul.f32 0.044715, %v3982_v33 }
 0x802   : > { %v3984_v36 = vadd.f32 %v3983_v51, %v3976_v5 }
 0x804   : > { %v3985_v9 = vmul.f32 0.7978846, %v3984_v36 }
 0x806   : > { %5346 = vtanh.f32 %v3985_v9 }
 0x813   : > { %v5347_v14 = vpop.eup %5346 }
 0x814   : > { %v3987_v4 = vadd.f32 1.0, %v5347_v14 }
 0x816   : > { %v3988_v13 = vmul.f32 0.5, %v3987_v4 }
 0x818   : > { %v3989_v16 = vmul.f32 %v3988_v13, %v3976_v5 }
 0x81a   : > { %v3993_v30 = vsel %vm3992_vm8, %v3989_v16, 0.0 }
 0x81b   : > { %3994 = vadd.xlane.f32.xlu0 %v3993_v30 }
 0x8a4   : > { %v3995_v10 = vpop.xlane.xlu0 %3994 }
 0x8a5   : > { %v3997_v55 = vmul.f32 0.0625, %v3995_v10 }
 0x8a7   : > { %v3998_v45 = vsub.f32 %v3989_v16, %v3997_v55  ;;  %v4499_v55 = vld [vmem:[%s6855_s14] ss:$0 sm:$0xff] }
 0x8a9   : > { %v3999_v61 = vmul.f32 %v3998_v45, %v3998_v45 }
 0x8ab   : > { %v4000_v20 = vsel %vm3992_vm8, %v3999_v61, 0.0 }
 0x8ac   : > { %4001 = vadd.xlane.f32.xlu0 %v4000_v20 }
 0x935   : > { %v4002_v58 = vpop.xlane.xlu0 %4001 }
 0x936   : > { %v4003_v63 = vmul.f32 0.0625, %v4002_v58 }
 0x938   : > { %v4004_v53 = vadd.f32 1e-05, %v4003_v63 }
 0x93a   : > { %5348 = vrsqrt.f32 %v4004_v53 }
 0x947   : > { %v5349_v41 = vpop.eup %5348 }
 0x948   : > { %v4006_v29 = vmul.f32 %v5349_v41, %v3998_v45 }
 0x94a   : > { %v4013_v43 = vmul.f32 %v4494_v1, %v4006_v29 }
 0x94c   : > { %v4020_v52 = vadd.f32 %v4495_v48, %v4013_v43 }
 0x94e   : > { %v4021_v39 = vpack.c.bf16 %v4020_v52, %v4020_v52 }
 0x950   : > { %5067 = vmatmul.mubr.msk.bf16.vlgmr.msra.gmra.mxu0 %vm1458_vm3, %v4021_v39 }
 0xa10   : > { %v4074_v12 = vpop.f32.mrf.mxu0 }
 0xa11   : > { %v4075_v38 = vadd.f32 %v4496_v15, %v4074_v12 }
 0xa12   : > { %v5068_v3 = vpop.f32.mrf.mxu0 }
 0xa13   : > { %v4082_v60 = vcombine.high %v4075_v38, %v4075_v38  ;;  %v4089_v40 = vrot.slane %v4075_v38, %v4088_v34 }
 0xa14   : > { %v4077_v25 = vpop.f32.mrf.mxu0 }
 0xa15   : > { %v4097_v11 = vcombine.high %v4089_v40, %v4089_v40  ;;  %v4105_v19 = vrot.slane %v4089_v40, %v4088_v34  ;;  %v4096_v7 = vrot.slane %v4082_v60, %v4088_v34 }
 0xa16   : > { %v5069_v42 = vpop.f32.mrf.mxu0 }
 0xa17   : > { %v4119_v46 = vrot.slane %v4097_v11, %v4088_v34  ;;  %v4132_v22 = vrot.slane %v4105_v19, %v4131_v44  ;;  %v4127_v2 = vcombine.high %v4105_v19, %v4105_v19  ;;  %v4098_v56 = vcombine.high %v4096_v7, %v4096_v7 }
 0xa18   : > { %v4112_v33 = vrot.slane %v4096_v7, %v4088_v34 }
 0xa19   : > { %v4128_v21 = vcombine.high %v4119_v46, %v4119_v46  ;;  %v4136_v24 = vrot.slane %v4119_v46, %v4131_v44  ;;  %v4159_v37 = vadd.f32 %v4132_v22, %v4080_v31  ;;  %v4140_v5 = vrot.slane %v4127_v2, %v4131_v44 }
 0xa1a   : > { %v4126_v23 = vrot.slane %v4098_v56, %v4088_v34  ;;  %v4148_v36 = vrot.slane %v4112_v33, %v4131_v44 }
 0xa1b   : > { %v4144_v27 = vrot.slane %v4128_v21, %v4131_v44  ;;  %v4160_v18 = vadd.f32 %v4136_v24, %v4080_v31  ;;  %v4165_v28 = vmax.f32 %v4159_v37, 0.0  ;;  %v4161_v32 = vadd.f32 %v4140_v5, %v4080_v31 }
 0xa1c   : > { %v4152_v59 = vrot.slane %v4126_v23, %v4131_v44  ;;  %v4163_v13 = vadd.f32 %v4148_v36, %v4080_v31 }
 0xa1d   : > { %v4166_v17 = vmax.f32 %v4160_v18, 0.0  ;;  %v4162_v47 = vadd.f32 %v4144_v27, %v4080_v31  ;;  %v4167_v9 = vmax.f32 %v4161_v32, 0.0 }
 0xa1e   : > { %v4164_v14 = vadd.f32 %v4152_v59, %v4080_v31  ;;  %v4169_v30 = vmax.f32 %v4163_v13, 0.0 }
 0xa1f   : > { %v4171_v8 = vpack.c.bf16 %v4166_v17, %v4165_v28  ;;  %v4168_v51 = vmax.f32 %v4162_v47, 0.0 }
 0xa20   : > { %v4170_v16 = vmax.f32 %v4164_v14, 0.0 }
 0xa21   : > { %5075 = vmatmul.mubr.msk.bf16.vlgmr.msra.gmra.mxu1 %vm4197_vm9, %v4171_v8  ;;  %v4172_v4 = vpack.c.bf16 %v4168_v51, %v4167_v9 }
 0xa22   : > { %5078 = vmatprep.mubr.msk.bf16.mxu1 %vm5359_vm1, %v5358_v0  ;;  %v4173_v10 = vpack.c.bf16 %v4170_v16, %v4169_v30 }
 0xa29   : > { %5079 = vmatmul.mubr.msk.bf16.gmra.mxu1 %vm4197_vm9, %v4172_v4 }
 0xa2a   : > { %5082 = vmatprep.mubr.msk.bf16.mxu1 %vm5359_vm1, %v5358_v0 }
 0xa31   : > { %5083 = vmatmul.mubr.msk.bf16.gmra.mxu1 %vm4197_vm9, %v4173_v10 }
 0xae1   : > { %v4241_v45 = vpop.f32.mrf.mxu1 }
 0xae2   : > { %v4242_v61 = vadd.f32 %v4499_v55, %v4241_v45 }
 0xae3   : > { %v5076_v20 = vpop.f32.mrf.mxu1 }
 0xae4   : > { %4264 = vst [vmem:[%s511_s27] sm:$0xff] %v4242_v61 }
 0xae5   : > { %v4244_v26 = vpop.f32.mrf.mxu1 }
 0xae6   : > { %v4245_v0 = vadd.f32 %v4499_v55, %v4244_v26 }
 0xae7   : > { %v5077_v58 = vpop.f32.mrf.mxu1 }
 0xae8   : > { %4265 = vst [vmem:[%s511_s27 + $0x8] sm:$0xff] %v4245_v0 }
 0xae9   : > { %v4249_v63 = vpop.f32.mrf.mxu1 }
 0xaea   : > { %v4250_v53 = vadd.f32 %v4499_v55, %v4249_v63 }
 0xaeb   : > { %v5080_v41 = vpop.f32.mrf.mxu1 }
 0xaec   : > { %4266 = vst [vmem:[%s511_s27 + $0x10] sm:$0xff] %v4250_v53 }
 0xaed   : > { %v4252_v1 = vpop.f32.mrf.mxu1 }
 0xaee   : > { %v4253_v29 = vadd.f32 %v4499_v55, %v4252_v1 }
 0xaef   : > { %v5081_v48 = vpop.f32.mrf.mxu1 }
 0xaf0   : > { %4267 = vst [vmem:[%s511_s27 + $0x18] sm:$0xff] %v4253_v29 }
 0xaf1   : > { %v4257_v43 = vpop.f32.mrf.mxu1 }
 0xaf2   : > { %v4258_v52 = vadd.f32 %v4499_v55, %v4257_v43 }
 0xaf3   : > { %v5084_v39 = vpop.f32.mrf.mxu1 }
 0xaf4   : > { %4268 = vst [vmem:[%s511_s27 + $0x20] sm:$0xff] %v4258_v52 }
 0xaf5   : > { %v4260_v35 = vpop.f32.mrf.mxu1 }
 0xaf6   : > { %v4261_v6 = vadd.f32 %v4499_v55, %v4260_v35 }
 0xaf7   : > { %v5085_v57 = vpop.f32.mrf.mxu1 }
 0xaf8   : > { %4269 = vst [vmem:[%s511_s27 + $0x28] sm:$0xff] %v4261_v6 }
 0xaf9 PF: > { %s25_s18 = sadd.s32 1, %s5356_s18  }
 0xafa   : > { %p22_p4 = scmp.ge.s32.totalorder %s25_s18, 4  }
 0xafc   :  { %24 = sbr.rel (!%p22_p4) target bundleno = 1 (0x1), region = 257 }

</bundles_post_ra>
